<compile_context>
chip_gen: v7x
topology: tpu7x:2x2x1
jax: 0.10.0
libtpu: 0.0.40
codegen_flags: <defaults>
</compile_context>

<pallas_src>
import functools

import jax
import jax.numpy as jnp
from jax.experimental import pallas as pl
from jax.experimental.pallas import tpu as pltpu

PAD = 8  # per-batch slab: activation starts at sublane-aligned row PAD; row PAD-1 is the zero pad


def _fold(groups):
    """Concatenate per-batch (rows, K) operands along the sublane / M axis."""
    return groups[0] if len(groups) == 1 else jnp.concatenate(groups, axis=0)


# ----------------------------------------------------------------------------
# Fused encoder kernel: one grid step = `batch_block` batch elements, all VMEM-resident
# ----------------------------------------------------------------------------
def _raw_encoder_kernel(xcol_ref, w0_ref, b0_ref, wdp_ref, bd_ref, w3p_ref, w1_ref,
                        o_ref, buf_a, buf_b, *, n_res_layers, batch_block):
    Bb = batch_block
    C = o_ref.shape[-1]
    t_f = o_ref.shape[0] // Bb          # final time length per batch element
    t0 = xcol_ref.shape[0] // Bb        # time length after layer 0
    n_mid = wdp_ref.shape[0]            # number of C->C down-convs (num_layers - 1)
    bufs = (buf_a, buf_b)
    strides = (buf_a.shape[0] // Bb, buf_b.shape[0] // Bb)   # per-batch slab strides
    zero_row = jnp.zeros((1, C), jnp.float32)

    def write_act(buf, base, val, t):
        # rows [base+PAD, base+PAD+t) = activation; rows base+PAD-1 / base+PAD+t = zero halo
        buf[pl.ds(base + PAD - 1, 1), :] = zero_row
        buf[pl.ds(base + PAD, t), :] = val
        buf[pl.ds(base + PAD + t, 1), :] = zero_row

    # ---- layer 0: Conv1d(1 -> C, k=4, s=2, p=1) + ReLU as ONE (Bb*t0, 4) x (4, C) matmul ----
    acc = jnp.dot(xcol_ref[...], w0_ref[...], preferred_element_type=jnp.float32)
    acc = jnp.maximum(acc + b0_ref[...], 0.0)                        # (Bb*t0, C) f32
    for b in range(Bb):
        write_act(buf_a, b * strides[0], acc[b * t0:(b + 1) * t0], t0)
    cur, t_in = 0, t0

    # ---- layers 1..num_layers-1: Conv1d(C -> C, k=4, s=2, p=1) + ReLU ----
    # One K = 4*C matmul per layer: the four stride-2 taps are lane-concatenated per batch,
    # batches are sublane-concatenated, weights are pre-packed to (4C, C) bf16.
    # TODO(synk): verify the stride-2 sublane reads lower to strided vld (not XLU shuffles).
    for l in range(n_mid):
        t_out = t_in // 2
        ib, sin = bufs[cur], strides[cur]
        groups = []
        for b in range(Bb):
            base = b * sin
            taps = [ib[pl.ds(base + PAD - 1 + k, t_out, stride=2), :] for k in range(4)]
            groups.append(jnp.concatenate(taps, axis=-1))            # (t_out, 4C) f32
        xk = _fold(groups).astype(jnp.bfloat16)                      # (Bb*t_out, 4C) bf16
        acc = jnp.dot(xk, wdp_ref[l], preferred_element_type=jnp.float32)
        acc = jnp.maximum(acc + bd_ref[l], 0.0)                      # (Bb*t_out, C) f32
        if l + 1 < n_mid:                                            # last output stays in vregs
            cur = 1 - cur
            for b in range(Bb):
                write_act(bufs[cur], b * strides[cur],
                          acc[b * t_out:(b + 1) * t_out], t_out)
        t_in = t_out
    assert t_in == t_f  # trace-time sanity check

    # ---- ResidualStack: n_res_layers x [x + Conv1x1(ReLU(Conv3(ReLU(x))))], final ReLU ----
    # TODO(synk): (w3, w1) reused for every layer (shared weights, see header).
    x = acc                                                          # (Bb*t_f, C) f32 carry
    rb, srb = bufs[1 - cur], strides[1 - cur]                        # scratch for padded ReLU(x)
    for _ in range(n_res_layers):
        r = jnp.maximum(x, 0.0)
        groups = []
        for b in range(Bb):
            base = b * srb
            write_act(rb, base, r[b * t_f:(b + 1) * t_f], t_f)
            taps = [rb[pl.ds(base + PAD - 1 + k, t_f), :] for k in range(3)]
            groups.append(jnp.concatenate(taps, axis=-1))            # (t_f, 3C) f32
        rk = _fold(groups).astype(jnp.bfloat16)                      # (Bb*t_f, 3C) bf16
        h = jnp.dot(rk, w3p_ref[...], preferred_element_type=jnp.float32)
        h = jnp.maximum(h, 0.0).astype(jnp.bfloat16)
        x = x + jnp.dot(h, w1_ref[...], preferred_element_type=jnp.float32)
    o_ref[...] = jnp.maximum(x, 0.0)


# ----------------------------------------------------------------------------
# Wrapper: one pallas_call for the whole forward pass
# ----------------------------------------------------------------------------
def raw_encoder_forward(x_ncl, p, n_res_layers=2, batch_block=None):
    """x_ncl: (B, 1, T) float32  ->  (B, hidden_dim, T // 2**num_layers).

    batch_block=None (default) folds the whole batch into one grid step (best on the
    single-TensorCore v5e/v6e); batch_block=1 gives grid=(B,) marked "parallel" so v7x's
    two TensorCores each take a batch block.
    """
    B, c_in, T = x_ncl.shape
    assert c_in == 1  # TODO(synk): generalize the layer-0 im2col for in_channels > 1
    C = p["w0"].shape[1]
    n_mid = p["wdp"].shape[0]
    num_layers = n_mid + 1
    t0 = T // 2
    t_f = T // (2 ** num_layers)
    Bb = B if batch_block is None else batch_block
    assert B % Bb == 0

    # Tiny layer-0 im2col: col[b, t, k] = x_padded[b, 2t + k].  Stays inside the same jit so
    # XLA fuses the pad/slice/stack.
    # TODO(synk): for streaming-length audio move this into the kernel to avoid the extra
    #             HBM round trip over the raw waveform.
    xp = jnp.pad(x_ncl[:, 0, :], ((0, 0), (1, 1)))
    x_col = jnp.stack([xp[:, k:k + 2 * t0:2] for k in range(4)], axis=-1)   # (B, t0, 4)
    x_col = x_col.reshape(B * t0, 4).astype(jnp.bfloat16)

    out = pl.pallas_call(
        functools.partial(_raw_encoder_kernel, n_res_layers=n_res_layers, batch_block=Bb),
        out_shape=jax.ShapeDtypeStruct((B * t_f, C), jnp.float32),
        grid=(B // Bb,),
        in_specs=[
            pl.BlockSpec((Bb * t0, 4), lambda i: (i, 0)),
            # Constant-index weight operands (see header TODO about pl.Buffered(1)).
            pl.BlockSpec((4, C), lambda i: (0, 0)),
            pl.BlockSpec((1, C), lambda i: (0, 0)),
            pl.BlockSpec((n_mid, 4 * C, C), lambda i: (0, 0, 0)),
            pl.BlockSpec((n_mid, 1, C), lambda i: (0, 0, 0)),
            pl.BlockSpec((3 * C, C), lambda i: (0, 0)),
            pl.BlockSpec((C, C), lambda i: (0, 0)),
        ],
        out_specs=pl.BlockSpec((Bb * t_f, C), lambda i: (i, 0)),
        scratch_shapes=[
            pltpu.VMEM((Bb * (t0 + 2 * PAD), C), jnp.float32),       # holds layers 0, 2, 4, ...
            pltpu.VMEM((Bb * (t0 // 2 + 2 * PAD), C), jnp.float32),  # layers 1, 3, 5 (half size)
        ],
        compiler_params=pltpu.CompilerParams(dimension_semantics=("parallel",)),
    )(x_col, p["w0"], p["b0"], p["wdp"], p["bd"], p["w3p"], p["w1"])

    out = out.reshape(B, t_f, C)
    # Module contract is (B, C, T_out).  The kernel's (time, C) output slab is already
    # lane-dense; drop this transpose if the downstream VQ bottleneck accepts (B, T_out, C).
    return jnp.transpose(out, (0, 2, 1))


# ----------------------------------------------------------------------------
# One-time parameter preparation (hoisted out of the forward pass)
# ----------------------------------------------------------------------------
def prepare_params(params):
    """Repack PyTorch-layout params (C_out, C_in, K) into tap-packed kernel layout (bf16 matmul weights)."""
    w0_t, b0 = params["down"][0]                       # (C, 1, 4), (C,)
    mids = params["down"][1:]
    C = w0_t.shape[0]
    # tap-packed down-conv weights: row k*C + c_in  ->  lane block k of the packed operand
    wdp = jnp.stack([jnp.transpose(w, (2, 1, 0)).reshape(4 * C, C) for (w, _) in mids])
    bd = jnp.stack([b.reshape(1, -1) for (_, b) in mids])
    w3_t, w1_t = params["res"]                         # (C, C, 3), (C, C, 1)
    return {
        "w0": jnp.transpose(w0_t[:, 0, :], (1, 0)).astype(jnp.bfloat16),          # (4, C)
        "b0": b0.reshape(1, -1).astype(jnp.float32),                              # (1, C)
        "wdp": wdp.astype(jnp.bfloat16),                                          # (L-1, 4C, C)
        "bd": bd.astype(jnp.float32),                                             # (L-1, 1, C)
        "w3p": jnp.transpose(w3_t, (2, 1, 0)).reshape(3 * C, C).astype(jnp.bfloat16),  # (3C, C)
        "w1": jnp.transpose(w1_t[:, :, 0], (1, 0)).astype(jnp.bfloat16),          # (C, C)
    }


# ----------------------------------------------------------------------------
# Pure-JAX reference (default precision) and synthetic params
# ----------------------------------------------------------------------------
def raw_encoder_reference(x_ncl, params, n_res_layers=2):
    dn = ("NCH", "OIH", "NCH")
    x = x_ncl
    for w, b in params["down"]:
        x = jax.lax.conv_general_dilated(x, w, (2,), [(1, 1)], dimension_numbers=dn)
        x = jnp.maximum(x + b[None, :, None], 0.0)
    w3, w1 = params["res"]
    for _ in range(n_res_layers):
        r = jnp.maximum(x, 0.0)
        h = jax.lax.conv_general_dilated(r, w3, (1,), [(1, 1)], dimension_numbers=dn)
        h = jnp.maximum(h, 0.0)
        y = jax.lax.conv_general_dilated(h, w1, (1,), [(0, 0)], dimension_numbers=dn)
        x = x + y
    return jnp.maximum(x, 0.0)


def _bf16_round(w):
    return w.astype(jnp.bfloat16).astype(jnp.float32)


def init_params(key, in_channels, hidden_dim, num_layers):
    """Deterministic synthetic params in PyTorch layout (C_out, C_in, K), He-scaled."""
    params = {"down": []}
    c_in = in_channels
    for _ in range(num_layers):
        key, k1, k2 = jax.random.split(key, 3)
        scale = (2.0 / (c_in * 4)) ** 0.5
        w = _bf16_round(jax.random.normal(k1, (hidden_dim, c_in, 4), jnp.float32) * scale)
        b = jax.random.normal(k2, (hidden_dim,), jnp.float32) * 0.05
        params["down"].append((w, b))
        c_in = hidden_dim
    key, k3, k4 = jax.random.split(key, 3)
    w3 = _bf16_round(jax.random.normal(k3, (hidden_dim, hidden_dim, 3), jnp.float32)
                     * (2.0 / (hidden_dim * 3)) ** 0.5)
    w1 = _bf16_round(jax.random.normal(k4, (hidden_dim, hidden_dim, 1), jnp.float32)
                     * (1.0 / hidden_dim) ** 0.5)
    params["res"] = (w3, w1)
    return params


if __name__ == "__main__":
    B, in_channels, hidden_dim, num_layers = 2, 1, 128, 6  # hidden_dim=128: module default, lane-dense
    T = 512  # T / 2**6 = 8  -> every per-batch time extent stays a multiple of 8 sublanes

    key = jax.random.PRNGKey(0)
    key, pkey, xkey = jax.random.split(key, 3)
    params = init_params(pkey, in_channels, hidden_dim, num_layers)
    packed = prepare_params(params)  # one-time repack (bf16 tap-packed weights)
    x = jax.random.normal(xkey, (B, in_channels, T), jnp.float32)

    fwd = jax.jit(raw_encoder_forward)
    out = jax.block_until_ready(fwd(x, packed))
    ref = jax.block_until_ready(raw_encoder_reference(x, params))

    assert out.shape == (B, hidden_dim, T // 2 ** num_layers), out.shape
    err = float(jnp.max(jnp.abs(out - ref)))
    # bf16 matmul operands in the kernel vs default-precision XLA reference -> loose tolerance
    assert jnp.allclose(out, ref, rtol=5e-2, atol=5e-2), err
    print("KERNEL_OK")
</pallas_src>

<mosaic_0001>
module attributes {stable_mosaic.version = 11 : i64} {
  func.func @_raw_encoder_kernel(%arg0: i32, %arg1: memref<512x4xbf16, #tpu.memory_space<vmem>>, %arg2: memref<4x128xbf16, #tpu.memory_space<vmem>>, %arg3: memref<1x128xf32, #tpu.memory_space<vmem>>, %arg4: memref<5x512x128xbf16, #tpu.memory_space<vmem>>, %arg5: memref<5x1x128xf32, #tpu.memory_space<vmem>>, %arg6: memref<384x128xbf16, #tpu.memory_space<vmem>>, %arg7: memref<128x128xbf16, #tpu.memory_space<vmem>>, %arg8: memref<16x128xf32, #tpu.memory_space<vmem>>, %arg9: memref<544x128xf32, #tpu.memory_space<vmem>>, %arg10: memref<288x128xf32, #tpu.memory_space<vmem>>) attributes {dimension_semantics = [#tpu.dimension_semantics<parallel>], iteration_bounds = array<i64: 1>, scalar_prefetch = 0 : i64, scratch_operands = 2 : i64, tpu.core_type = #tpu.core_type<tc>, window_params = [{transform_indices = @transform_0, window_bounds = array<i64: 512, 4>}, {pipeline_mode = #tpu.pipeline_mode<synchronous>, transform_indices = @transform_1, window_bounds = array<i64: 4, 128>}, {pipeline_mode = #tpu.pipeline_mode<synchronous>, transform_indices = @transform_2, window_bounds = array<i64: 1, 128>}, {pipeline_mode = #tpu.pipeline_mode<synchronous>, transform_indices = @transform_3, window_bounds = array<i64: 5, 512, 128>}, {pipeline_mode = #tpu.pipeline_mode<synchronous>, transform_indices = @transform_4, window_bounds = array<i64: 5, 1, 128>}, {pipeline_mode = #tpu.pipeline_mode<synchronous>, transform_indices = @transform_5, window_bounds = array<i64: 384, 128>}, {pipeline_mode = #tpu.pipeline_mode<synchronous>, transform_indices = @transform_6, window_bounds = array<i64: 128, 128>}, {transform_indices = @transform_7, window_bounds = array<i64: 16, 128>}]} {
    %cst = arith.constant 0.000000e+00 : f32
    %0 = vector.broadcast %cst : f32 to vector<1x128xf32>
    %c0 = arith.constant 0 : index
    %c0_0 = arith.constant 0 : index
    %1 = vector.load %arg1[%c0, %c0_0] : memref<512x4xbf16, #tpu.memory_space<vmem>>, vector<512x4xbf16>
    %c0_1 = arith.constant 0 : index
    %c0_2 = arith.constant 0 : index
    %2 = vector.load %arg2[%c0_1, %c0_2] : memref<4x128xbf16, #tpu.memory_space<vmem>>, vector<4x128xbf16>
    %cst_3 = arith.constant dense<0.000000e+00> : vector<512x128xf32>
    %3 = tpu.matmul %1, %2, %cst_3 {dimension_numbers = #tpu.dot_dimension_numbers<[1], [0], [0], [1], [0, 0, 1, 1], [], []>} : vector<512x4xbf16>, vector<4x128xbf16>, vector<512x128xf32> -> vector<512x128xf32>
    %c0_4 = arith.constant 0 : index
    %c0_5 = arith.constant 0 : index
    %4 = vector.load %arg3[%c0_4, %c0_5] : memref<1x128xf32, #tpu.memory_space<vmem>>, vector<1x128xf32>
    %5 = vector.broadcast %4 : vector<1x128xf32> to vector<512x128xf32>
    %6 = arith.addf %3, %5 : vector<512x128xf32>
    %cst_6 = arith.constant 0.000000e+00 : f32
    %7 = vector.broadcast %cst_6 : f32 to vector<512x128xf32>
    %8 = arith.maximumf %6, %7 : vector<512x128xf32>
    %9 = vector.extract_strided_slice %8 {offsets = [0, 0], sizes = [256, 128], strides = [1, 1]} : vector<512x128xf32> to vector<256x128xf32>
    %c7 = arith.constant 7 : index
    %c0_7 = arith.constant 0 : index
    %10 = vector.load %arg9[%c7, %c0_7] : memref<544x128xf32, #tpu.memory_space<vmem>>, vector<1x128xf32>
    tpu.vector_store %arg9[%c7, %c0_7], %0 {strides = array<i32>} : memref<544x128xf32, #tpu.memory_space<vmem>>, vector<1x128xf32>,
    %c8 = arith.constant 8 : index
    %c0_8 = arith.constant 0 : index
    %11 = vector.load %arg9[%c8, %c0_8] : memref<544x128xf32, #tpu.memory_space<vmem>>, vector<256x128xf32>
    tpu.vector_store %arg9[%c8, %c0_8], %9 {strides = array<i32>} : memref<544x128xf32, #tpu.memory_space<vmem>>, vector<256x128xf32>,
    %c264 = arith.constant 264 : index
    %c0_9 = arith.constant 0 : index
    %12 = vector.load %arg9[%c264, %c0_9] : memref<544x128xf32, #tpu.memory_space<vmem>>, vector<1x128xf32>
    tpu.vector_store %arg9[%c264, %c0_9], %0 {strides = array<i32>} : memref<544x128xf32, #tpu.memory_space<vmem>>, vector<1x128xf32>,
    %13 = vector.extract_strided_slice %8 {offsets = [256, 0], sizes = [256, 128], strides = [1, 1]} : vector<512x128xf32> to vector<256x128xf32>
    %c279 = arith.constant 279 : index
    %c0_10 = arith.constant 0 : index
    %14 = vector.load %arg9[%c279, %c0_10] : memref<544x128xf32, #tpu.memory_space<vmem>>, vector<1x128xf32>
    tpu.vector_store %arg9[%c279, %c0_10], %0 {strides = array<i32>} : memref<544x128xf32, #tpu.memory_space<vmem>>, vector<1x128xf32>,
    %c280 = arith.constant 280 : index
    %c0_11 = arith.constant 0 : index
    %15 = vector.load %arg9[%c280, %c0_11] : memref<544x128xf32, #tpu.memory_space<vmem>>, vector<256x128xf32>
    tpu.vector_store %arg9[%c280, %c0_11], %13 {strides = array<i32>} : memref<544x128xf32, #tpu.memory_space<vmem>>, vector<256x128xf32>,
    %c536 = arith.constant 536 : index
    %c0_12 = arith.constant 0 : index
    %16 = vector.load %arg9[%c536, %c0_12] : memref<544x128xf32, #tpu.memory_space<vmem>>, vector<1x128xf32>
    tpu.vector_store %arg9[%c536, %c0_12], %0 {strides = array<i32>} : memref<544x128xf32, #tpu.memory_space<vmem>>, vector<1x128xf32>,
    %c7_13 = arith.constant 7 : index
    %c0_14 = arith.constant 0 : index
    %17 = tpu.strided_load %arg9[%c7_13, %c0_14] {strides = array<i32: 2, 1>} : memref<544x128xf32, #tpu.memory_space<vmem>>, vector<128x128xf32>
    %c8_15 = arith.constant 8 : index
    %c0_16 = arith.constant 0 : index
    %18 = tpu.strided_load %arg9[%c8_15, %c0_16] {strides = array<i32: 2, 1>} : memref<544x128xf32, #tpu.memory_space<vmem>>, vector<128x128xf32>
    %c9 = arith.constant 9 : index
    %c0_17 = arith.constant 0 : index
    %19 = tpu.strided_load %arg9[%c9, %c0_17] {strides = array<i32: 2, 1>} : memref<544x128xf32, #tpu.memory_space<vmem>>, vector<128x128xf32>
    %c10 = arith.constant 10 : index
    %c0_18 = arith.constant 0 : index
    %20 = tpu.strided_load %arg9[%c10, %c0_18] {strides = array<i32: 2, 1>} : memref<544x128xf32, #tpu.memory_space<vmem>>, vector<128x128xf32>
    %21 = tpu.concatenate %17, %18, %19, %20 in 1 : vector<128x128xf32>, vector<128x128xf32>, vector<128x128xf32>, vector<128x128xf32> -> vector<128x512xf32>
    %c279_19 = arith.constant 279 : index
    %c0_20 = arith.constant 0 : index
    %22 = tpu.strided_load %arg9[%c279_19, %c0_20] {strides = array<i32: 2, 1>} : memref<544x128xf32, #tpu.memory_space<vmem>>, vector<128x128xf32>
    %c280_21 = arith.constant 280 : index
    %c0_22 = arith.constant 0 : index
    %23 = tpu.strided_load %arg9[%c280_21, %c0_22] {strides = array<i32: 2, 1>} : memref<544x128xf32, #tpu.memory_space<vmem>>, vector<128x128xf32>
    %c281 = arith.constant 281 : index
    %c0_23 = arith.constant 0 : index
    %24 = tpu.strided_load %arg9[%c281, %c0_23] {strides = array<i32: 2, 1>} : memref<544x128xf32, #tpu.memory_space<vmem>>, vector<128x128xf32>
    %c282 = arith.constant 282 : index
    %c0_24 = arith.constant 0 : index
    %25 = tpu.strided_load %arg9[%c282, %c0_24] {strides = array<i32: 2, 1>} : memref<544x128xf32, #tpu.memory_space<vmem>>, vector<128x128xf32>
    %26 = tpu.concatenate %22, %23, %24, %25 in 1 : vector<128x128xf32>, vector<128x128xf32>, vector<128x128xf32>, vector<128x128xf32> -> vector<128x512xf32>
    %27 = tpu.concatenate %21, %26 in 0 : vector<128x512xf32>, vector<128x512xf32> -> vector<256x512xf32>
    %28 = arith.truncf %27 : vector<256x512xf32> to vector<256x512xbf16>
    %c0_25 = arith.constant 0 : index
    %c0_26 = arith.constant 0 : index
    %c0_27 = arith.constant 0 : index
    %29 = vector.load %arg4[%c0_25, %c0_26, %c0_27] : memref<5x512x128xbf16, #tpu.memory_space<vmem>>, vector<1x512x128xbf16>
    %30 = vector.shape_cast %29 : vector<1x512x128xbf16> to vector<512x128xbf16>
    %cst_28 = arith.constant dense<0.000000e+00> : vector<256x128xf32>
    %31 = tpu.matmul %28, %30, %cst_28 {dimension_numbers = #tpu.dot_dimension_numbers<[1], [0], [0], [1], [0, 0, 1, 1], [], []>} : vector<256x512xbf16>, vector<512x128xbf16>, vector<256x128xf32> -> vector<256x128xf32>
    %c0_29 = arith.constant 0 : index
    %c0_30 = arith.constant 0 : index
    %c0_31 = arith.constant 0 : index
    %32 = vector.load %arg5[%c0_29, %c0_30, %c0_31] : memref<5x1x128xf32, #tpu.memory_space<vmem>>, vector<1x1x128xf32>
    %33 = vector.shape_cast %32 : vector<1x1x128xf32> to vector<1x128xf32>
    %34 = vector.broadcast %33 : vector<1x128xf32> to vector<256x128xf32>
    %35 = arith.addf %31, %34 : vector<256x128xf32>
    %cst_32 = arith.constant 0.000000e+00 : f32
    %36 = vector.broadcast %cst_32 : f32 to vector<256x128xf32>
    %37 = arith.maximumf %35, %36 : vector<256x128xf32>
    %38 = vector.extract_strided_slice %37 {offsets = [0, 0], sizes = [128, 128], strides = [1, 1]} : vector<256x128xf32> to vector<128x128xf32>
    %c7_33 = arith.constant 7 : index
    %c0_34 = arith.constant 0 : index
    %39 = vector.load %arg10[%c7_33, %c0_34] : memref<288x128xf32, #tpu.memory_space<vmem>>, vector<1x128xf32>
    tpu.vector_store %arg10[%c7_33, %c0_34], %0 {strides = array<i32>} : memref<288x128xf32, #tpu.memory_space<vmem>>, vector<1x128xf32>,
    %c8_35 = arith.constant 8 : index
    %c0_36 = arith.constant 0 : index
    %40 = vector.load %arg10[%c8_35, %c0_36] : memref<288x128xf32, #tpu.memory_space<vmem>>, vector<128x128xf32>
    tpu.vector_store %arg10[%c8_35, %c0_36], %38 {strides = array<i32>} : memref<288x128xf32, #tpu.memory_space<vmem>>, vector<128x128xf32>,
    %c136 = arith.constant 136 : index
    %c0_37 = arith.constant 0 : index
    %41 = vector.load %arg10[%c136, %c0_37] : memref<288x128xf32, #tpu.memory_space<vmem>>, vector<1x128xf32>
    tpu.vector_store %arg10[%c136, %c0_37], %0 {strides = array<i32>} : memref<288x128xf32, #tpu.memory_space<vmem>>, vector<1x128xf32>,
    %42 = vector.extract_strided_slice %37 {offsets = [128, 0], sizes = [128, 128], strides = [1, 1]} : vector<256x128xf32> to vector<128x128xf32>
    %c151 = arith.constant 151 : index
    %c0_38 = arith.constant 0 : index
    %43 = vector.load %arg10[%c151, %c0_38] : memref<288x128xf32, #tpu.memory_space<vmem>>, vector<1x128xf32>
    tpu.vector_store %arg10[%c151, %c0_38], %0 {strides = array<i32>} : memref<288x128xf32, #tpu.memory_space<vmem>>, vector<1x128xf32>,
    %c152 = arith.constant 152 : index
    %c0_39 = arith.constant 0 : index
    %44 = vector.load %arg10[%c152, %c0_39] : memref<288x128xf32, #tpu.memory_space<vmem>>, vector<128x128xf32>
    tpu.vector_store %arg10[%c152, %c0_39], %42 {strides = array<i32>} : memref<288x128xf32, #tpu.memory_space<vmem>>, vector<128x128xf32>,
    %c280_40 = arith.constant 280 : index
    %c0_41 = arith.constant 0 : index
    %45 = vector.load %arg10[%c280_40, %c0_41] : memref<288x128xf32, #tpu.memory_space<vmem>>, vector<1x128xf32>
    tpu.vector_store %arg10[%c280_40, %c0_41], %0 {strides = array<i32>} : memref<288x128xf32, #tpu.memory_space<vmem>>, vector<1x128xf32>,
    %c7_42 = arith.constant 7 : index
    %c0_43 = arith.constant 0 : index
    %46 = tpu.strided_load %arg10[%c7_42, %c0_43] {strides = array<i32: 2, 1>} : memref<288x128xf32, #tpu.memory_space<vmem>>, vector<64x128xf32>
    %c8_44 = arith.constant 8 : index
    %c0_45 = arith.constant 0 : index
    %47 = tpu.strided_load %arg10[%c8_44, %c0_45] {strides = array<i32: 2, 1>} : memref<288x128xf32, #tpu.memory_space<vmem>>, vector<64x128xf32>
    %c9_46 = arith.constant 9 : index
    %c0_47 = arith.constant 0 : index
    %48 = tpu.strided_load %arg10[%c9_46, %c0_47] {strides = array<i32: 2, 1>} : memref<288x128xf32, #tpu.memory_space<vmem>>, vector<64x128xf32>
    %c10_48 = arith.constant 10 : index
    %c0_49 = arith.constant 0 : index
    %49 = tpu.strided_load %arg10[%c10_48, %c0_49] {strides = array<i32: 2, 1>} : memref<288x128xf32, #tpu.memory_space<vmem>>, vector<64x128xf32>
    %50 = tpu.concatenate %46, %47, %48, %49 in 1 : vector<64x128xf32>, vector<64x128xf32>, vector<64x128xf32>, vector<64x128xf32> -> vector<64x512xf32>
    %c151_50 = arith.constant 151 : index
    %c0_51 = arith.constant 0 : index
    %51 = tpu.strided_load %arg10[%c151_50, %c0_51] {strides = array<i32: 2, 1>} : memref<288x128xf32, #tpu.memory_space<vmem>>, vector<64x128xf32>
    %c152_52 = arith.constant 152 : index
    %c0_53 = arith.constant 0 : index
    %52 = tpu.strided_load %arg10[%c152_52, %c0_53] {strides = array<i32: 2, 1>} : memref<288x128xf32, #tpu.memory_space<vmem>>, vector<64x128xf32>
    %c153 = arith.constant 153 : index
    %c0_54 = arith.constant 0 : index
    %53 = tpu.strided_load %arg10[%c153, %c0_54] {strides = array<i32: 2, 1>} : memref<288x128xf32, #tpu.memory_space<vmem>>, vector<64x128xf32>
    %c154 = arith.constant 154 : index
    %c0_55 = arith.constant 0 : index
    %54 = tpu.strided_load %arg10[%c154, %c0_55] {strides = array<i32: 2, 1>} : memref<288x128xf32, #tpu.memory_space<vmem>>, vector<64x128xf32>
    %55 = tpu.concatenate %51, %52, %53, %54 in 1 : vector<64x128xf32>, vector<64x128xf32>, vector<64x128xf32>, vector<64x128xf32> -> vector<64x512xf32>
    %56 = tpu.concatenate %50, %55 in 0 : vector<64x512xf32>, vector<64x512xf32> -> vector<128x512xf32>
    %57 = arith.truncf %56 : vector<128x512xf32> to vector<128x512xbf16>
    %c1 = arith.constant 1 : index
    %c0_56 = arith.constant 0 : index
    %c0_57 = arith.constant 0 : index
    %58 = vector.load %arg4[%c1, %c0_56, %c0_57] : memref<5x512x128xbf16, #tpu.memory_space<vmem>>, vector<1x512x128xbf16>
    %59 = vector.shape_cast %58 : vector<1x512x128xbf16> to vector<512x128xbf16>
    %cst_58 = arith.constant dense<0.000000e+00> : vector<128x128xf32>
    %60 = tpu.matmul %57, %59, %cst_58 {dimension_numbers = #tpu.dot_dimension_numbers<[1], [0], [0], [1], [0, 0, 1, 1], [], []>} : vector<128x512xbf16>, vector<512x128xbf16>, vector<128x128xf32> -> vector<128x128xf32>
    %c1_59 = arith.constant 1 : index
    %c0_60 = arith.constant 0 : index
    %c0_61 = arith.constant 0 : index
    %61 = vector.load %arg5[%c1_59, %c0_60, %c0_61] : memref<5x1x128xf32, #tpu.memory_space<vmem>>, vector<1x1x128xf32>
    %62 = vector.shape_cast %61 : vector<1x1x128xf32> to vector<1x128xf32>
    %63 = vector.broadcast %62 : vector<1x128xf32> to vector<128x128xf32>
    %64 = arith.addf %60, %63 : vector<128x128xf32>
    %cst_62 = arith.constant 0.000000e+00 : f32
    %65 = vector.broadcast %cst_62 : f32 to vector<128x128xf32>
    %66 = arith.maximumf %64, %65 : vector<128x128xf32>
    %67 = vector.extract_strided_slice %66 {offsets = [0, 0], sizes = [64, 128], strides = [1, 1]} : vector<128x128xf32> to vector<64x128xf32>
    %c7_63 = arith.constant 7 : index
    %c0_64 = arith.constant 0 : index
    %68 = vector.load %arg9[%c7_63, %c0_64] : memref<544x128xf32, #tpu.memory_space<vmem>>, vector<1x128xf32>
    tpu.vector_store %arg9[%c7_63, %c0_64], %0 {strides = array<i32>} : memref<544x128xf32, #tpu.memory_space<vmem>>, vector<1x128xf32>,
    %c8_65 = arith.constant 8 : index
    %c0_66 = arith.constant 0 : index
    %69 = vector.load %arg9[%c8_65, %c0_66] : memref<544x128xf32, #tpu.memory_space<vmem>>, vector<64x128xf32>
    tpu.vector_store %arg9[%c8_65, %c0_66], %67 {strides = array<i32>} : memref<544x128xf32, #tpu.memory_space<vmem>>, vector<64x128xf32>,
    %c72 = arith.constant 72 : index
    %c0_67 = arith.constant 0 : index
    %70 = vector.load %arg9[%c72, %c0_67] : memref<544x128xf32, #tpu.memory_space<vmem>>, vector<1x128xf32>
    tpu.vector_store %arg9[%c72, %c0_67], %0 {strides = array<i32>} : memref<544x128xf32, #tpu.memory_space<vmem>>, vector<1x128xf32>,
    %71 = vector.extract_strided_slice %66 {offsets = [64, 0], sizes = [64, 128], strides = [1, 1]} : vector<128x128xf32> to vector<64x128xf32>
    %c279_68 = arith.constant 279 : index
    %c0_69 = arith.constant 0 : index
    %72 = vector.load %arg9[%c279_68, %c0_69] : memref<544x128xf32, #tpu.memory_space<vmem>>, vector<1x128xf32>
    tpu.vector_store %arg9[%c279_68, %c0_69], %0 {strides = array<i32>} : memref<544x128xf32, #tpu.memory_space<vmem>>, vector<1x128xf32>,
    %c280_70 = arith.constant 280 : index
    %c0_71 = arith.constant 0 : index
    %73 = vector.load %arg9[%c280_70, %c0_71] : memref<544x128xf32, #tpu.memory_space<vmem>>, vector<64x128xf32>
    tpu.vector_store %arg9[%c280_70, %c0_71], %71 {strides = array<i32>} : memref<544x128xf32, #tpu.memory_space<vmem>>, vector<64x128xf32>,
    %c344 = arith.constant 344 : index
    %c0_72 = arith.constant 0 : index
    %74 = vector.load %arg9[%c344, %c0_72] : memref<544x128xf32, #tpu.memory_space<vmem>>, vector<1x128xf32>
    tpu.vector_store %arg9[%c344, %c0_72], %0 {strides = array<i32>} : memref<544x128xf32, #tpu.memory_space<vmem>>, vector<1x128xf32>,
    %c7_73 = arith.constant 7 : index
    %c0_74 = arith.constant 0 : index
    %75 = tpu.strided_load %arg9[%c7_73, %c0_74] {strides = array<i32: 2, 1>} : memref<544x128xf32, #tpu.memory_space<vmem>>, vector<32x128xf32>
    %c8_75 = arith.constant 8 : index
    %c0_76 = arith.constant 0 : index
    %76 = tpu.strided_load %arg9[%c8_75, %c0_76] {strides = array<i32: 2, 1>} : memref<544x128xf32, #tpu.memory_space<vmem>>, vector<32x128xf32>
    %c9_77 = arith.constant 9 : index
    %c0_78 = arith.constant 0 : index
    %77 = tpu.strided_load %arg9[%c9_77, %c0_78] {strides = array<i32: 2, 1>} : memref<544x128xf32, #tpu.memory_space<vmem>>, vector<32x128xf32>
    %c10_79 = arith.constant 10 : index
    %c0_80 = arith.constant 0 : index
    %78 = tpu.strided_load %arg9[%c10_79, %c0_80] {strides = array<i32: 2, 1>} : memref<544x128xf32, #tpu.memory_space<vmem>>, vector<32x128xf32>
    %79 = tpu.concatenate %75, %76, %77, %78 in 1 : vector<32x128xf32>, vector<32x128xf32>, vector<32x128xf32>, vector<32x128xf32> -> vector<32x512xf32>
    %c279_81 = arith.constant 279 : index
    %c0_82 = arith.constant 0 : index
    %80 = tpu.strided_load %arg9[%c279_81, %c0_82] {strides = array<i32: 2, 1>} : memref<544x128xf32, #tpu.memory_space<vmem>>, vector<32x128xf32>
    %c280_83 = arith.constant 280 : index
    %c0_84 = arith.constant 0 : index
    %81 = tpu.strided_load %arg9[%c280_83, %c0_84] {strides = array<i32: 2, 1>} : memref<544x128xf32, #tpu.memory_space<vmem>>, vector<32x128xf32>
    %c281_85 = arith.constant 281 : index
    %c0_86 = arith.constant 0 : index
    %82 = tpu.strided_load %arg9[%c281_85, %c0_86] {strides = array<i32: 2, 1>} : memref<544x128xf32, #tpu.memory_space<vmem>>, vector<32x128xf32>
    %c282_87 = arith.constant 282 : index
    %c0_88 = arith.constant 0 : index
    %83 = tpu.strided_load %arg9[%c282_87, %c0_88] {strides = array<i32: 2, 1>} : memref<544x128xf32, #tpu.memory_space<vmem>>, vector<32x128xf32>
    %84 = tpu.concatenate %80, %81, %82, %83 in 1 : vector<32x128xf32>, vector<32x128xf32>, vector<32x128xf32>, vector<32x128xf32> -> vector<32x512xf32>
    %85 = tpu.concatenate %79, %84 in 0 : vector<32x512xf32>, vector<32x512xf32> -> vector<64x512xf32>
    %86 = arith.truncf %85 : vector<64x512xf32> to vector<64x512xbf16>
    %c2 = arith.constant 2 : index
    %c0_89 = arith.constant 0 : index
    %c0_90 = arith.constant 0 : index
    %87 = vector.load %arg4[%c2, %c0_89, %c0_90] : memref<5x512x128xbf16, #tpu.memory_space<vmem>>, vector<1x512x128xbf16>
    %88 = vector.shape_cast %87 : vector<1x512x128xbf16> to vector<512x128xbf16>
    %cst_91 = arith.constant dense<0.000000e+00> : vector<64x128xf32>
    %89 = tpu.matmul %86, %88, %cst_91 {dimension_numbers = #tpu.dot_dimension_numbers<[1], [0], [0], [1], [0, 0, 1, 1], [], []>} : vector<64x512xbf16>, vector<512x128xbf16>, vector<64x128xf32> -> vector<64x128xf32>
    %c2_92 = arith.constant 2 : index
    %c0_93 = arith.constant 0 : index
    %c0_94 = arith.constant 0 : index
    %90 = vector.load %arg5[%c2_92, %c0_93, %c0_94] : memref<5x1x128xf32, #tpu.memory_space<vmem>>, vector<1x1x128xf32>
    %91 = vector.shape_cast %90 : vector<1x1x128xf32> to vector<1x128xf32>
    %92 = vector.broadcast %91 : vector<1x128xf32> to vector<64x128xf32>
    %93 = arith.addf %89, %92 : vector<64x128xf32>
    %cst_95 = arith.constant 0.000000e+00 : f32
    %94 = vector.broadcast %cst_95 : f32 to vector<64x128xf32>
    %95 = arith.maximumf %93, %94 : vector<64x128xf32>
    %96 = vector.extract_strided_slice %95 {offsets = [0, 0], sizes = [32, 128], strides = [1, 1]} : vector<64x128xf32> to vector<32x128xf32>
    %c7_96 = arith.constant 7 : index
    %c0_97 = arith.constant 0 : index
    %97 = vector.load %arg10[%c7_96, %c0_97] : memref<288x128xf32, #tpu.memory_space<vmem>>, vector<1x128xf32>
    tpu.vector_store %arg10[%c7_96, %c0_97], %0 {strides = array<i32>} : memref<288x128xf32, #tpu.memory_space<vmem>>, vector<1x128xf32>,
    %c8_98 = arith.constant 8 : index
    %c0_99 = arith.constant 0 : index
    %98 = vector.load %arg10[%c8_98, %c0_99] : memref<288x128xf32, #tpu.memory_space<vmem>>, vector<32x128xf32>
    tpu.vector_store %arg10[%c8_98, %c0_99], %96 {strides = array<i32>} : memref<288x128xf32, #tpu.memory_space<vmem>>, vector<32x128xf32>,
    %c40 = arith.constant 40 : index
    %c0_100 = arith.constant 0 : index
    %99 = vector.load %arg10[%c40, %c0_100] : memref<288x128xf32, #tpu.memory_space<vmem>>, vector<1x128xf32>
    tpu.vector_store %arg10[%c40, %c0_100], %0 {strides = array<i32>} : memref<288x128xf32, #tpu.memory_space<vmem>>, vector<1x128xf32>,
    %100 = vector.extract_strided_slice %95 {offsets = [32, 0], sizes = [32, 128], strides = [1, 1]} : vector<64x128xf32> to vector<32x128xf32>
    %c151_101 = arith.constant 151 : index
    %c0_102 = arith.constant 0 : index
    %101 = vector.load %arg10[%c151_101, %c0_102] : memref<288x128xf32, #tpu.memory_space<vmem>>, vector<1x128xf32>
    tpu.vector_store %arg10[%c151_101, %c0_102], %0 {strides = array<i32>} : memref<288x128xf32, #tpu.memory_space<vmem>>, vector<1x128xf32>,
    %c152_103 = arith.constant 152 : index
    %c0_104 = arith.constant 0 : index
    %102 = vector.load %arg10[%c152_103, %c0_104] : memref<288x128xf32, #tpu.memory_space<vmem>>, vector<32x128xf32>
    tpu.vector_store %arg10[%c152_103, %c0_104], %100 {strides = array<i32>} : memref<288x128xf32, #tpu.memory_space<vmem>>, vector<32x128xf32>,
    %c184 = arith.constant 184 : index
    %c0_105 = arith.constant 0 : index
    %103 = vector.load %arg10[%c184, %c0_105] : memref<288x128xf32, #tpu.memory_space<vmem>>, vector<1x128xf32>
    tpu.vector_store %arg10[%c184, %c0_105], %0 {strides = array<i32>} : memref<288x128xf32, #tpu.memory_space<vmem>>, vector<1x128xf32>,
    %c7_106 = arith.constant 7 : index
    %c0_107 = arith.constant 0 : index
    %104 = tpu.strided_load %arg10[%c7_106, %c0_107] {strides = array<i32: 2, 1>} : memref<288x128xf32, #tpu.memory_space<vmem>>, vector<16x128xf32>
    %c8_108 = arith.constant 8 : index
    %c0_109 = arith.constant 0 : index
    %105 = tpu.strided_load %arg10[%c8_108, %c0_109] {strides = array<i32: 2, 1>} : memref<288x128xf32, #tpu.memory_space<vmem>>, vector<16x128xf32>
    %c9_110 = arith.constant 9 : index
    %c0_111 = arith.constant 0 : index
    %106 = tpu.strided_load %arg10[%c9_110, %c0_111] {strides = array<i32: 2, 1>} : memref<288x128xf32, #tpu.memory_space<vmem>>, vector<16x128xf32>
    %c10_112 = arith.constant 10 : index
    %c0_113 = arith.constant 0 : index
    %107 = tpu.strided_load %arg10[%c10_112, %c0_113] {strides = array<i32: 2, 1>} : memref<288x128xf32, #tpu.memory_space<vmem>>, vector<16x128xf32>
    %108 = tpu.concatenate %104, %105, %106, %107 in 1 : vector<16x128xf32>, vector<16x128xf32>, vector<16x128xf32>, vector<16x128xf32> -> vector<16x512xf32>
    %c151_114 = arith.constant 151 : index
    %c0_115 = arith.constant 0 : index
    %109 = tpu.strided_load %arg10[%c151_114, %c0_115] {strides = array<i32: 2, 1>} : memref<288x128xf32, #tpu.memory_space<vmem>>, vector<16x128xf32>
    %c152_116 = arith.constant 152 : index
    %c0_117 = arith.constant 0 : index
    %110 = tpu.strided_load %arg10[%c152_116, %c0_117] {strides = array<i32: 2, 1>} : memref<288x128xf32, #tpu.memory_space<vmem>>, vector<16x128xf32>
    %c153_118 = arith.constant 153 : index
    %c0_119 = arith.constant 0 : index
    %111 = tpu.strided_load %arg10[%c153_118, %c0_119] {strides = array<i32: 2, 1>} : memref<288x128xf32, #tpu.memory_space<vmem>>, vector<16x128xf32>
    %c154_120 = arith.constant 154 : index
    %c0_121 = arith.constant 0 : index
    %112 = tpu.strided_load %arg10[%c154_120, %c0_121] {strides = array<i32: 2, 1>} : memref<288x128xf32, #tpu.memory_space<vmem>>, vector<16x128xf32>
    %113 = tpu.concatenate %109, %110, %111, %112 in 1 : vector<16x128xf32>, vector<16x128xf32>, vector<16x128xf32>, vector<16x128xf32> -> vector<16x512xf32>
    %114 = tpu.concatenate %108, %113 in 0 : vector<16x512xf32>, vector<16x512xf32> -> vector<32x512xf32>
    %115 = arith.truncf %114 : vector<32x512xf32> to vector<32x512xbf16>
    %c3 = arith.constant 3 : index
    %c0_122 = arith.constant 0 : index
    %c0_123 = arith.constant 0 : index
    %116 = vector.load %arg4[%c3, %c0_122, %c0_123] : memref<5x512x128xbf16, #tpu.memory_space<vmem>>, vector<1x512x128xbf16>
    %117 = vector.shape_cast %116 : vector<1x512x128xbf16> to vector<512x128xbf16>
    %cst_124 = arith.constant dense<0.000000e+00> : vector<32x128xf32>
    %118 = tpu.matmul %115, %117, %cst_124 {dimension_numbers = #tpu.dot_dimension_numbers<[1], [0], [0], [1], [0, 0, 1, 1], [], []>} : vector<32x512xbf16>, vector<512x128xbf16>, vector<32x128xf32> -> vector<32x128xf32>
    %c3_125 = arith.constant 3 : index
    %c0_126 = arith.constant 0 : index
    %c0_127 = arith.constant 0 : index
    %119 = vector.load %arg5[%c3_125, %c0_126, %c0_127] : memref<5x1x128xf32, #tpu.memory_space<vmem>>, vector<1x1x128xf32>
    %120 = vector.shape_cast %119 : vector<1x1x128xf32> to vector<1x128xf32>
    %121 = vector.broadcast %120 : vector<1x128xf32> to vector<32x128xf32>
    %122 = arith.addf %118, %121 : vector<32x128xf32>
    %cst_128 = arith.constant 0.000000e+00 : f32
    %123 = vector.broadcast %cst_128 : f32 to vector<32x128xf32>
    %124 = arith.maximumf %122, %123 : vector<32x128xf32>
    %125 = vector.extract_strided_slice %124 {offsets = [0, 0], sizes = [16, 128], strides = [1, 1]} : vector<32x128xf32> to vector<16x128xf32>
    %c7_129 = arith.constant 7 : index
    %c0_130 = arith.constant 0 : index
    %126 = vector.load %arg9[%c7_129, %c0_130] : memref<544x128xf32, #tpu.memory_space<vmem>>, vector<1x128xf32>
    tpu.vector_store %arg9[%c7_129, %c0_130], %0 {strides = array<i32>} : memref<544x128xf32, #tpu.memory_space<vmem>>, vector<1x128xf32>,
    %c8_131 = arith.constant 8 : index
    %c0_132 = arith.constant 0 : index
    %127 = vector.load %arg9[%c8_131, %c0_132] : memref<544x128xf32, #tpu.memory_space<vmem>>, vector<16x128xf32>
    tpu.vector_store %arg9[%c8_131, %c0_132], %125 {strides = array<i32>} : memref<544x128xf32, #tpu.memory_space<vmem>>, vector<16x128xf32>,
    %c24 = arith.constant 24 : index
    %c0_133 = arith.constant 0 : index
    %128 = vector.load %arg9[%c24, %c0_133] : memref<544x128xf32, #tpu.memory_space<vmem>>, vector<1x128xf32>
    tpu.vector_store %arg9[%c24, %c0_133], %0 {strides = array<i32>} : memref<544x128xf32, #tpu.memory_space<vmem>>, vector<1x128xf32>,
    %129 = vector.extract_strided_slice %124 {offsets = [16, 0], sizes = [16, 128], strides = [1, 1]} : vector<32x128xf32> to vector<16x128xf32>
    %c279_134 = arith.constant 279 : index
    %c0_135 = arith.constant 0 : index
    %130 = vector.load %arg9[%c279_134, %c0_135] : memref<544x128xf32, #tpu.memory_space<vmem>>, vector<1x128xf32>
    tpu.vector_store %arg9[%c279_134, %c0_135], %0 {strides = array<i32>} : memref<544x128xf32, #tpu.memory_space<vmem>>, vector<1x128xf32>,
    %c280_136 = arith.constant 280 : index
    %c0_137 = arith.constant 0 : index
    %131 = vector.load %arg9[%c280_136, %c0_137] : memref<544x128xf32, #tpu.memory_space<vmem>>, vector<16x128xf32>
    tpu.vector_store %arg9[%c280_136, %c0_137], %129 {strides = array<i32>} : memref<544x128xf32, #tpu.memory_space<vmem>>, vector<16x128xf32>,
    %c296 = arith.constant 296 : index
    %c0_138 = arith.constant 0 : index
    %132 = vector.load %arg9[%c296, %c0_138] : memref<544x128xf32, #tpu.memory_space<vmem>>, vector<1x128xf32>
    tpu.vector_store %arg9[%c296, %c0_138], %0 {strides = array<i32>} : memref<544x128xf32, #tpu.memory_space<vmem>>, vector<1x128xf32>,
    %c7_139 = arith.constant 7 : index
    %c0_140 = arith.constant 0 : index
    %133 = tpu.strided_load %arg9[%c7_139, %c0_140] {strides = array<i32: 2, 1>} : memref<544x128xf32, #tpu.memory_space<vmem>>, vector<8x128xf32>
    %c8_141 = arith.constant 8 : index
    %c0_142 = arith.constant 0 : index
    %134 = tpu.strided_load %arg9[%c8_141, %c0_142] {strides = array<i32: 2, 1>} : memref<544x128xf32, #tpu.memory_space<vmem>>, vector<8x128xf32>
    %c9_143 = arith.constant 9 : index
    %c0_144 = arith.constant 0 : index
    %135 = tpu.strided_load %arg9[%c9_143, %c0_144] {strides = array<i32: 2, 1>} : memref<544x128xf32, #tpu.memory_space<vmem>>, vector<8x128xf32>
    %c10_145 = arith.constant 10 : index
    %c0_146 = arith.constant 0 : index
    %136 = tpu.strided_load %arg9[%c10_145, %c0_146] {strides = array<i32: 2, 1>} : memref<544x128xf32, #tpu.memory_space<vmem>>, vector<8x128xf32>
    %137 = tpu.concatenate %133, %134, %135, %136 in 1 : vector<8x128xf32>, vector<8x128xf32>, vector<8x128xf32>, vector<8x128xf32> -> vector<8x512xf32>
    %c279_147 = arith.constant 279 : index
    %c0_148 = arith.constant 0 : index
    %138 = tpu.strided_load %arg9[%c279_147, %c0_148] {strides = array<i32: 2, 1>} : memref<544x128xf32, #tpu.memory_space<vmem>>, vector<8x128xf32>
    %c280_149 = arith.constant 280 : index
    %c0_150 = arith.constant 0 : index
    %139 = tpu.strided_load %arg9[%c280_149, %c0_150] {strides = array<i32: 2, 1>} : memref<544x128xf32, #tpu.memory_space<vmem>>, vector<8x128xf32>
    %c281_151 = arith.constant 281 : index
    %c0_152 = arith.constant 0 : index
    %140 = tpu.strided_load %arg9[%c281_151, %c0_152] {strides = array<i32: 2, 1>} : memref<544x128xf32, #tpu.memory_space<vmem>>, vector<8x128xf32>
    %c282_153 = arith.constant 282 : index
    %c0_154 = arith.constant 0 : index
    %141 = tpu.strided_load %arg9[%c282_153, %c0_154] {strides = array<i32: 2, 1>} : memref<544x128xf32, #tpu.memory_space<vmem>>, vector<8x128xf32>
    %142 = tpu.concatenate %138, %139, %140, %141 in 1 : vector<8x128xf32>, vector<8x128xf32>, vector<8x128xf32>, vector<8x128xf32> -> vector<8x512xf32>
    %143 = tpu.concatenate %137, %142 in 0 : vector<8x512xf32>, vector<8x512xf32> -> vector<16x512xf32>
    %144 = arith.truncf %143 : vector<16x512xf32> to vector<16x512xbf16>
    %c4 = arith.constant 4 : index
    %c0_155 = arith.constant 0 : index
    %c0_156 = arith.constant 0 : index
    %145 = vector.load %arg4[%c4, %c0_155, %c0_156] : memref<5x512x128xbf16, #tpu.memory_space<vmem>>, vector<1x512x128xbf16>
    %146 = vector.shape_cast %145 : vector<1x512x128xbf16> to vector<512x128xbf16>
    %cst_157 = arith.constant dense<0.000000e+00> : vector<16x128xf32>
    %147 = tpu.matmul %144, %146, %cst_157 {dimension_numbers = #tpu.dot_dimension_numbers<[1], [0], [0], [1], [0, 0, 1, 1], [], []>} : vector<16x512xbf16>, vector<512x128xbf16>, vector<16x128xf32> -> vector<16x128xf32>
    %c4_158 = arith.constant 4 : index
    %c0_159 = arith.constant 0 : index
    %c0_160 = arith.constant 0 : index
    %148 = vector.load %arg5[%c4_158, %c0_159, %c0_160] : memref<5x1x128xf32, #tpu.memory_space<vmem>>, vector<1x1x128xf32>
    %149 = vector.shape_cast %148 : vector<1x1x128xf32> to vector<1x128xf32>
    %150 = vector.broadcast %149 : vector<1x128xf32> to vector<16x128xf32>
    %151 = arith.addf %147, %150 : vector<16x128xf32>
    %cst_161 = arith.constant 0.000000e+00 : f32
    %152 = vector.broadcast %cst_161 : f32 to vector<16x128xf32>
    %153 = arith.maximumf %151, %152 : vector<16x128xf32>
    %cst_162 = arith.constant 0.000000e+00 : f32
    %154 = vector.broadcast %cst_162 : f32 to vector<16x128xf32>
    %155 = arith.maximumf %153, %154 : vector<16x128xf32>
    %156 = vector.extract_strided_slice %155 {offsets = [0, 0], sizes = [8, 128], strides = [1, 1]} : vector<16x128xf32> to vector<8x128xf32>
    %c7_163 = arith.constant 7 : index
    %c0_164 = arith.constant 0 : index
    %157 = vector.load %arg10[%c7_163, %c0_164] : memref<288x128xf32, #tpu.memory_space<vmem>>, vector<1x128xf32>
    tpu.vector_store %arg10[%c7_163, %c0_164], %0 {strides = array<i32>} : memref<288x128xf32, #tpu.memory_space<vmem>>, vector<1x128xf32>,
    %c8_165 = arith.constant 8 : index
    %c0_166 = arith.constant 0 : index
    %158 = vector.load %arg10[%c8_165, %c0_166] : memref<288x128xf32, #tpu.memory_space<vmem>>, vector<8x128xf32>
    tpu.vector_store %arg10[%c8_165, %c0_166], %156 {strides = array<i32>} : memref<288x128xf32, #tpu.memory_space<vmem>>, vector<8x128xf32>,
    %c16 = arith.constant 16 : index
    %c0_167 = arith.constant 0 : index
    %159 = vector.load %arg10[%c16, %c0_167] : memref<288x128xf32, #tpu.memory_space<vmem>>, vector<1x128xf32>
    tpu.vector_store %arg10[%c16, %c0_167], %0 {strides = array<i32>} : memref<288x128xf32, #tpu.memory_space<vmem>>, vector<1x128xf32>,
    %c7_168 = arith.constant 7 : index
    %c0_169 = arith.constant 0 : index
    %160 = vector.load %arg10[%c7_168, %c0_169] : memref<288x128xf32, #tpu.memory_space<vmem>>, vector<8x128xf32>
    %c8_170 = arith.constant 8 : index
    %c0_171 = arith.constant 0 : index
    %161 = vector.load %arg10[%c8_170, %c0_171] : memref<288x128xf32, #tpu.memory_space<vmem>>, vector<8x128xf32>
    %c9_172 = arith.constant 9 : index
    %c0_173 = arith.constant 0 : index
    %162 = vector.load %arg10[%c9_172, %c0_173] : memref<288x128xf32, #tpu.memory_space<vmem>>, vector<8x128xf32>
    %163 = tpu.concatenate %160, %161, %162 in 1 : vector<8x128xf32>, vector<8x128xf32>, vector<8x128xf32> -> vector<8x384xf32>
    %164 = vector.extract_strided_slice %155 {offsets = [8, 0], sizes = [8, 128], strides = [1, 1]} : vector<16x128xf32> to vector<8x128xf32>
    %c151_174 = arith.constant 151 : index
    %c0_175 = arith.constant 0 : index
    %165 = vector.load %arg10[%c151_174, %c0_175] : memref<288x128xf32, #tpu.memory_space<vmem>>, vector<1x128xf32>
    tpu.vector_store %arg10[%c151_174, %c0_175], %0 {strides = array<i32>} : memref<288x128xf32, #tpu.memory_space<vmem>>, vector<1x128xf32>,
    %c152_176 = arith.constant 152 : index
    %c0_177 = arith.constant 0 : index
    %166 = vector.load %arg10[%c152_176, %c0_177] : memref<288x128xf32, #tpu.memory_space<vmem>>, vector<8x128xf32>
    tpu.vector_store %arg10[%c152_176, %c0_177], %164 {strides = array<i32>} : memref<288x128xf32, #tpu.memory_space<vmem>>, vector<8x128xf32>,
    %c160 = arith.constant 160 : index
    %c0_178 = arith.constant 0 : index
    %167 = vector.load %arg10[%c160, %c0_178] : memref<288x128xf32, #tpu.memory_space<vmem>>, vector<1x128xf32>
    tpu.vector_store %arg10[%c160, %c0_178], %0 {strides = array<i32>} : memref<288x128xf32, #tpu.memory_space<vmem>>, vector<1x128xf32>,
    %c151_179 = arith.constant 151 : index
    %c0_180 = arith.constant 0 : index
    %168 = vector.load %arg10[%c151_179, %c0_180] : memref<288x128xf32, #tpu.memory_space<vmem>>, vector<8x128xf32>
    %c152_181 = arith.constant 152 : index
    %c0_182 = arith.constant 0 : index
    %169 = vector.load %arg10[%c152_181, %c0_182] : memref<288x128xf32, #tpu.memory_space<vmem>>, vector<8x128xf32>
    %c153_183 = arith.constant 153 : index
    %c0_184 = arith.constant 0 : index
    %170 = vector.load %arg10[%c153_183, %c0_184] : memref<288x128xf32, #tpu.memory_space<vmem>>, vector<8x128xf32>
    %171 = tpu.concatenate %168, %169, %170 in 1 : vector<8x128xf32>, vector<8x128xf32>, vector<8x128xf32> -> vector<8x384xf32>
    %172 = tpu.concatenate %163, %171 in 0 : vector<8x384xf32>, vector<8x384xf32> -> vector<16x384xf32>
    %173 = arith.truncf %172 : vector<16x384xf32> to vector<16x384xbf16>
    %c0_185 = arith.constant 0 : index
    %c0_186 = arith.constant 0 : index
    %174 = vector.load %arg6[%c0_185, %c0_186] : memref<384x128xbf16, #tpu.memory_space<vmem>>, vector<384x128xbf16>
    %cst_187 = arith.constant dense<0.000000e+00> : vector<16x128xf32>
    %175 = tpu.matmul %173, %174, %cst_187 {dimension_numbers = #tpu.dot_dimension_numbers<[1], [0], [0], [1], [0, 0, 1, 1], [], []>} : vector<16x384xbf16>, vector<384x128xbf16>, vector<16x128xf32> -> vector<16x128xf32>
    %cst_188 = arith.constant 0.000000e+00 : f32
    %176 = vector.broadcast %cst_188 : f32 to vector<16x128xf32>
    %177 = arith.maximumf %175, %176 : vector<16x128xf32>
    %178 = arith.truncf %177 : vector<16x128xf32> to vector<16x128xbf16>
    %c0_189 = arith.constant 0 : index
    %c0_190 = arith.constant 0 : index
    %179 = vector.load %arg7[%c0_189, %c0_190] : memref<128x128xbf16, #tpu.memory_space<vmem>>, vector<128x128xbf16>
    %cst_191 = arith.constant dense<0.000000e+00> : vector<16x128xf32>
    %180 = tpu.matmul %178, %179, %cst_191 {dimension_numbers = #tpu.dot_dimension_numbers<[1], [0], [0], [1], [0, 0, 1, 1], [], []>} : vector<16x128xbf16>, vector<128x128xbf16>, vector<16x128xf32> -> vector<16x128xf32>
    %181 = arith.addf %153, %180 : vector<16x128xf32>
    %cst_192 = arith.constant 0.000000e+00 : f32
    %182 = vector.broadcast %cst_192 : f32 to vector<16x128xf32>
    %183 = arith.maximumf %181, %182 : vector<16x128xf32>
    %184 = vector.extract_strided_slice %183 {offsets = [0, 0], sizes = [8, 128], strides = [1, 1]} : vector<16x128xf32> to vector<8x128xf32>
    %c7_193 = arith.constant 7 : index
    %c0_194 = arith.constant 0 : index
    %185 = vector.load %arg10[%c7_193, %c0_194] : memref<288x128xf32, #tpu.memory_space<vmem>>, vector<1x128xf32>
    tpu.vector_store %arg10[%c7_193, %c0_194], %0 {strides = array<i32>} : memref<288x128xf32, #tpu.memory_space<vmem>>, vector<1x128xf32>,
    %c8_195 = arith.constant 8 : index
    %c0_196 = arith.constant 0 : index
    %186 = vector.load %arg10[%c8_195, %c0_196] : memref<288x128xf32, #tpu.memory_space<vmem>>, vector<8x128xf32>
    tpu.vector_store %arg10[%c8_195, %c0_196], %184 {strides = array<i32>} : memref<288x128xf32, #tpu.memory_space<vmem>>, vector<8x128xf32>,
    %c16_197 = arith.constant 16 : index
    %c0_198 = arith.constant 0 : index
    %187 = vector.load %arg10[%c16_197, %c0_198] : memref<288x128xf32, #tpu.memory_space<vmem>>, vector<1x128xf32>
    tpu.vector_store %arg10[%c16_197, %c0_198], %0 {strides = array<i32>} : memref<288x128xf32, #tpu.memory_space<vmem>>, vector<1x128xf32>,
    %c7_199 = arith.constant 7 : index
    %c0_200 = arith.constant 0 : index
    %188 = vector.load %arg10[%c7_199, %c0_200] : memref<288x128xf32, #tpu.memory_space<vmem>>, vector<8x128xf32>
    %c8_201 = arith.constant 8 : index
    %c0_202 = arith.constant 0 : index
    %189 = vector.load %arg10[%c8_201, %c0_202] : memref<288x128xf32, #tpu.memory_space<vmem>>, vector<8x128xf32>
    %c9_203 = arith.constant 9 : index
    %c0_204 = arith.constant 0 : index
    %190 = vector.load %arg10[%c9_203, %c0_204] : memref<288x128xf32, #tpu.memory_space<vmem>>, vector<8x128xf32>
    %191 = tpu.concatenate %188, %189, %190 in 1 : vector<8x128xf32>, vector<8x128xf32>, vector<8x128xf32> -> vector<8x384xf32>
    %192 = vector.extract_strided_slice %183 {offsets = [8, 0], sizes = [8, 128], strides = [1, 1]} : vector<16x128xf32> to vector<8x128xf32>
    %c151_205 = arith.constant 151 : index
    %c0_206 = arith.constant 0 : index
    %193 = vector.load %arg10[%c151_205, %c0_206] : memref<288x128xf32, #tpu.memory_space<vmem>>, vector<1x128xf32>
    tpu.vector_store %arg10[%c151_205, %c0_206], %0 {strides = array<i32>} : memref<288x128xf32, #tpu.memory_space<vmem>>, vector<1x128xf32>,
    %c152_207 = arith.constant 152 : index
    %c0_208 = arith.constant 0 : index
    %194 = vector.load %arg10[%c152_207, %c0_208] : memref<288x128xf32, #tpu.memory_space<vmem>>, vector<8x128xf32>
    tpu.vector_store %arg10[%c152_207, %c0_208], %192 {strides = array<i32>} : memref<288x128xf32, #tpu.memory_space<vmem>>, vector<8x128xf32>,
    %c160_209 = arith.constant 160 : index
    %c0_210 = arith.constant 0 : index
    %195 = vector.load %arg10[%c160_209, %c0_210] : memref<288x128xf32, #tpu.memory_space<vmem>>, vector<1x128xf32>
    tpu.vector_store %arg10[%c160_209, %c0_210], %0 {strides = array<i32>} : memref<288x128xf32, #tpu.memory_space<vmem>>, vector<1x128xf32>,
    %c151_211 = arith.constant 151 : index
    %c0_212 = arith.constant 0 : index
    %196 = vector.load %arg10[%c151_211, %c0_212] : memref<288x128xf32, #tpu.memory_space<vmem>>, vector<8x128xf32>
    %c152_213 = arith.constant 152 : index
    %c0_214 = arith.constant 0 : index
    %197 = vector.load %arg10[%c152_213, %c0_214] : memref<288x128xf32, #tpu.memory_space<vmem>>, vector<8x128xf32>
    %c153_215 = arith.constant 153 : index
    %c0_216 = arith.constant 0 : index
    %198 = vector.load %arg10[%c153_215, %c0_216] : memref<288x128xf32, #tpu.memory_space<vmem>>, vector<8x128xf32>
    %199 = tpu.concatenate %196, %197, %198 in 1 : vector<8x128xf32>, vector<8x128xf32>, vector<8x128xf32> -> vector<8x384xf32>
    %200 = tpu.concatenate %191, %199 in 0 : vector<8x384xf32>, vector<8x384xf32> -> vector<16x384xf32>
    %201 = arith.truncf %200 : vector<16x384xf32> to vector<16x384xbf16>
    %c0_217 = arith.constant 0 : index
    %c0_218 = arith.constant 0 : index
    %202 = vector.load %arg6[%c0_217, %c0_218] : memref<384x128xbf16, #tpu.memory_space<vmem>>, vector<384x128xbf16>
    %cst_219 = arith.constant dense<0.000000e+00> : vector<16x128xf32>
    %203 = tpu.matmul %201, %202, %cst_219 {dimension_numbers = #tpu.dot_dimension_numbers<[1], [0], [0], [1], [0, 0, 1, 1], [], []>} : vector<16x384xbf16>, vector<384x128xbf16>, vector<16x128xf32> -> vector<16x128xf32>
    %cst_220 = arith.constant 0.000000e+00 : f32
    %204 = vector.broadcast %cst_220 : f32 to vector<16x128xf32>
    %205 = arith.maximumf %203, %204 : vector<16x128xf32>
    %206 = arith.truncf %205 : vector<16x128xf32> to vector<16x128xbf16>
    %c0_221 = arith.constant 0 : index
    %c0_222 = arith.constant 0 : index
    %207 = vector.load %arg7[%c0_221, %c0_222] : memref<128x128xbf16, #tpu.memory_space<vmem>>, vector<128x128xbf16>
    %cst_223 = arith.constant dense<0.000000e+00> : vector<16x128xf32>
    %208 = tpu.matmul %206, %207, %cst_223 {dimension_numbers = #tpu.dot_dimension_numbers<[1], [0], [0], [1], [0, 0, 1, 1], [], []>} : vector<16x128xbf16>, vector<128x128xbf16>, vector<16x128xf32> -> vector<16x128xf32>
    %209 = arith.addf %181, %208 : vector<16x128xf32>
    %cst_224 = arith.constant 0.000000e+00 : f32
    %210 = vector.broadcast %cst_224 : f32 to vector<16x128xf32>
    %211 = arith.maximumf %209, %210 : vector<16x128xf32>
    %c0_225 = arith.constant 0 : index
    %c0_226 = arith.constant 0 : index
    %212 = vector.load %arg8[%c0_225, %c0_226] : memref<16x128xf32, #tpu.memory_space<vmem>>, vector<16x128xf32>
    tpu.vector_store %arg8[%c0_225, %c0_226], %211 {strides = array<i32>} : memref<16x128xf32, #tpu.memory_space<vmem>>, vector<16x128xf32>,
    return
  }
  func.func @transform_0(%arg0: i32) -> (i32, i32) {
    %c0_i32 = arith.constant 0 : i32
    %c0_i32_0 = arith.constant 0 : i32
    return %arg0, %c0_i32 : i32, i32
  }
  func.func @transform_1(%arg0: i32) -> (i32, i32) {
    %c0_i32 = arith.constant 0 : i32
    %c0_i32_0 = arith.constant 0 : i32
    %c0_i32_1 = arith.constant 0 : i32
    return %c0_i32, %c0_i32_0 : i32, i32
  }
  func.func @transform_2(%arg0: i32) -> (i32, i32) {
    %c0_i32 = arith.constant 0 : i32
    %c0_i32_0 = arith.constant 0 : i32
    %c0_i32_1 = arith.constant 0 : i32
    return %c0_i32, %c0_i32_0 : i32, i32
  }
  func.func @transform_3(%arg0: i32) -> (i32, i32, i32) {
    %c0_i32 = arith.constant 0 : i32
    %c0_i32_0 = arith.constant 0 : i32
    %c0_i32_1 = arith.constant 0 : i32
    %c0_i32_2 = arith.constant 0 : i32
    return %c0_i32, %c0_i32_0, %c0_i32_1 : i32, i32, i32
  }
  func.func @transform_4(%arg0: i32) -> (i32, i32, i32) {
    %c0_i32 = arith.constant 0 : i32
    %c0_i32_0 = arith.constant 0 : i32
    %c0_i32_1 = arith.constant 0 : i32
    %c0_i32_2 = arith.constant 0 : i32
    return %c0_i32, %c0_i32_0, %c0_i32_1 : i32, i32, i32
  }
  func.func @transform_5(%arg0: i32) -> (i32, i32) {
    %c0_i32 = arith.constant 0 : i32
    %c0_i32_0 = arith.constant 0 : i32
    %c0_i32_1 = arith.constant 0 : i32
    return %c0_i32, %c0_i32_0 : i32, i32
  }
  func.func @transform_6(%arg0: i32) -> (i32, i32) {
    %c0_i32 = arith.constant 0 : i32
    %c0_i32_0 = arith.constant 0 : i32
    %c0_i32_1 = arith.constant 0 : i32
    return %c0_i32, %c0_i32_0 : i32, i32
  }
  func.func @transform_7(%arg0: i32) -> (i32, i32) {
    %c0_i32 = arith.constant 0 : i32
    %c0_i32_0 = arith.constant 0 : i32
    return %arg0, %c0_i32 : i32, i32
  }
}

</mosaic_0001>

<bundles_post_ra>
// kernel: raw_encoder_forward.1
= control target key start
LH: loop header
LB: loop body
LE: loop exit
PB: predicated region body
PF: predicated region fallthrough
CT: control target
= control target key end

     0   :  { %12 = vsyncpa [#allocation5], 0  ;;  %s6549_s0 = inlined_call_operand.vmem [shape: bf16[512,4], index: 0, kind: input, shape index: {}]   ;;  %s6550_s1 = inlined_call_operand.vmem [shape: bf16[4,128], index: 1, kind: input, shape index: {}]   ;;  %s6551_s2 = inlined_call_operand.vmem [shape: f32[1,128], index: 2, kind: input, shape index: {}]   ;;  %s6552_s3 = inlined_call_operand.hbm [shape: bf16[5,512,128], index: 3, kind: input, shape index: {}]   ;;  %s6553_s4 = inlined_call_operand.vmem [shape: f32[5,1,128], index: 4, kind: input, shape index: {}]   ;;  %s6554_s5 = inlined_call_operand.vmem [shape: bf16[384,128], index: 5, kind: input, shape index: {}]   ;;  %s6555_s6 = inlined_call_operand.vmem [shape: bf16[128,128], index: 6, kind: input, shape index: {}]   ;;  %s6556_s7 = inlined_call_operand.hbm [shape: f32[16,128], index: 7, kind: output, shape index: {}]  }
   0x1   :  { %13 = vsyncpa [#allocation6], 0  ;;  %s5872_s24 = smov [#allocation4]   ;;  %s5824_s28 = scalar_lea.hbm %s6552_s3, 20480 }
   0x2   :  { %s25_s25 = sshll.u32 %s5872_s24, 4  ;;  %p5825_p0 = scmp.ne.s32.totalorder %s6552_s3, %s5824_s28  ;;  %s26_s25 = int_to_ptr.vmem [resolvable:$true] %s25_s25 }
   0x3   :  { %p5828_p1 = scmp.lt.u32.totalorder %s5824_s28, %s6552_s3 }
   0x5   :  { %p5830_p2 = pnand %p5828_p1, %p5825_p0 }
   0x7   :  { %5833 = shalt.err (!%p5830_p2)
}
   0x8   :  { %s5834_s10 = scalar_lea.vmem %s26_s25, 20480  ;;  %p5839_p4 = scmp.lt.s32.totalorder %s26_s25, %s26_s25 }
   0x9   :  { %p5835_p3 = scmp.ne.s32.totalorder %s26_s25, %s5834_s10  ;;  %p5840_p5 = scmp.lt.s32.totalorder %s5834_s10, %s5834_s10 }
   0xb   :  { %p5841_p6 = por %p5840_p5, %p5839_p4 }
   0xd   :  { %p5842_p7 = pnand %p5841_p6, %p5835_p3 }
   0xf   :  { %5845 = shalt.err (!%p5842_p7)
}
  0x10   :  { %s5873_s11 = smov 64   ;;  %s5874_s12 = smov 4  }
  0x11   :  { %31 = dma.hbm_to_vmem [thread:$0]  %s6552_s3, 20480, %s26_s25, [#allocation5], %s5873_s11, %s5873_s11, %s5874_s12  }
  0x12   :  { %5868 = dma.done.wait [#allocation5], 20480  }
  0x13   :  { %5869 = vsyncadd [#allocation5], 4294946816  ;;  %vm371_vm0 = vcmask 1041408   ;;  %vm274_vm1 = vcmask 31744   ;;  %v106_v0 = vld [vmem:[%s6550_s1] sm:$0x3] }
  0x14   :  { %5559 = vmatprep.subr.msk.bf16.mxu0 %vm371_vm0, %v106_v0  ;;  %v373_v1 = vsel %vm371_vm0, %v106_v0, 0  ;;  %v5568_v2 = vld [vmem:[%s6549_s0] sm:$0xff]   ;;  %v5569_v3 = vld [vmem:[%s6549_s0 + $0x8] sm:$0xff]   ;;  %v5570_v4 = vld [vmem:[%s6549_s0 + $0x10] sm:$0xff]   ;;  %v5875_v55 = vmov 0.0   ;;  %vm5876_vm2 = vmmov 0  }
  0x15   :  { %5414 = vmatpush3.bf16.msra.mxu0 %v373_v1  ;;  %5415 = vmatprep.mubr.msk.bf16.mxu0 %vm274_vm1, %v5568_v2  ;;  %v5571_v5 = vld [vmem:[%s6549_s0 + $0x18] sm:$0xff]   ;;  %v5572_v6 = vld [vmem:[%s6549_s0 + $0x20] sm:$0xff]   ;;  %v5573_v7 = vld [vmem:[%s6549_s0 + $0x28] sm:$0xff]   ;;  %728 = vst [vmem:[#allocation2 + $0x7] sm:$0x1] %v5875_v55 }
  0x16   :  { %v5574_v8 = vld [vmem:[%s6549_s0 + $0x30] sm:$0xff]   ;;  %v5575_v9 = vld [vmem:[%s6549_s0 + $0x38] sm:$0xff]   ;;  %v5576_v10 = vld [vmem:[%s6549_s0 + $0x40] sm:$0xff]   ;;  %761 = vst [vmem:[#allocation2 + $0x108] sm:$0x1] %v5875_v55 }
  0x17   :  { %v5596_v11 = vld [vmem:[#allocation4 + $0xc0] sm:$0xff]   ;;  %v5577_v13 = vld [vmem:[%s6549_s0 + $0x48] sm:$0xff]   ;;  %v5578_v14 = vld [vmem:[%s6549_s0 + $0x50] sm:$0xff]   ;;  %762 = vst [vmem:[#allocation2 + $0x117] sm:$0x1] %v5875_v55 }
  0x18   :  { %5416 = vmatmul.mubr.msk.bf16.vlgmr.msra.gmra.mrb[0].mxu0 %vm274_vm1, %v5569_v3  ;;  %v5597_v12 = vld [vmem:[#allocation4 + $0x80] sm:$0xff]   ;;  %4913 = vmatprep.subr.bf16.mxu0 %v5596_v11  ;;  %v5602_v15 = vld [vmem:[#allocation4 + $0xc8] sm:$0xff]   ;;  %v5604_v17 = vld [vmem:[#allocation4 + $0xd0] sm:$0xff]   ;;  %795 = vst [vmem:[#allocation2 + $0x218] sm:$0x1] %v5875_v55 }
  0x19   :  { %5419 = vmatprep.mubr.msk.bf16.mxu0 %vm274_vm1, %v5570_v4  ;;  %4914 = vmatpush3.bf16.msra.mxu0 %v5597_v12  ;;  %v5603_v16 = vld [vmem:[#allocation4 + $0x88] sm:$0xff]   ;;  %v5605_v18 = vld [vmem:[#allocation4 + $0x90] sm:$0xff]   ;;  %v5606_v19 = vld [vmem:[#allocation4 + $0xd8] sm:$0xff]   ;;  %1733 = vst [vmem:[#allocation3 + $0x7] sm:$0x1] %v5875_v55 }
  0x1a   :  { %4915 = vmatprep.subr.bf16.mxu0 %v5602_v15  ;;  %v5579_v20 = vld [vmem:[%s6549_s0 + $0x58] sm:$0xff]   ;;  %v5580_v21 = vld [vmem:[%s6549_s0 + $0x60] sm:$0xff]   ;;  %v5610_v25 = vld [vmem:[#allocation4 + $0xe8] sm:$0xff]   ;;  %1750 = vst [vmem:[#allocation3 + $0x88] sm:$0x1] %v5875_v55 }
  0x1b   :  { %v5607_v22 = vld [vmem:[#allocation4 + $0x98] sm:$0xff]   ;;  %v5608_v23 = vld [vmem:[#allocation4 + $0xe0] sm:$0xff]   ;;  %v5581_v28 = vld [vmem:[%s6549_s0 + $0x68] sm:$0xff]   ;;  %1751 = vst [vmem:[#allocation3 + $0x97] sm:$0x1] %v5875_v55 }
  0x1c   :  { %v5609_v24 = vld [vmem:[#allocation4 + $0xa0] sm:$0xff]   ;;  %v5614_v29 = vld [vmem:[#allocation4 + $0x48] sm:$0xff]   ;;  %v5582_v30 = vld [vmem:[%s6549_s0 + $0x70] sm:$0xff]   ;;  %1768 = vst [vmem:[#allocation3 + $0x118] sm:$0x1] %v5875_v55 }
  0x1d   :  { %4916 = vmatpush3.bf16.msra.mxu0 %v5603_v16  ;;  %v5612_v26 = vld [vmem:[#allocation4 + $0x40] sm:$0xff]   ;;  %v5615_v31 = vld [vmem:[#allocation4 + $0x8] sm:$0xff]   ;;  %v5616_v33 = vld [vmem:[#allocation4 + $0xf0] sm:$0xff]  }
  0x1e   :  { %4917 = vmatprep.subr.bf16.mxu0 %v5604_v17  ;;  %v5613_v27 = vld [vmem:[#allocation4] sm:$0xff]   ;;  %4801 = vmatprep.subr.bf16.mxu1 %v5612_v26  ;;  %v5611_v32 = vld [vmem:[#allocation4 + $0xa8] sm:$0xff]   ;;  %v5618_v34 = vld [vmem:[#allocation4 + $0x50] sm:$0xff]  }
  0x1f   :  { %4802 = vmatpush3.bf16.msra.mxu1 %v5613_v27  ;;  %v5617_v35 = vld [vmem:[#allocation4 + $0xb0] sm:$0xff]   ;;  %v5620_v37 = vld [vmem:[#allocation4 + $0x58] sm:$0xff]   ;;  %v5584_v39 = vld [vmem:[%s6549_s0 + $0x80] sm:$0xff]  }
  0x20   :  { %5420 = vmatmul.mubr.msk.bf16.gmra.mrb[4].mxu0 %vm274_vm1, %v5571_v5  ;;  %4803 = vmatprep.subr.bf16.mxu1 %v5614_v29  ;;  %v5619_v36 = vld [vmem:[#allocation4 + $0x10] sm:$0xff]   ;;  %v5583_v38 = vld [vmem:[%s6549_s0 + $0x78] sm:$0xff]   ;;  %v5585_v40 = vld [vmem:[%s6549_s0 + $0x88] sm:$0xff]  }
  0x21   :  { %5423 = vmatprep.mubr.msk.bf16.mxu0 %vm274_vm1, %v5572_v6  ;;  %4918 = vmatpush3.bf16.msra.mxu0 %v5605_v18  ;;  %v5586_v41 = vld [vmem:[%s6549_s0 + $0x90] sm:$0xff]   ;;  %v5587_v42 = vld [vmem:[%s6549_s0 + $0x98] sm:$0xff]   ;;  %v5588_v43 = vld [vmem:[%s6549_s0 + $0xa0] sm:$0xff]  }
  0x22   :  { %4919 = vmatprep.subr.bf16.mxu0 %v5606_v19  ;;  %v5589_v44 = vld [vmem:[%s6549_s0 + $0xa8] sm:$0xff]   ;;  %v5590_v45 = vld [vmem:[%s6549_s0 + $0xb0] sm:$0xff]   ;;  %v5621_v46 = vld [vmem:[#allocation4 + $0x18] sm:$0xff]  }
  0x23   :  { %4804 = vmatpush3.bf16.msra.mxu1 %v5615_v31  ;;  %v5591_v47 = vld [vmem:[%s6549_s0 + $0xb8] sm:$0xff]   ;;  %v5592_v48 = vld [vmem:[%s6549_s0 + $0xc0] sm:$0xff]   ;;  %v5624_v51 = vld [vmem:[#allocation4 + $0x68] sm:$0xff]  }
  0x24   :  { %4805 = vmatprep.subr.bf16.mxu1 %v5618_v34  ;;  %v5622_v49 = vld [vmem:[#allocation4 + $0x60] sm:$0xff]   ;;  %v5625_v52 = vld [vmem:[#allocation4 + $0x28] sm:$0xff]   ;;  %v5594_v54 = vld [vmem:[%s6549_s0 + $0xd0] sm:$0xff]  }
  0x25   :  { %4920 = vmatpush3.bf16.msra.mxu0 %v5607_v22  ;;  %v5623_v50 = vld [vmem:[#allocation4 + $0x20] sm:$0xff]   ;;  %v5593_v53 = vld [vmem:[%s6549_s0 + $0xc8] sm:$0xff]   ;;  %v5628_v56 = vld [vmem:[#allocation4 + $0x70] sm:$0xff]  }
  0x26   :  { %4921 = vmatprep.subr.bf16.mxu0 %v5608_v23  ;;  %v5629_v57 = vld [vmem:[#allocation4 + $0x30] sm:$0xff]   ;;  %v5626_v58 = vld [vmem:[#allocation4 + $0xf8] sm:$0xff]   ;;  %v5598_v63 = vld [vmem:[%s6549_s0 + $0xe0] sm:$0xff]  }
  0x27   :  { %4806 = vmatpush3.bf16.msra.mxu1 %v5619_v36  ;;  %v5630_v59 = vld [vmem:[#allocation4 + $0x78] sm:$0xff]   ;;  %v5599_v0 = vld [vmem:[%s6549_s0 + $0xe8] sm:$0xff]   ;;  %v5600_v1 = vld [vmem:[%s6549_s0 + $0xf0] sm:$0xff]  }
  0x28   :  { %5424 = vmatmul.mubr.msk.bf16.gmra.mrb[8].mxu0 %vm274_vm1, %v5573_v7  ;;  %4807 = vmatprep.subr.bf16.mxu1 %v5620_v37  ;;  %v5627_v60 = vld [vmem:[#allocation4 + $0xb8] sm:$0xff]   ;;  %v6074_v3 = vld [vmem:[%s6551_s2] ss:$0 sm:$0xff] }
  0x29   :  { %5427 = vmatprep.mubr.msk.bf16.mxu0 %vm274_vm1, %v5574_v8  ;;  %4922 = vmatpush3.bf16.msra.mxu0 %v5609_v24  ;;  %v5631_v61 = vld [vmem:[#allocation4 + $0x38] sm:$0xff]   ;;  %v5632_v37 = vld [vmem:[#allocation4 + $0x140] sm:$0xff]  }
  0x2a   :  { %4923 = vmatprep.subr.bf16.mxu0 %v5610_v25  ;;  %v5595_v62 = vld [vmem:[%s6549_s0 + $0xd8] sm:$0xff]  }
  0x2b   :  { %4808 = vmatpush3.bf16.msra.mxu1 %v5621_v46  ;;  %v5601_v2 = vld [vmem:[%s6549_s0 + $0xf8] sm:$0xff]  }
  0x2c   :  { %4809 = vmatprep.subr.bf16.mxu1 %v5622_v49  ;;  %v5635_v49 = vld [vmem:[#allocation4 + $0x108] sm:$0xff]  }
  0x2d   :  { %4924 = vmatpush3.bf16.msra.mxu0 %v5611_v32 }
  0x2e   :  { %4925 = vmatprep.subr.bf16.mxu0 %v5616_v33 }
  0x2f   :  { %4810 = vmatpush3.bf16.msra.mxu1 %v5623_v50 }
  0x30   :  { %5428 = vmatmul.mubr.msk.bf16.gmra.mrb[12].mxu0 %vm274_vm1, %v5575_v9  ;;  %4811 = vmatprep.subr.bf16.mxu1 %v5624_v51 }
  0x31   :  { %5431 = vmatprep.mubr.msk.bf16.mxu0 %vm274_vm1, %v5576_v10  ;;  %4926 = vmatpush3.bf16.msra.mxu0 %v5617_v35 }
  0x32   :  { %4927 = vmatprep.subr.bf16.mxu0 %v5626_v58 }
  0x33   :  { %4812 = vmatpush3.bf16.msra.mxu1 %v5625_v52 }
  0x34   :  { %4813 = vmatprep.subr.bf16.mxu1 %v5628_v56 }
  0x35   :  { %4928 = vmatpush3.bf16.msra.mxu0 %v5627_v60 }
  0x37   :  { %4814 = vmatpush3.bf16.msra.mxu1 %v5629_v57 }
  0x38   :  { %5432 = vmatmul.mubr.msk.bf16.gmra.mrb[16].mxu0 %vm274_vm1, %v5577_v13  ;;  %4815 = vmatprep.subr.bf16.mxu1 %v5630_v59 }
  0x39   :  { %5435 = vmatprep.mubr.msk.bf16.mxu0 %vm274_vm1, %v5578_v14 }
  0x3b   :  { %4816 = vmatpush3.bf16.msra.mxu1 %v5631_v61 }
  0x3c   :  { %5025 = vmatprep.subr.bf16.mxu1 %v5632_v37 }
  0x40   :  { %5436 = vmatmul.mubr.msk.bf16.gmra.mrb[20].mxu0 %vm274_vm1, %v5579_v20 }
  0x41   :  { %5439 = vmatprep.mubr.msk.bf16.mxu0 %vm274_vm1, %v5580_v21 }
  0x48   :  { %5440 = vmatmul.mubr.msk.bf16.gmra.mrb[24].mxu0 %vm274_vm1, %v5581_v28 }
  0x49   :  { %5443 = vmatprep.mubr.msk.bf16.mxu0 %vm274_vm1, %v5582_v30 }
  0x50   :  { %5444 = vmatmul.mubr.msk.bf16.gmra.mrb[28].mxu0 %vm274_vm1, %v5583_v38  ;;  %v5633_v38 = vld [vmem:[#allocation4 + $0x100] sm:$0xff]  }
  0x51   :  { %5447 = vmatprep.mubr.msk.bf16.mxu0 %vm274_vm1, %v5584_v39  ;;  %v5634_v39 = vld [vmem:[#allocation4 + $0x148] sm:$0xff]  }
  0x58   :  { %5448 = vmatmul.mubr.msk.bf16.gmra.mrb[32].mxu0 %vm274_vm1, %v5585_v40 }
  0x59   :  { %5451 = vmatprep.mubr.msk.bf16.mxu0 %vm274_vm1, %v5586_v41 }
  0x60   :  { %5452 = vmatmul.mubr.msk.bf16.gmra.mrb[36].mxu0 %vm274_vm1, %v5587_v42 }
  0x61   :  { %5455 = vmatprep.mubr.msk.bf16.mxu0 %vm274_vm1, %v5588_v43 }
  0x68   :  { %5456 = vmatmul.mubr.msk.bf16.gmra.mrb[40].mxu0 %vm274_vm1, %v5589_v44 }
  0x69   :  { %5459 = vmatprep.mubr.msk.bf16.mxu0 %vm274_vm1, %v5590_v45 }
  0x70   :  { %5460 = vmatmul.mubr.msk.bf16.gmra.mrb[44].mxu0 %vm274_vm1, %v5591_v47 }
  0x71   :  { %5463 = vmatprep.mubr.msk.bf16.mxu0 %vm274_vm1, %v5592_v48 }
  0x78   :  { %5464 = vmatmul.mubr.msk.bf16.gmra.mrb[48].mxu0 %vm274_vm1, %v5593_v53  ;;  %v5636_v53 = vld [vmem:[#allocation4 + $0x150] sm:$0xff]  }
  0x79   :  { %5467 = vmatprep.mubr.msk.bf16.mxu0 %vm274_vm1, %v5594_v54 }
  0x80   :  { %5468 = vmatmul.mubr.msk.bf16.gmra.mrb[52].mxu0 %vm274_vm1, %v5595_v62 }
  0x81   :  { %5471 = vmatprep.mubr.msk.bf16.mxu0 %vm274_vm1, %v5598_v63 }
  0x88   :  { %5472 = vmatmul.mubr.msk.bf16.gmra.mrb[56].mxu0 %vm274_vm1, %v5599_v0 }
  0x89   :  { %5475 = vmatprep.mubr.msk.bf16.mxu0 %vm274_vm1, %v5600_v1  ;;  %v5637_v1 = vld [vmem:[#allocation4 + $0x110] sm:$0xff]  }
  0x90   :  { %5476 = vmatmul.mubr.msk.bf16.gmra.mrb[60].mxu0 %vm274_vm1, %v5601_v2 }
  0xeb   :  { %v5417_v4 = vpop.f32.mrb[0].mxu0 }
  0xec   :  { %v418_v5 = vadd.f32 %v5417_v4, %v6074_v3  ;;  %v409_v6 = vpop.f32.mrb[1].mxu0 }
  0xed   :  { %v410_v7 = vadd.f32 %v6074_v3, %v409_v6  ;;  %v5418_v8 = vpop.f32.mrb[2].mxu0 }
  0xee   :  { %v666_v9 = vmax.f32 %v418_v5, 0.0  ;;  %v421_v10 = vadd.f32 %v5418_v8, %v6074_v3  ;;  %v412_v11 = vpop.f32.mrb[3].mxu0 }
  0xef   :  { %v664_v12 = vmax.f32 %v410_v7, 0.0  ;;  %v413_v13 = vadd.f32 %v6074_v3, %v412_v11 }
  0xf0   :  { %731 = vst [vmem:[#allocation2 + $0x18] sm:$0xff] %v666_v9  ;;  %v667_v14 = vmax.f32 %v421_v10, 0.0 }
  0xf1   :  { %729 = vst [vmem:[#allocation2 + $0x8] sm:$0xff] %v664_v12  ;;  %v665_v15 = vmax.f32 %v413_v13, 0.0 }
  0xf2   :  { %732 = vst [vmem:[#allocation2 + $0x20] sm:$0xff] %v667_v14 }
  0xf3   :  { %730 = vst [vmem:[#allocation2 + $0x10] sm:$0xff] %v665_v15  ;;  %v5421_v16 = vpop.f32.mrb[4].mxu0 }
  0xf4   :  { %v434_v17 = vadd.f32 %v5421_v16, %v6074_v3  ;;  %v425_v18 = vpop.f32.mrb[5].mxu0 }
  0xf5   :  { %v426_v19 = vadd.f32 %v6074_v3, %v425_v18  ;;  %v5422_v20 = vpop.f32.mrb[6].mxu0 }
  0xf6   :  { %v670_v21 = vmax.f32 %v434_v17, 0.0  ;;  %v437_v22 = vadd.f32 %v5422_v20, %v6074_v3  ;;  %v428_v23 = vpop.f32.mrb[7].mxu0 }
  0xf7   :  { %v668_v24 = vmax.f32 %v426_v19, 0.0  ;;  %v429_v25 = vadd.f32 %v6074_v3, %v428_v23 }
  0xf8   :  { %735 = vst [vmem:[#allocation2 + $0x38] sm:$0xff] %v670_v21  ;;  %v671_v26 = vmax.f32 %v437_v22, 0.0 }
  0xf9   :  { %733 = vst [vmem:[#allocation2 + $0x28] sm:$0xff] %v668_v24  ;;  %v669_v27 = vmax.f32 %v429_v25, 0.0  ;;  %v831_v28 = vld [vmem:[#allocation2 + $0x18] ss:$2 sm:$0xff]  ;;  %v863_v48 = vld [vmem:[#allocation2 + $0x19] ss:$2 sm:$0xff] }
  0xfa   :  { %736 = vst [vmem:[#allocation2 + $0x40] sm:$0xff] %v671_v26  ;;  %v829_v29 = vld [vmem:[#allocation2 + $0x8] ss:$2 sm:$0xff]  ;;  %v797_v30 = vld [vmem:[#allocation2 + $0x7] ss:$2 sm:$0xff] }
  0xfb   :  { %v799_v31 = vld [vmem:[#allocation2 + $0x17] ss:$2 sm:$0xff]  ;;  %734 = vst [vmem:[#allocation2 + $0x30] sm:$0xff] %v669_v27  ;;  %v5425_v32 = vpop.f32.mrb[8].mxu0  ;;  %v1053_v33 = vpack.c.bf16 %v831_v28, %v829_v29  ;;  %2404 = vst [vmem:[#allocation2 + $0x7] sm:$0x1] %v5875_v55 }
  0xfc   :  { %v1052_v34 = vpack.c.bf16 %v799_v31, %v797_v30  ;;  %v450_v35 = vadd.f32 %v5425_v32, %v6074_v3  ;;  %v441_v36 = vpop.f32.mrb[9].mxu0  ;;  %v861_v47 = vld [vmem:[#allocation2 + $0x9] ss:$2 sm:$0xff]  ;;  %v893_v51 = vld [vmem:[#allocation2 + $0xa] ss:$2 sm:$0xff] }
  0xfd   :  { %v442_v40 = vadd.f32 %v6074_v3, %v441_v36  ;;  %v5426_v41 = vpop.f32.mrb[10].mxu0  ;;  %1411 = vmatprep.mubr.bf16.mxu1 %v1053_v33  ;;  %v1054_v58 = vpack.c.bf16 %v863_v48, %v861_v47 }
  0xfe   :  { %v674_v42 = vmax.f32 %v450_v35, 0.0  ;;  %v453_v43 = vadd.f32 %v5426_v41, %v6074_v3  ;;  %v444_v44 = vpop.f32.mrb[11].mxu0  ;;  %1412 = vmatmul.mubr.bf16.vlgmr.msra.gmra.mrb[0].mxu1 %v1052_v34 }
  0xff   :  { %v672_v45 = vmax.f32 %v442_v40, 0.0  ;;  %v445_v46 = vadd.f32 %v6074_v3, %v444_v44  ;;  %5026 = vmatpush3.bf16.msra.mxu1 %v5633_v38 }
 0x100   :  { %739 = vst [vmem:[#allocation2 + $0x58] sm:$0xff] %v674_v42  ;;  %v675_v50 = vmax.f32 %v453_v43, 0.0  ;;  %v895_v52 = vld [vmem:[#allocation2 + $0x1a] ss:$2 sm:$0xff]  ;;  %5027 = vmatprep.subr.bf16.mxu1 %v5634_v39 }
 0x101   :  { %737 = vst [vmem:[#allocation2 + $0x48] sm:$0xff] %v672_v45  ;;  %v673_v54 = vmax.f32 %v445_v46, 0.0  ;;  %v1055_v56 = vpack.c.bf16 %v895_v52, %v893_v51  ;;  %v835_v57 = vld [vmem:[#allocation2 + $0x38] ss:$2 sm:$0xff]  ;;  %v867_v13 = vld [vmem:[#allocation2 + $0x39] ss:$2 sm:$0xff] }
 0x102   :  { %740 = vst [vmem:[#allocation2 + $0x60] sm:$0xff] %v675_v50  ;;  %v833_v59 = vld [vmem:[#allocation2 + $0x28] ss:$2 sm:$0xff]  ;;  %v801_v60 = vld [vmem:[#allocation2 + $0x27] ss:$2 sm:$0xff] }
 0x103   :  { %v803_v61 = vld [vmem:[#allocation2 + $0x37] ss:$2 sm:$0xff]  ;;  %738 = vst [vmem:[#allocation2 + $0x50] sm:$0xff] %v673_v54  ;;  %v5429_v62 = vpop.f32.mrb[12].mxu0  ;;  %1572 = vmatprep.mubr.bf16.mxu0 %v1055_v56  ;;  %v1057_v63 = vpack.c.bf16 %v835_v57, %v833_v59  ;;  %5028 = vmatpush3.bf16.msra.mxu1 %v5635_v49  ;;  %v897_v15 = vld [vmem:[#allocation2 + $0x2a] ss:$2 sm:$0xff] }
 0x104   :  { %v1056_v0 = vpack.c.bf16 %v803_v61, %v801_v60  ;;  %v466_v2 = vadd.f32 %v5429_v62, %v6074_v3  ;;  %v457_v4 = vpop.f32.mrb[13].mxu0  ;;  %1573 = vmatmul.mubr.bf16.vlgmr.msra.gmra.mrb[64].mxu0 %v1054_v58  ;;  %5029 = vmatprep.subr.bf16.mxu1 %v5636_v53  ;;  %v865_v12 = vld [vmem:[#allocation2 + $0x29] ss:$2 sm:$0xff] }
 0x105   :  { %v458_v5 = vadd.f32 %v6074_v3, %v457_v4  ;;  %v5430_v6 = vpop.f32.mrb[14].mxu0  ;;  %1419 = vmatprep.mubr.bf16.mxu1 %v1057_v63  ;;  %v1058_v20 = vpack.c.bf16 %v867_v13, %v865_v12 }
 0x106   :  { %v678_v7 = vmax.f32 %v466_v2, 0.0  ;;  %v469_v8 = vadd.f32 %v5430_v6, %v6074_v3  ;;  %v460_v9 = vpop.f32.mrb[15].mxu0  ;;  %1420 = vmatmul.mubr.bf16.gmra.mrb[4].mxu1 %v1056_v0 }
 0x107   :  { %v676_v10 = vmax.f32 %v458_v5, 0.0  ;;  %v461_v11 = vadd.f32 %v6074_v3, %v460_v9  ;;  %5030 = vmatpush3.bf16.msra.mxu1 %v5637_v1 }
 0x108   :  { %743 = vst [vmem:[#allocation2 + $0x78] sm:$0xff] %v678_v7  ;;  %v679_v14 = vmax.f32 %v469_v8, 0.0  ;;  %v899_v16 = vld [vmem:[#allocation2 + $0x3a] ss:$2 sm:$0xff] }
 0x109   :  { %741 = vst [vmem:[#allocation2 + $0x68] sm:$0xff] %v676_v10  ;;  %v677_v17 = vmax.f32 %v461_v11, 0.0  ;;  %v1059_v18 = vpack.c.bf16 %v899_v16, %v897_v15  ;;  %v839_v19 = vld [vmem:[#allocation2 + $0x58] ss:$2 sm:$0xff]  ;;  %v871_v37 = vld [vmem:[#allocation2 + $0x59] ss:$2 sm:$0xff] }
 0x10a   :  { %744 = vst [vmem:[#allocation2 + $0x80] sm:$0xff] %v679_v14  ;;  %v837_v21 = vld [vmem:[#allocation2 + $0x48] ss:$2 sm:$0xff]  ;;  %v805_v22 = vld [vmem:[#allocation2 + $0x47] ss:$2 sm:$0xff] }
 0x10b   :  { %v807_v23 = vld [vmem:[#allocation2 + $0x57] ss:$2 sm:$0xff]  ;;  %742 = vst [vmem:[#allocation2 + $0x70] sm:$0xff] %v677_v17  ;;  %v5433_v24 = vpop.f32.mrb[16].mxu0  ;;  %1580 = vmatprep.mubr.bf16.mxu0 %v1059_v18  ;;  %v1061_v25 = vpack.c.bf16 %v839_v19, %v837_v21  ;;  %2413 = vst [vmem:[#allocation2 + $0x48] sm:$0x1] %v5875_v55 }
 0x10c   :  { %v1060_v26 = vpack.c.bf16 %v807_v23, %v805_v22  ;;  %v482_v27 = vadd.f32 %v5433_v24, %v6074_v3  ;;  %v473_v28 = vpop.f32.mrb[17].mxu0  ;;  %1581 = vmatmul.mubr.bf16.gmra.mrb[68].mxu0 %v1058_v20  ;;  %v869_v36 = vld [vmem:[#allocation2 + $0x49] ss:$2 sm:$0xff]  ;;  %v901_v39 = vld [vmem:[#allocation2 + $0x4a] ss:$2 sm:$0xff] }
 0x10d   :  { %v474_v29 = vadd.f32 %v6074_v3, %v473_v28  ;;  %v5434_v30 = vpop.f32.mrb[18].mxu0  ;;  %1427 = vmatprep.mubr.bf16.mxu1 %v1061_v25  ;;  %v1062_v44 = vpack.c.bf16 %v871_v37, %v869_v36 }
 0x10e   :  { %v682_v31 = vmax.f32 %v482_v27, 0.0  ;;  %v485_v32 = vadd.f32 %v5434_v30, %v6074_v3  ;;  %v476_v33 = vpop.f32.mrb[19].mxu0  ;;  %1428 = vmatmul.mubr.bf16.gmra.mrb[8].mxu1 %v1060_v26 }
 0x10f   :  { %v680_v34 = vmax.f32 %v474_v29, 0.0  ;;  %v477_v35 = vadd.f32 %v6074_v3, %v476_v33 }
 0x110   :  { %747 = vst [vmem:[#allocation2 + $0x98] sm:$0xff] %v682_v31  ;;  %v683_v38 = vmax.f32 %v485_v32, 0.0  ;;  %v903_v40 = vld [vmem:[#allocation2 + $0x5a] ss:$2 sm:$0xff] }
 0x111   :  { %745 = vst [vmem:[#allocation2 + $0x88] sm:$0xff] %v680_v34  ;;  %v681_v41 = vmax.f32 %v477_v35, 0.0  ;;  %v1063_v42 = vpack.c.bf16 %v903_v40, %v901_v39  ;;  %v843_v43 = vld [vmem:[#allocation2 + $0x78] ss:$2 sm:$0xff]  ;;  %v875_v62 = vld [vmem:[#allocation2 + $0x79] ss:$2 sm:$0xff] }
 0x112   :  { %748 = vst [vmem:[#allocation2 + $0xa0] sm:$0xff] %v683_v38  ;;  %v841_v45 = vld [vmem:[#allocation2 + $0x68] ss:$2 sm:$0xff]  ;;  %v809_v46 = vld [vmem:[#allocation2 + $0x67] ss:$2 sm:$0xff] }
 0x113   :  { %v811_v47 = vld [vmem:[#allocation2 + $0x77] ss:$2 sm:$0xff]  ;;  %746 = vst [vmem:[#allocation2 + $0x90] sm:$0xff] %v681_v41  ;;  %v5437_v48 = vpop.f32.mrb[20].mxu0  ;;  %1588 = vmatprep.mubr.bf16.mxu0 %v1063_v42  ;;  %v1065_v49 = vpack.c.bf16 %v843_v43, %v841_v45  ;;  %v905_v0 = vld [vmem:[#allocation2 + $0x6a] ss:$2 sm:$0xff] }
 0x114   :  { %v1064_v50 = vpack.c.bf16 %v811_v47, %v809_v46  ;;  %v498_v51 = vadd.f32 %v5437_v48, %v6074_v3  ;;  %v489_v52 = vpop.f32.mrb[21].mxu0  ;;  %1589 = vmatmul.mubr.bf16.gmra.mrb[72].mxu0 %v1062_v44  ;;  %v873_v61 = vld [vmem:[#allocation2 + $0x69] ss:$2 sm:$0xff] }
 0x115   :  { %v490_v53 = vadd.f32 %v6074_v3, %v489_v52  ;;  %v5438_v54 = vpop.f32.mrb[22].mxu0  ;;  %1435 = vmatprep.mubr.bf16.mxu1 %v1065_v49  ;;  %v1066_v6 = vpack.c.bf16 %v875_v62, %v873_v61 }
 0x116   :  { %v686_v56 = vmax.f32 %v498_v51, 0.0  ;;  %v501_v57 = vadd.f32 %v5438_v54, %v6074_v3  ;;  %v492_v58 = vpop.f32.mrb[23].mxu0  ;;  %1436 = vmatmul.mubr.bf16.gmra.mrb[12].mxu1 %v1064_v50 }
 0x117   :  { %v684_v59 = vmax.f32 %v490_v53, 0.0  ;;  %v493_v60 = vadd.f32 %v6074_v3, %v492_v58 }
 0x118   :  { %751 = vst [vmem:[#allocation2 + $0xb8] sm:$0xff] %v686_v56  ;;  %v687_v63 = vmax.f32 %v501_v57, 0.0  ;;  %v907_v1 = vld [vmem:[#allocation2 + $0x7a] ss:$2 sm:$0xff] }
 0x119   :  { %749 = vst [vmem:[#allocation2 + $0xa8] sm:$0xff] %v684_v59  ;;  %v685_v2 = vmax.f32 %v493_v60, 0.0  ;;  %v1067_v4 = vpack.c.bf16 %v907_v1, %v905_v0  ;;  %v847_v5 = vld [vmem:[#allocation2 + $0x98] ss:$2 sm:$0xff]  ;;  %v879_v23 = vld [vmem:[#allocation2 + $0x99] ss:$2 sm:$0xff] }
 0x11a   :  { %752 = vst [vmem:[#allocation2 + $0xc0] sm:$0xff] %v687_v63  ;;  %v845_v7 = vld [vmem:[#allocation2 + $0x88] ss:$2 sm:$0xff]  ;;  %v813_v8 = vld [vmem:[#allocation2 + $0x87] ss:$2 sm:$0xff] }
 0x11b   :  { %v815_v9 = vld [vmem:[#allocation2 + $0x97] ss:$2 sm:$0xff]  ;;  %750 = vst [vmem:[#allocation2 + $0xb0] sm:$0xff] %v685_v2  ;;  %v5441_v10 = vpop.f32.mrb[24].mxu0  ;;  %1596 = vmatprep.mubr.bf16.mxu0 %v1067_v4  ;;  %v1069_v11 = vpack.c.bf16 %v847_v5, %v845_v7  ;;  %v909_v25 = vld [vmem:[#allocation2 + $0x8a] ss:$2 sm:$0xff] }
 0x11c   :  { %v1068_v12 = vpack.c.bf16 %v815_v9, %v813_v8  ;;  %v514_v13 = vadd.f32 %v5441_v10, %v6074_v3  ;;  %v505_v14 = vpop.f32.mrb[25].mxu0  ;;  %1597 = vmatmul.mubr.bf16.gmra.mrb[76].mxu0 %v1066_v6  ;;  %v877_v22 = vld [vmem:[#allocation2 + $0x89] ss:$2 sm:$0xff] }
 0x11d   :  { %v506_v15 = vadd.f32 %v6074_v3, %v505_v14  ;;  %v5442_v16 = vpop.f32.mrb[26].mxu0  ;;  %1443 = vmatprep.mubr.bf16.mxu1 %v1069_v11  ;;  %v1070_v30 = vpack.c.bf16 %v879_v23, %v877_v22 }
 0x11e   :  { %v690_v17 = vmax.f32 %v514_v13, 0.0  ;;  %v517_v18 = vadd.f32 %v5442_v16, %v6074_v3  ;;  %v508_v19 = vpop.f32.mrb[27].mxu0  ;;  %1444 = vmatmul.mubr.bf16.gmra.mrb[16].mxu1 %v1068_v12 }
 0x11f   :  { %v688_v20 = vmax.f32 %v506_v15, 0.0  ;;  %v509_v21 = vadd.f32 %v6074_v3, %v508_v19 }
 0x120   :  { %755 = vst [vmem:[#allocation2 + $0xd8] sm:$0xff] %v690_v17  ;;  %v691_v24 = vmax.f32 %v517_v18, 0.0  ;;  %v911_v26 = vld [vmem:[#allocation2 + $0x9a] ss:$2 sm:$0xff] }
 0x121   :  { %753 = vst [vmem:[#allocation2 + $0xc8] sm:$0xff] %v688_v20  ;;  %v689_v27 = vmax.f32 %v509_v21, 0.0  ;;  %v1071_v28 = vpack.c.bf16 %v911_v26, %v909_v25  ;;  %v851_v29 = vld [vmem:[#allocation2 + $0xb8] ss:$2 sm:$0xff]  ;;  %v883_v47 = vld [vmem:[#allocation2 + $0xb9] ss:$2 sm:$0xff] }
 0x122   :  { %756 = vst [vmem:[#allocation2 + $0xe0] sm:$0xff] %v691_v24  ;;  %v849_v31 = vld [vmem:[#allocation2 + $0xa8] ss:$2 sm:$0xff]  ;;  %v817_v32 = vld [vmem:[#allocation2 + $0xa7] ss:$2 sm:$0xff] }
 0x123   :  { %v819_v33 = vld [vmem:[#allocation2 + $0xb7] ss:$2 sm:$0xff]  ;;  %754 = vst [vmem:[#allocation2 + $0xd0] sm:$0xff] %v689_v27  ;;  %v5445_v34 = vpop.f32.mrb[28].mxu0  ;;  %1604 = vmatprep.mubr.bf16.mxu0 %v1071_v28  ;;  %v1073_v35 = vpack.c.bf16 %v851_v29, %v849_v31  ;;  %v913_v49 = vld [vmem:[#allocation2 + $0xaa] ss:$2 sm:$0xff] }
 0x124   :  { %v1072_v36 = vpack.c.bf16 %v819_v33, %v817_v32  ;;  %v530_v37 = vadd.f32 %v5445_v34, %v6074_v3  ;;  %v521_v38 = vpop.f32.mrb[29].mxu0  ;;  %1605 = vmatmul.mubr.bf16.gmra.mrb[80].mxu0 %v1070_v30  ;;  %v881_v46 = vld [vmem:[#allocation2 + $0xa9] ss:$2 sm:$0xff] }
 0x125   :  { %v522_v39 = vadd.f32 %v6074_v3, %v521_v38  ;;  %v5446_v40 = vpop.f32.mrb[30].mxu0  ;;  %1451 = vmatprep.mubr.bf16.mxu1 %v1073_v35  ;;  %v1074_v54 = vpack.c.bf16 %v883_v47, %v881_v46 }
 0x126   :  { %v694_v41 = vmax.f32 %v530_v37, 0.0  ;;  %v533_v42 = vadd.f32 %v5446_v40, %v6074_v3  ;;  %v524_v43 = vpop.f32.mrb[31].mxu0  ;;  %1452 = vmatmul.mubr.bf16.gmra.mrb[20].mxu1 %v1072_v36 }
 0x127   :  { %v692_v44 = vmax.f32 %v522_v39, 0.0  ;;  %v525_v45 = vadd.f32 %v6074_v3, %v524_v43 }
 0x128   :  { %759 = vst [vmem:[#allocation2 + $0xf8] sm:$0xff] %v694_v41  ;;  %v695_v48 = vmax.f32 %v533_v42, 0.0  ;;  %v915_v50 = vld [vmem:[#allocation2 + $0xba] ss:$2 sm:$0xff] }
 0x129   :  { %757 = vst [vmem:[#allocation2 + $0xe8] sm:$0xff] %v692_v44  ;;  %v693_v51 = vmax.f32 %v525_v45, 0.0  ;;  %v1075_v52 = vpack.c.bf16 %v915_v50, %v913_v49  ;;  %v855_v53 = vld [vmem:[#allocation2 + $0xd8] ss:$2 sm:$0xff]  ;;  %v887_v9 = vld [vmem:[#allocation2 + $0xd9] ss:$2 sm:$0xff] }
 0x12a   :  { %760 = vst [vmem:[#allocation2 + $0x100] sm:$0xff] %v695_v48  ;;  %v853_v56 = vld [vmem:[#allocation2 + $0xc8] ss:$2 sm:$0xff]  ;;  %v821_v57 = vld [vmem:[#allocation2 + $0xc7] ss:$2 sm:$0xff] }
 0x12b   :  { %v823_v58 = vld [vmem:[#allocation2 + $0xd7] ss:$2 sm:$0xff]  ;;  %758 = vst [vmem:[#allocation2 + $0xf0] sm:$0xff] %v693_v51  ;;  %v5449_v59 = vpop.f32.mrb[32].mxu0  ;;  %1612 = vmatprep.mubr.bf16.mxu0 %v1075_v52  ;;  %v1077_v60 = vpack.c.bf16 %v855_v53, %v853_v56  ;;  %v917_v11 = vld [vmem:[#allocation2 + $0xca] ss:$2 sm:$0xff] }
 0x12c   :  { %v1076_v61 = vpack.c.bf16 %v823_v58, %v821_v57  ;;  %v546_v62 = vadd.f32 %v5449_v59, %v6074_v3  ;;  %v537_v63 = vpop.f32.mrb[33].mxu0  ;;  %1613 = vmatmul.mubr.bf16.gmra.mrb[84].mxu0 %v1074_v54  ;;  %v885_v8 = vld [vmem:[#allocation2 + $0xc9] ss:$2 sm:$0xff] }
 0x12d   :  { %v538_v0 = vadd.f32 %v6074_v3, %v537_v63  ;;  %v5450_v1 = vpop.f32.mrb[34].mxu0  ;;  %1459 = vmatprep.mubr.bf16.mxu1 %v1077_v60  ;;  %v1078_v17 = vpack.c.bf16 %v887_v9, %v885_v8 }
 0x12e   :  { %v698_v2 = vmax.f32 %v546_v62, 0.0  ;;  %v549_v4 = vadd.f32 %v5450_v1, %v6074_v3  ;;  %v540_v5 = vpop.f32.mrb[35].mxu0  ;;  %1460 = vmatmul.mubr.bf16.gmra.mrb[24].mxu1 %v1076_v61 }
 0x12f   :  { %v696_v6 = vmax.f32 %v538_v0, 0.0  ;;  %v541_v7 = vadd.f32 %v6074_v3, %v540_v5 }
 0x130   :  { %765 = vst [vmem:[#allocation2 + $0x128] sm:$0xff] %v698_v2  ;;  %v699_v10 = vmax.f32 %v549_v4, 0.0  ;;  %v919_v12 = vld [vmem:[#allocation2 + $0xda] ss:$2 sm:$0xff] }
 0x131   :  { %763 = vst [vmem:[#allocation2 + $0x118] sm:$0xff] %v696_v6  ;;  %v697_v13 = vmax.f32 %v541_v7, 0.0  ;;  %v1079_v14 = vpack.c.bf16 %v919_v12, %v917_v11  ;;  %v859_v15 = vld [vmem:[#allocation2 + $0xf8] ss:$2 sm:$0xff]  ;;  %v891_v36 = vld [vmem:[#allocation2 + $0xf9] ss:$2 sm:$0xff] }
 0x132   :  { %v923_v16 = vld [vmem:[#allocation2 + $0xfa] ss:$2 sm:$0xff]  ;;  %766 = vst [vmem:[#allocation2 + $0x130] sm:$0xff] %v699_v10  ;;  %v921_v19 = vld [vmem:[#allocation2 + $0xea] ss:$2 sm:$0xff] }
 0x133   :  { %v857_v18 = vld [vmem:[#allocation2 + $0xe8] ss:$2 sm:$0xff]  ;;  %v825_v20 = vld [vmem:[#allocation2 + $0xe7] ss:$2 sm:$0xff]  ;;  %764 = vst [vmem:[#allocation2 + $0x120] sm:$0xff] %v697_v13  ;;  %v5453_v21 = vpop.f32.mrb[36].mxu0  ;;  %1620 = vmatprep.mubr.bf16.mxu0 %v1079_v14  ;;  %v1083_v23 = vpack.c.bf16 %v923_v16, %v921_v19 }
 0x134   :  { %v1081_v22 = vpack.c.bf16 %v859_v15, %v857_v18  ;;  %v827_v24 = vld [vmem:[#allocation2 + $0xf7] ss:$2 sm:$0xff]  ;;  %v562_v25 = vadd.f32 %v5453_v21, %v6074_v3  ;;  %v553_v26 = vpop.f32.mrb[37].mxu0  ;;  %1621 = vmatmul.mubr.bf16.gmra.mrb[88].mxu0 %v1078_v17 }
 0x135   :  { %v1080_v27 = vpack.c.bf16 %v827_v24, %v825_v20  ;;  %v554_v28 = vadd.f32 %v6074_v3, %v553_v26  ;;  %v5454_v29 = vpop.f32.mrb[38].mxu0  ;;  %1628 = vmatprep.mubr.bf16.mxu0 %v1083_v23  ;;  %v889_v35 = vld [vmem:[#allocation2 + $0xe9] ss:$2 sm:$0xff] }
 0x136   :  { %1467 = vmatprep.mubr.bf16.mxu1 %v1081_v22  ;;  %v702_v30 = vmax.f32 %v562_v25, 0.0  ;;  %v565_v31 = vadd.f32 %v5454_v29, %v6074_v3  ;;  %v556_v32 = vpop.f32.mrb[39].mxu0  ;;  %v1082_v40 = vpack.c.bf16 %v891_v36, %v889_v35 }
 0x137   :  { %1468 = vmatmul.mubr.bf16.gmra.mrb[28].mxu1 %v1080_v27  ;;  %v700_v33 = vmax.f32 %v554_v28, 0.0  ;;  %v557_v34 = vadd.f32 %v6074_v3, %v556_v32 }
 0x138   :  { %769 = vst [vmem:[#allocation2 + $0x148] sm:$0xff] %v702_v30  ;;  %v703_v37 = vmax.f32 %v565_v31, 0.0 }
 0x139   :  { %767 = vst [vmem:[#allocation2 + $0x138] sm:$0xff] %v700_v33  ;;  %v701_v38 = vmax.f32 %v557_v34, 0.0  ;;  %v959_v39 = vld [vmem:[#allocation2 + $0x128] ss:$2 sm:$0xff]  ;;  %v991_v58 = vld [vmem:[#allocation2 + $0x129] ss:$2 sm:$0xff] }
 0x13a   :  { %770 = vst [vmem:[#allocation2 + $0x150] sm:$0xff] %v703_v37  ;;  %v957_v41 = vld [vmem:[#allocation2 + $0x118] ss:$2 sm:$0xff]  ;;  %v925_v42 = vld [vmem:[#allocation2 + $0x117] ss:$2 sm:$0xff] }
 0x13b   :  { %v927_v43 = vld [vmem:[#allocation2 + $0x127] ss:$2 sm:$0xff]  ;;  %768 = vst [vmem:[#allocation2 + $0x140] sm:$0xff] %v701_v38  ;;  %v5457_v44 = vpop.f32.mrb[40].mxu0  ;;  %v1085_v45 = vpack.c.bf16 %v959_v39, %v957_v41  ;;  %2414 = vst [vmem:[#allocation2 + $0x117] sm:$0x1] %v5875_v55 }
 0x13c   :  { %v1084_v46 = vpack.c.bf16 %v927_v43, %v925_v42  ;;  %v578_v47 = vadd.f32 %v5457_v44, %v6074_v3  ;;  %v569_v48 = vpop.f32.mrb[41].mxu0  ;;  %1629 = vmatmul.mubr.bf16.gmra.mrb[92].mxu0 %v1082_v40  ;;  %v989_v57 = vld [vmem:[#allocation2 + $0x119] ss:$2 sm:$0xff]  ;;  %v1021_v60 = vld [vmem:[#allocation2 + $0x11a] ss:$2 sm:$0xff] }
 0x13d   :  { %v570_v49 = vadd.f32 %v6074_v3, %v569_v48  ;;  %v5458_v50 = vpop.f32.mrb[42].mxu0  ;;  %1475 = vmatprep.mubr.bf16.mxu1 %v1085_v45  ;;  %v1086_v1 = vpack.c.bf16 %v991_v58, %v989_v57 }
 0x13e   :  { %v706_v51 = vmax.f32 %v578_v47, 0.0  ;;  %v581_v52 = vadd.f32 %v5458_v50, %v6074_v3  ;;  %v572_v53 = vpop.f32.mrb[43].mxu0 }
 0x13f   :  { %1476 = vmatmul.mubr.bf16.gmra.mrb[32].mxu1 %v1084_v46  ;;  %v704_v54 = vmax.f32 %v570_v49, 0.0  ;;  %v573_v56 = vadd.f32 %v6074_v3, %v572_v53 }
 0x140   :  { %773 = vst [vmem:[#allocation2 + $0x168] sm:$0xff] %v706_v51  ;;  %v707_v59 = vmax.f32 %v581_v52, 0.0  ;;  %v1023_v61 = vld [vmem:[#allocation2 + $0x12a] ss:$2 sm:$0xff] }
 0x141   :  { %771 = vst [vmem:[#allocation2 + $0x158] sm:$0xff] %v704_v54  ;;  %v705_v62 = vmax.f32 %v573_v56, 0.0  ;;  %v1087_v63 = vpack.c.bf16 %v1023_v61, %v1021_v60  ;;  %v963_v0 = vld [vmem:[#allocation2 + $0x148] ss:$2 sm:$0xff]  ;;  %v995_v19 = vld [vmem:[#allocation2 + $0x149] ss:$2 sm:$0xff] }
 0x142   :  { %774 = vst [vmem:[#allocation2 + $0x170] sm:$0xff] %v707_v59  ;;  %v961_v2 = vld [vmem:[#allocation2 + $0x138] ss:$2 sm:$0xff]  ;;  %v929_v4 = vld [vmem:[#allocation2 + $0x137] ss:$2 sm:$0xff] }
 0x143   :  { %v931_v5 = vld [vmem:[#allocation2 + $0x147] ss:$2 sm:$0xff]  ;;  %772 = vst [vmem:[#allocation2 + $0x160] sm:$0xff] %v705_v62  ;;  %v5461_v6 = vpop.f32.mrb[44].mxu0  ;;  %1636 = vmatprep.mubr.bf16.mxu0 %v1087_v63  ;;  %v1089_v7 = vpack.c.bf16 %v963_v0, %v961_v2  ;;  %v1025_v21 = vld [vmem:[#allocation2 + $0x13a] ss:$2 sm:$0xff] }
 0x144   :  { %v1088_v8 = vpack.c.bf16 %v931_v5, %v929_v4  ;;  %v594_v9 = vadd.f32 %v5461_v6, %v6074_v3  ;;  %v585_v10 = vpop.f32.mrb[45].mxu0  ;;  %1637 = vmatmul.mubr.bf16.gmra.mrb[96].mxu0 %v1086_v1  ;;  %v993_v18 = vld [vmem:[#allocation2 + $0x139] ss:$2 sm:$0xff] }
 0x145   :  { %v586_v11 = vadd.f32 %v6074_v3, %v585_v10  ;;  %v5462_v12 = vpop.f32.mrb[46].mxu0  ;;  %1483 = vmatprep.mubr.bf16.mxu1 %v1089_v7  ;;  %v1090_v26 = vpack.c.bf16 %v995_v19, %v993_v18 }
 0x146   :  { %v710_v13 = vmax.f32 %v594_v9, 0.0  ;;  %v597_v14 = vadd.f32 %v5462_v12, %v6074_v3  ;;  %v588_v15 = vpop.f32.mrb[47].mxu0 }
 0x147   :  { %1484 = vmatmul.mubr.bf16.gmra.mrb[36].mxu1 %v1088_v8  ;;  %v708_v16 = vmax.f32 %v586_v11, 0.0  ;;  %v589_v17 = vadd.f32 %v6074_v3, %v588_v15 }
 0x148   :  { %777 = vst [vmem:[#allocation2 + $0x188] sm:$0xff] %v710_v13  ;;  %v711_v20 = vmax.f32 %v597_v14, 0.0  ;;  %v1027_v22 = vld [vmem:[#allocation2 + $0x14a] ss:$2 sm:$0xff] }
 0x149   :  { %775 = vst [vmem:[#allocation2 + $0x178] sm:$0xff] %v708_v16  ;;  %v709_v23 = vmax.f32 %v589_v17, 0.0  ;;  %v1091_v24 = vpack.c.bf16 %v1027_v22, %v1025_v21  ;;  %v967_v25 = vld [vmem:[#allocation2 + $0x168] ss:$2 sm:$0xff]  ;;  %v999_v43 = vld [vmem:[#allocation2 + $0x169] ss:$2 sm:$0xff] }
 0x14a   :  { %778 = vst [vmem:[#allocation2 + $0x190] sm:$0xff] %v711_v20  ;;  %v965_v27 = vld [vmem:[#allocation2 + $0x158] ss:$2 sm:$0xff]  ;;  %v933_v28 = vld [vmem:[#allocation2 + $0x157] ss:$2 sm:$0xff] }
 0x14b   :  { %v935_v29 = vld [vmem:[#allocation2 + $0x167] ss:$2 sm:$0xff]  ;;  %776 = vst [vmem:[#allocation2 + $0x180] sm:$0xff] %v709_v23  ;;  %v5465_v30 = vpop.f32.mrb[48].mxu0  ;;  %1644 = vmatprep.mubr.bf16.mxu0 %v1091_v24  ;;  %v1093_v31 = vpack.c.bf16 %v967_v25, %v965_v27  ;;  %2423 = vst [vmem:[#allocation2 + $0x158] sm:$0x1] %v5875_v55 }
 0x14c   :  { %v1092_v32 = vpack.c.bf16 %v935_v29, %v933_v28  ;;  %v610_v33 = vadd.f32 %v5465_v30, %v6074_v3  ;;  %v601_v34 = vpop.f32.mrb[49].mxu0  ;;  %1645 = vmatmul.mubr.bf16.gmra.mrb[100].mxu0 %v1090_v26  ;;  %v997_v42 = vld [vmem:[#allocation2 + $0x159] ss:$2 sm:$0xff]  ;;  %v1029_v45 = vld [vmem:[#allocation2 + $0x15a] ss:$2 sm:$0xff] }
 0x14d   :  { %v602_v35 = vadd.f32 %v6074_v3, %v601_v34  ;;  %v5466_v36 = vpop.f32.mrb[50].mxu0  ;;  %1491 = vmatprep.mubr.bf16.mxu1 %v1093_v31  ;;  %v1094_v50 = vpack.c.bf16 %v999_v43, %v997_v42 }
 0x14e   :  { %v714_v37 = vmax.f32 %v610_v33, 0.0  ;;  %v613_v38 = vadd.f32 %v5466_v36, %v6074_v3  ;;  %v604_v39 = vpop.f32.mrb[51].mxu0  ;;  %v5638_v36 = vld [vmem:[#allocation4 + $0x158] sm:$0xff]  }
 0x14f   :  { %1492 = vmatmul.mubr.bf16.gmra.mrb[40].mxu1 %v1092_v32  ;;  %v712_v40 = vmax.f32 %v602_v35, 0.0  ;;  %v605_v41 = vadd.f32 %v6074_v3, %v604_v39  ;;  %5031 = vmatprep.subr.bf16.mxu1 %v5638_v36 }
 0x150   :  { %781 = vst [vmem:[#allocation2 + $0x1a8] sm:$0xff] %v714_v37  ;;  %v715_v44 = vmax.f32 %v613_v38, 0.0  ;;  %v1031_v46 = vld [vmem:[#allocation2 + $0x16a] ss:$2 sm:$0xff] }
 0x151   :  { %779 = vst [vmem:[#allocation2 + $0x198] sm:$0xff] %v712_v40  ;;  %v713_v47 = vmax.f32 %v605_v41, 0.0  ;;  %v1095_v48 = vpack.c.bf16 %v1031_v46, %v1029_v45  ;;  %v971_v49 = vld [vmem:[#allocation2 + $0x188] ss:$2 sm:$0xff]  ;;  %v1003_v5 = vld [vmem:[#allocation2 + $0x189] ss:$2 sm:$0xff] }
 0x152   :  { %782 = vst [vmem:[#allocation2 + $0x1b0] sm:$0xff] %v715_v44  ;;  %v969_v51 = vld [vmem:[#allocation2 + $0x178] ss:$2 sm:$0xff]  ;;  %v937_v52 = vld [vmem:[#allocation2 + $0x177] ss:$2 sm:$0xff] }
 0x153   :  { %v939_v53 = vld [vmem:[#allocation2 + $0x187] ss:$2 sm:$0xff]  ;;  %780 = vst [vmem:[#allocation2 + $0x1a0] sm:$0xff] %v713_v47  ;;  %v5469_v54 = vpop.f32.mrb[52].mxu0  ;;  %1652 = vmatprep.mubr.bf16.mxu0 %v1095_v48  ;;  %v1097_v56 = vpack.c.bf16 %v971_v49, %v969_v51  ;;  %v1033_v7 = vld [vmem:[#allocation2 + $0x17a] ss:$2 sm:$0xff] }
 0x154   :  { %v1096_v57 = vpack.c.bf16 %v939_v53, %v937_v52  ;;  %v626_v58 = vadd.f32 %v5469_v54, %v6074_v3  ;;  %v617_v59 = vpop.f32.mrb[53].mxu0  ;;  %1653 = vmatmul.mubr.bf16.gmra.mrb[104].mxu0 %v1094_v50  ;;  %v1001_v4 = vld [vmem:[#allocation2 + $0x179] ss:$2 sm:$0xff] }
 0x155   :  { %v618_v60 = vadd.f32 %v6074_v3, %v617_v59  ;;  %v5470_v61 = vpop.f32.mrb[54].mxu0  ;;  %1499 = vmatprep.mubr.bf16.mxu1 %v1097_v56  ;;  %v1098_v12 = vpack.c.bf16 %v1003_v5, %v1001_v4  ;;  %v5639_v44 = vld [vmem:[#allocation4 + $0x118] sm:$0xff]   ;;  %v5640_v49 = vld [vmem:[#allocation4 + $0x160] sm:$0xff]  }
 0x156   :  { %v718_v62 = vmax.f32 %v626_v58, 0.0  ;;  %v629_v63 = vadd.f32 %v5470_v61, %v6074_v3  ;;  %v620_v0 = vpop.f32.mrb[55].mxu0  ;;  %5032 = vmatpush3.bf16.msra.mxu1 %v5639_v44  ;;  %v5641_v53 = vld [vmem:[#allocation4 + $0x120] sm:$0xff]  }
 0x157   :  { %1500 = vmatmul.mubr.bf16.gmra.mrb[44].mxu1 %v1096_v57  ;;  %v716_v1 = vmax.f32 %v618_v60, 0.0  ;;  %v621_v2 = vadd.f32 %v6074_v3, %v620_v0  ;;  %5033 = vmatprep.subr.bf16.mxu1 %v5640_v49 }
 0x158   :  { %785 = vst [vmem:[#allocation2 + $0x1c8] sm:$0xff] %v718_v62  ;;  %v719_v6 = vmax.f32 %v629_v63, 0.0  ;;  %v1035_v8 = vld [vmem:[#allocation2 + $0x18a] ss:$2 sm:$0xff] }
 0x159   :  { %783 = vst [vmem:[#allocation2 + $0x1b8] sm:$0xff] %v716_v1  ;;  %v717_v9 = vmax.f32 %v621_v2, 0.0  ;;  %v1099_v10 = vpack.c.bf16 %v1035_v8, %v1033_v7  ;;  %v975_v11 = vld [vmem:[#allocation2 + $0x1a8] ss:$2 sm:$0xff]  ;;  %v1007_v29 = vld [vmem:[#allocation2 + $0x1a9] ss:$2 sm:$0xff] }
 0x15a   :  { %786 = vst [vmem:[#allocation2 + $0x1d0] sm:$0xff] %v719_v6  ;;  %v973_v13 = vld [vmem:[#allocation2 + $0x198] ss:$2 sm:$0xff]  ;;  %v941_v14 = vld [vmem:[#allocation2 + $0x197] ss:$2 sm:$0xff]  ;;  %5034 = vmatpush3.bf16.msra.mxu1 %v5641_v53  ;;  %v5642_v1 = vld [vmem:[#allocation4 + $0x168] sm:$0xff]  }
 0x15b   :  { %v943_v15 = vld [vmem:[#allocation2 + $0x1a7] ss:$2 sm:$0xff]  ;;  %784 = vst [vmem:[#allocation2 + $0x1c0] sm:$0xff] %v717_v9  ;;  %v5473_v16 = vpop.f32.mrb[56].mxu0  ;;  %1660 = vmatprep.mubr.bf16.mxu0 %v1099_v10  ;;  %v1101_v17 = vpack.c.bf16 %v975_v11, %v973_v13  ;;  %v1037_v31 = vld [vmem:[#allocation2 + $0x19a] ss:$2 sm:$0xff]  ;;  %5035 = vmatprep.subr.bf16.mxu1 %v5642_v1 }
 0x15c   :  { %v1100_v18 = vpack.c.bf16 %v943_v15, %v941_v14  ;;  %v642_v19 = vadd.f32 %v5473_v16, %v6074_v3  ;;  %v633_v20 = vpop.f32.mrb[57].mxu0  ;;  %1661 = vmatmul.mubr.bf16.gmra.mrb[108].mxu0 %v1098_v12  ;;  %v1005_v28 = vld [vmem:[#allocation2 + $0x199] ss:$2 sm:$0xff]  ;;  %v5643_v8 = vld [vmem:[#allocation4 + $0x128] sm:$0xff]   ;;  %v5644_v9 = vld [vmem:[#allocation4 + $0x170] sm:$0xff]  }
 0x15d   :  { %v634_v21 = vadd.f32 %v6074_v3, %v633_v20  ;;  %v5474_v22 = vpop.f32.mrb[58].mxu0  ;;  %1507 = vmatprep.mubr.bf16.mxu1 %v1101_v17  ;;  %v1102_v37 = vpack.c.bf16 %v1007_v29, %v1005_v28  ;;  %v5645_v10 = vld [vmem:[#allocation4 + $0x130] sm:$0xff]  }
 0x15e   :  { %v722_v23 = vmax.f32 %v642_v19, 0.0  ;;  %v645_v24 = vadd.f32 %v5474_v22, %v6074_v3  ;;  %v636_v25 = vpop.f32.mrb[59].mxu0  ;;  %5036 = vmatpush3.bf16.msra.mxu1 %v5643_v8 }
 0x15f   :  { %1508 = vmatmul.mubr.bf16.gmra.mrb[48].mxu1 %v1100_v18  ;;  %v720_v26 = vmax.f32 %v634_v21, 0.0  ;;  %v637_v27 = vadd.f32 %v6074_v3, %v636_v25  ;;  %5037 = vmatprep.subr.bf16.mxu1 %v5644_v9  ;;  %v5646_v25 = vld [vmem:[#allocation4 + $0x178] sm:$0xff]  }
 0x160   :  { %789 = vst [vmem:[#allocation2 + $0x1e8] sm:$0xff] %v722_v23  ;;  %v723_v30 = vmax.f32 %v645_v24, 0.0  ;;  %v1039_v32 = vld [vmem:[#allocation2 + $0x1aa] ss:$2 sm:$0xff] }
 0x161   :  { %787 = vst [vmem:[#allocation2 + $0x1d8] sm:$0xff] %v720_v26  ;;  %v721_v33 = vmax.f32 %v637_v27, 0.0  ;;  %v1103_v34 = vpack.c.bf16 %v1039_v32, %v1037_v31  ;;  %v979_v35 = vld [vmem:[#allocation2 + $0x1c8] ss:$2 sm:$0xff]  ;;  %v1011_v58 = vld [vmem:[#allocation2 + $0x1c9] ss:$2 sm:$0xff] }
 0x162   :  { %790 = vst [vmem:[#allocation2 + $0x1f0] sm:$0xff] %v723_v30  ;;  %v977_v38 = vld [vmem:[#allocation2 + $0x1b8] ss:$2 sm:$0xff]  ;;  %v945_v39 = vld [vmem:[#allocation2 + $0x1b7] ss:$2 sm:$0xff]  ;;  %5038 = vmatpush3.bf16.msra.mxu1 %v5645_v10 }
 0x163   :  { %v947_v40 = vld [vmem:[#allocation2 + $0x1c7] ss:$2 sm:$0xff]  ;;  %788 = vst [vmem:[#allocation2 + $0x1e0] sm:$0xff] %v721_v33  ;;  %v5477_v41 = vpop.f32.mrb[60].mxu0  ;;  %1668 = vmatprep.mubr.bf16.mxu0 %v1103_v34  ;;  %v1105_v42 = vpack.c.bf16 %v979_v35, %v977_v38  ;;  %v1041_v60 = vld [vmem:[#allocation2 + $0x1ba] ss:$2 sm:$0xff]  ;;  %5039 = vmatprep.subr.bf16.mxu1 %v5646_v25 }
 0x164   :  { %v1104_v43 = vpack.c.bf16 %v947_v40, %v945_v39  ;;  %v658_v45 = vadd.f32 %v5477_v41, %v6074_v3  ;;  %v649_v46 = vpop.f32.mrb[61].mxu0  ;;  %1669 = vmatmul.mubr.bf16.gmra.mrb[112].mxu0 %v1102_v37  ;;  %v1009_v57 = vld [vmem:[#allocation2 + $0x1b9] ss:$2 sm:$0xff]  ;;  %v6147_v38 = vld [vmem:[%s6553_s4] ss:$0 sm:$0xff] }
 0x165   :  { %v650_v47 = vadd.f32 %v6074_v3, %v649_v46  ;;  %v5478_v48 = vpop.f32.mrb[62].mxu0  ;;  %1515 = vmatprep.mubr.bf16.mxu1 %v1105_v42  ;;  %v1106_v2 = vpack.c.bf16 %v1011_v58, %v1009_v57  ;;  %v5647_v27 = vld [vmem:[#allocation4 + $0x138] sm:$0xff]   ;;  %v5648_v31 = vld [vmem:[#allocation4 + $0x1c0] sm:$0xff]  }
 0x166   :  { %v726_v50 = vmax.f32 %v658_v45, 0.0  ;;  %v661_v51 = vadd.f32 %v5478_v48, %v6074_v3  ;;  %v652_v52 = vpop.f32.mrb[63].mxu0  ;;  %5040 = vmatpush3.bf16.msra.mxu1 %v5647_v27 }
 0x167   :  { %1516 = vmatmul.mubr.bf16.gmra.mrb[52].mxu1 %v1104_v43  ;;  %v724_v54 = vmax.f32 %v650_v47, 0.0  ;;  %v653_v56 = vadd.f32 %v6074_v3, %v652_v52  ;;  %5089 = vmatprep.subr.bf16.mxu1 %v5648_v31 }
 0x168   :  { %793 = vst [vmem:[#allocation2 + $0x208] sm:$0xff] %v726_v50  ;;  %v727_v59 = vmax.f32 %v661_v51, 0.0  ;;  %v1043_v61 = vld [vmem:[#allocation2 + $0x1ca] ss:$2 sm:$0xff] }
 0x169   :  { %791 = vst [vmem:[#allocation2 + $0x1f8] sm:$0xff] %v724_v54  ;;  %v725_v62 = vmax.f32 %v653_v56, 0.0  ;;  %v1107_v63 = vpack.c.bf16 %v1043_v61, %v1041_v60  ;;  %v983_v0 = vld [vmem:[#allocation2 + $0x1e8] ss:$2 sm:$0xff]  ;;  %v1015_v12 = vld [vmem:[#allocation2 + $0x1e9] ss:$2 sm:$0xff] }
 0x16a   :  { %794 = vst [vmem:[#allocation2 + $0x210] sm:$0xff] %v727_v59  ;;  %v981_v4 = vld [vmem:[#allocation2 + $0x1d8] ss:$2 sm:$0xff]  ;;  %v949_v5 = vld [vmem:[#allocation2 + $0x1d7] ss:$2 sm:$0xff] }
 0x16b   :  { %v951_v6 = vld [vmem:[#allocation2 + $0x1e7] ss:$2 sm:$0xff]  ;;  %792 = vst [vmem:[#allocation2 + $0x200] sm:$0xff] %v725_v62  ;;  %1676 = vmatprep.mubr.bf16.mxu0 %v1107_v63  ;;  %v1109_v3 = vpack.c.bf16 %v983_v0, %v981_v4  ;;  %v1045_v13 = vld [vmem:[#allocation2 + $0x1da] ss:$2 sm:$0xff] }
 0x16c   :  { %v1108_v7 = vpack.c.bf16 %v951_v6, %v949_v5  ;;  %1677 = vmatmul.mubr.bf16.gmra.mrb[116].mxu0 %v1106_v2  ;;  %v1013_v11 = vld [vmem:[#allocation2 + $0x1d9] ss:$2 sm:$0xff] }
 0x16d   :  { %1523 = vmatprep.mubr.bf16.mxu1 %v1109_v3  ;;  %v1110_v18 = vpack.c.bf16 %v1015_v12, %v1013_v11 }
 0x16f   :  { %1524 = vmatmul.mubr.bf16.gmra.mrb[56].mxu1 %v1108_v7 }
 0x170   :  { %v1047_v14 = vld [vmem:[#allocation2 + $0x1ea] ss:$2 sm:$0xff] }
 0x171   :  { %v1111_v15 = vpack.c.bf16 %v1047_v14, %v1045_v13  ;;  %v987_v16 = vld [vmem:[#allocation2 + $0x208] ss:$2 sm:$0xff]  ;;  %v1019_v29 = vld [vmem:[#allocation2 + $0x209] ss:$2 sm:$0xff] }
 0x172   :  { %v1051_v17 = vld [vmem:[#allocation2 + $0x20a] ss:$2 sm:$0xff]  ;;  %v1049_v20 = vld [vmem:[#allocation2 + $0x1fa] ss:$2 sm:$0xff]  ;;  %v953_v21 = vld [vmem:[#allocation2 + $0x1f7] ss:$2 sm:$0xff] }
 0x173   :  { %v985_v19 = vld [vmem:[#allocation2 + $0x1f8] ss:$2 sm:$0xff]  ;;  %1684 = vmatprep.mubr.bf16.mxu0 %v1111_v15  ;;  %v1115_v23 = vpack.c.bf16 %v1051_v17, %v1049_v20  ;;  %v955_v24 = vld [vmem:[#allocation2 + $0x207] ss:$2 sm:$0xff] }
 0x174   :  { %v1113_v22 = vpack.c.bf16 %v987_v16, %v985_v19  ;;  %1685 = vmatmul.mubr.bf16.gmra.mrb[120].mxu0 %v1110_v18  ;;  %v1112_v26 = vpack.c.bf16 %v955_v24, %v953_v21  ;;  %v1017_v28 = vld [vmem:[#allocation2 + $0x1f9] ss:$2 sm:$0xff] }
 0x175   :  { %1692 = vmatprep.mubr.bf16.mxu0 %v1115_v23  ;;  %v1114_v30 = vpack.c.bf16 %v1019_v29, %v1017_v28 }
 0x176   :  { %1531 = vmatprep.mubr.bf16.mxu1 %v1113_v22 }
 0x177   :  { %1532 = vmatmul.mubr.bf16.gmra.mrb[60].mxu1 %v1112_v26 }
 0x17c   :  { %1693 = vmatmul.mubr.bf16.gmra.mrb[124].mxu0 %v1114_v30 }
 0x1d1   :  { %v4817_v32 = vpop.f32.mrb[0].mxu1 }
 0x1d2   :  { %v4818_v33 = vpop.f32.mrb[1].mxu1 }
 0x1d3   :  { %v4819_v34 = vadd.f32 %v4818_v33, %v4817_v32  ;;  %v4820_v35 = vpop.f32.mrb[2].mxu1 }
 0x1d4   :  { %v4821_v36 = vpop.f32.mrb[3].mxu1 }
 0x1d5   :  { %v4822_v37 = vadd.f32 %v4821_v36, %v4820_v35  ;;  %v1414_v41 = vadd.f32 %v4819_v34, %v6147_v38 }
 0x1d7   :  { %v4929_v39 = vpop.f32.mrb[64].mxu0  ;;  %v1417_v47 = vadd.f32 %v4822_v37, %v6147_v38 }
 0x1d8   :  { %v4930_v40 = vpop.f32.mrb[65].mxu0 }
 0x1d9   :  { %v4931_v42 = vadd.f32 %v4930_v40, %v4929_v39  ;;  %v4823_v43 = vpop.f32.mrb[4].mxu1  ;;  %v4932_v44 = vpop.f32.mrb[66].mxu0 }
 0x1da   :  { %v4824_v45 = vpop.f32.mrb[5].mxu1  ;;  %v4933_v46 = vpop.f32.mrb[67].mxu0 }
 0x1db   :  { %v1575_v48 = vadd.f32 %v4931_v42, %v1414_v41  ;;  %v4825_v49 = vadd.f32 %v4824_v45, %v4823_v43  ;;  %v4934_v50 = vadd.f32 %v4933_v46, %v4932_v44  ;;  %v4826_v51 = vpop.f32.mrb[6].mxu1  ;;  %v5649_v43 = vld [vmem:[#allocation4 + $0x180] sm:$0xff]   ;;  %v5650_v46 = vld [vmem:[#allocation4 + $0x1c8] sm:$0xff]  }
 0x1dc   :  { %v4827_v52 = vpop.f32.mrb[7].mxu1 }
 0x1dd   :  { %v1701_v53 = vmax.f32 %v1575_v48, 0.0  ;;  %v1578_v54 = vadd.f32 %v4934_v50, %v1417_v47  ;;  %v4828_v56 = vadd.f32 %v4827_v52, %v4826_v51  ;;  %v1422_v60 = vadd.f32 %v4825_v49, %v6147_v38 }
 0x1df   :  { %1734 = vst [vmem:[#allocation3 + $0x8] sm:$0xff] %v1701_v53  ;;  %v1702_v57 = vmax.f32 %v1578_v54, 0.0  ;;  %v4935_v58 = vpop.f32.mrb[68].mxu0  ;;  %v1425_v2 = vadd.f32 %v4828_v56, %v6147_v38 }
 0x1e0   :  { %v4936_v59 = vpop.f32.mrb[69].mxu0 }
 0x1e1   :  { %1735 = vst [vmem:[#allocation3 + $0x10] sm:$0xff] %v1702_v57  ;;  %v4937_v61 = vadd.f32 %v4936_v59, %v4935_v58  ;;  %v4829_v62 = vpop.f32.mrb[8].mxu1  ;;  %v4938_v63 = vpop.f32.mrb[70].mxu0  ;;  %v5651_v57 = vld [vmem:[#allocation4 + $0x188] sm:$0xff]   ;;  %v5652_v58 = vld [vmem:[#allocation4 + $0x1d0] sm:$0xff]  }
 0x1e2   :  { %v4830_v0 = vpop.f32.mrb[9].mxu1  ;;  %v4939_v1 = vpop.f32.mrb[71].mxu0 }
 0x1e3   :  { %v1583_v4 = vadd.f32 %v4937_v61, %v1422_v60  ;;  %v4831_v5 = vadd.f32 %v4830_v0, %v4829_v62  ;;  %v4940_v6 = vadd.f32 %v4939_v1, %v4938_v63  ;;  %v4832_v3 = vpop.f32.mrb[10].mxu1 }
 0x1e4   :  { %v4833_v7 = vpop.f32.mrb[11].mxu1 }
 0x1e5   :  { %v1703_v8 = vmax.f32 %v1583_v4, 0.0  ;;  %v1586_v9 = vadd.f32 %v4940_v6, %v1425_v2  ;;  %v4834_v10 = vadd.f32 %v4833_v7, %v4832_v3  ;;  %v1430_v15 = vadd.f32 %v4831_v5, %v6147_v38  ;;  %v5653_v5 = vld [vmem:[#allocation4 + $0x190] sm:$0xff]   ;;  %v5654_v7 = vld [vmem:[#allocation4 + $0x1d8] sm:$0xff]  }
 0x1e7   :  { %1736 = vst [vmem:[#allocation3 + $0x18] sm:$0xff] %v1703_v8  ;;  %v1704_v11 = vmax.f32 %v1586_v9, 0.0  ;;  %v4941_v12 = vpop.f32.mrb[72].mxu0  ;;  %v1433_v21 = vadd.f32 %v4834_v10, %v6147_v38 }
 0x1e8   :  { %v4942_v13 = vpop.f32.mrb[73].mxu0  ;;  %v1770_v14 = vld [vmem:[#allocation3 + $0x7] ss:$2 sm:$0xff]  ;;  %v1786_v32 = vld [vmem:[#allocation3 + $0x8] ss:$2 sm:$0xff] }
 0x1e9   :  { %1737 = vst [vmem:[#allocation3 + $0x20] sm:$0xff] %v1704_v11  ;;  %v4943_v16 = vadd.f32 %v4942_v13, %v4941_v12  ;;  %v4835_v17 = vpop.f32.mrb[12].mxu1  ;;  %v4944_v18 = vpop.f32.mrb[74].mxu0  ;;  %2875 = vst [vmem:[#allocation3 + $0x7] sm:$0x1] %v5875_v55 }
 0x1ea   :  { %v4836_v19 = vpop.f32.mrb[13].mxu1  ;;  %v4945_v20 = vpop.f32.mrb[75].mxu0 }
 0x1eb   :  { %v1591_v22 = vadd.f32 %v4943_v16, %v1430_v15  ;;  %v4837_v23 = vadd.f32 %v4836_v19, %v4835_v17  ;;  %v4946_v24 = vadd.f32 %v4945_v20, %v4944_v18  ;;  %v4838_v25 = vpop.f32.mrb[14].mxu1  ;;  %v5655_v17 = vld [vmem:[#allocation4 + $0x198] sm:$0xff]   ;;  %v5656_v18 = vld [vmem:[#allocation4 + $0x1e0] sm:$0xff]  }
 0x1ec   :  { %v4839_v26 = vpop.f32.mrb[15].mxu1 }
 0x1ed   :  { %v1705_v27 = vmax.f32 %v1591_v22, 0.0  ;;  %v1594_v28 = vadd.f32 %v4946_v24, %v1433_v21  ;;  %v4840_v29 = vadd.f32 %v4839_v26, %v4838_v25  ;;  %v1438_v36 = vadd.f32 %v4837_v23, %v6147_v38 }
 0x1ef   :  { %1738 = vst [vmem:[#allocation3 + $0x28] sm:$0xff] %v1705_v27  ;;  %v1706_v30 = vmax.f32 %v1594_v28, 0.0  ;;  %v4947_v31 = vpop.f32.mrb[76].mxu0  ;;  %v1441_v47 = vadd.f32 %v4840_v29, %v6147_v38 }
 0x1f0   :  { %v4948_v33 = vpop.f32.mrb[77].mxu0  ;;  %v1788_v34 = vld [vmem:[#allocation3 + $0x18] ss:$2 sm:$0xff]  ;;  %v1772_v35 = vld [vmem:[#allocation3 + $0x17] ss:$2 sm:$0xff] }
 0x1f1   :  { %1739 = vst [vmem:[#allocation3 + $0x30] sm:$0xff] %v1706_v30  ;;  %v4949_v37 = vadd.f32 %v4948_v33, %v4947_v31  ;;  %v4841_v39 = vpop.f32.mrb[16].mxu1  ;;  %v4950_v40 = vpop.f32.mrb[78].mxu0  ;;  %v1898_v41 = vpack.c.bf16 %v1788_v34, %v1786_v32  ;;  %v1897_v42 = vpack.c.bf16 %v1772_v35, %v1770_v14  ;;  %v5657_v31 = vld [vmem:[#allocation4 + $0x1a0] sm:$0xff]   ;;  %v5658_v34 = vld [vmem:[#allocation4 + $0x1e8] sm:$0xff]  }
 0x1f2   :  { %v4842_v44 = vpop.f32.mrb[17].mxu1  ;;  %v4951_v45 = vpop.f32.mrb[79].mxu0 }
 0x1f3   :  { %v1599_v48 = vadd.f32 %v4949_v37, %v1438_v36  ;;  %v4843_v49 = vadd.f32 %v4842_v44, %v4841_v39  ;;  %v4952_v50 = vadd.f32 %v4951_v45, %v4950_v40  ;;  %v4844_v51 = vpop.f32.mrb[18].mxu1  ;;  %2226 = vmatprep.mubr.bf16.mxu1 %v1898_v41  ;;  %v5659_v45 = vld [vmem:[#allocation4 + $0x1a8] sm:$0xff]  }
 0x1f4   :  { %v4845_v52 = vpop.f32.mrb[19].mxu1  ;;  %2227 = vmatmul.mubr.bf16.vlgmr.msra.gmra.mrb[64].mxu1 %v1897_v42 }
 0x1f5   :  { %v1707_v53 = vmax.f32 %v1599_v48, 0.0  ;;  %v1602_v54 = vadd.f32 %v4952_v50, %v1441_v47  ;;  %v4846_v56 = vadd.f32 %v4845_v52, %v4844_v51  ;;  %5090 = vmatpush3.bf16.msra.mxu1 %v5649_v43  ;;  %v1446_v0 = vadd.f32 %v4843_v49, %v6147_v38 }
 0x1f6   :  { %5091 = vmatprep.subr.bf16.mxu1 %v5650_v46  ;;  %v6158_v63 = vld [vmem:[#allocation3 + $0x1a] ss:$2 sm:$0xff]  ;;  %v5660_v46 = vld [vmem:[#allocation4 + $0x1f0] sm:$0xff]  }
 0x1f7   :  { %1740 = vst [vmem:[#allocation3 + $0x38] sm:$0xff] %v1707_v53  ;;  %v1708_v59 = vmax.f32 %v1602_v54, 0.0  ;;  %v4953_v60 = vpop.f32.mrb[80].mxu0  ;;  %v1449_v8 = vadd.f32 %v4846_v56, %v6147_v38  ;;  %v5661_v54 = vld [vmem:[#allocation4 + $0x1b0] sm:$0xff]  }
 0x1f8   :  { %v4954_v61 = vpop.f32.mrb[81].mxu0  ;;  %v1790_v62 = vld [vmem:[#allocation3 + $0x28] ss:$2 sm:$0xff]  ;;  %v1774_v21 = vld [vmem:[#allocation3 + $0x27] ss:$2 sm:$0xff] }
 0x1f9   :  { %1741 = vst [vmem:[#allocation3 + $0x40] sm:$0xff] %v1708_v59  ;;  %v4955_v1 = vadd.f32 %v4954_v61, %v4953_v60  ;;  %v4847_v2 = vpop.f32.mrb[20].mxu1  ;;  %v4956_v4 = vpop.f32.mrb[82].mxu0  ;;  %5092 = vmatpush3.bf16.msra.mxu1 %v5651_v57  ;;  %2880 = vst [vmem:[#allocation3 + $0x28] sm:$0x1] %v5875_v55 }
 0x1fa   :  { %v4848_v6 = vpop.f32.mrb[21].mxu1  ;;  %v4957_v3 = vpop.f32.mrb[83].mxu0  ;;  %5093 = vmatprep.subr.bf16.mxu1 %v5652_v58  ;;  %v5662_v58 = vld [vmem:[#allocation4 + $0x1f8] sm:$0xff]  }
 0x1fb   :  { %v1607_v9 = vadd.f32 %v4955_v1, %v1446_v0  ;;  %v4849_v10 = vadd.f32 %v4848_v6, %v4847_v2  ;;  %v4958_v11 = vadd.f32 %v4957_v3, %v4956_v4  ;;  %v4850_v12 = vpop.f32.mrb[22].mxu1  ;;  %v5663_v6 = vld [vmem:[#allocation4 + $0x1b8] sm:$0xff]  }
 0x1fc   :  { %v4851_v13 = vpop.f32.mrb[23].mxu1 }
 0x1fd   :  { %v1709_v14 = vmax.f32 %v1607_v9, 0.0  ;;  %v1610_v15 = vadd.f32 %v4958_v11, %v1449_v8  ;;  %v4852_v16 = vadd.f32 %v4851_v13, %v4850_v12  ;;  %5094 = vmatpush3.bf16.msra.mxu1 %v5653_v5  ;;  %v1454_v25 = vadd.f32 %v4849_v10, %v6147_v38 }
 0x1fe   :  { %5095 = vmatprep.subr.bf16.mxu1 %v5654_v7 }
 0x1ff   :  { %1742 = vst [vmem:[#allocation3 + $0x48] sm:$0xff] %v1709_v14  ;;  %v1710_v19 = vmax.f32 %v1610_v15, 0.0  ;;  %v4959_v20 = vpop.f32.mrb[84].mxu0  ;;  %v1457_v35 = vadd.f32 %v4852_v16, %v6147_v38 }
 0x200   :  { %v4960_v22 = vpop.f32.mrb[85].mxu0  ;;  %v1792_v23 = vld [vmem:[#allocation3 + $0x38] ss:$2 sm:$0xff]  ;;  %v1776_v24 = vld [vmem:[#allocation3 + $0x37] ss:$2 sm:$0xff] }
 0x201   :  { %1743 = vst [vmem:[#allocation3 + $0x50] sm:$0xff] %v1710_v19  ;;  %v4961_v26 = vadd.f32 %v4960_v22, %v4959_v20  ;;  %v4853_v27 = vpop.f32.mrb[24].mxu1  ;;  %v4962_v28 = vpop.f32.mrb[86].mxu0  ;;  %v1902_v29 = vpack.c.bf16 %v1792_v23, %v1790_v62  ;;  %v1901_v30 = vpack.c.bf16 %v1776_v24, %v1774_v21  ;;  %5096 = vmatpush3.bf16.msra.mxu1 %v5655_v17 }
 0x202   :  { %v4854_v32 = vpop.f32.mrb[25].mxu1  ;;  %v4963_v33 = vpop.f32.mrb[87].mxu0  ;;  %5097 = vmatprep.subr.bf16.mxu1 %v5656_v18 }
 0x203   :  { %v1615_v36 = vadd.f32 %v4961_v26, %v1454_v25  ;;  %v4855_v37 = vadd.f32 %v4854_v32, %v4853_v27  ;;  %v4964_v39 = vadd.f32 %v4963_v33, %v4962_v28  ;;  %v4856_v40 = vpop.f32.mrb[26].mxu1  ;;  %2234 = vmatprep.mubr.bf16.mxu1 %v1902_v29 }
 0x204   :  { %v4857_v41 = vpop.f32.mrb[27].mxu1  ;;  %2235 = vmatmul.mubr.bf16.gmra.mrb[68].mxu1 %v1901_v30 }
 0x205   :  { %v1711_v42 = vmax.f32 %v1615_v36, 0.0  ;;  %v1618_v43 = vadd.f32 %v4964_v39, %v1457_v35  ;;  %v4858_v44 = vadd.f32 %v4857_v41, %v4856_v40  ;;  %5098 = vmatpush3.bf16.msra.mxu1 %v5657_v31  ;;  %v1462_v50 = vadd.f32 %v4855_v37, %v6147_v38 }
 0x206   :  { %5099 = vmatprep.subr.bf16.mxu1 %v5658_v34 }
 0x207   :  { %1744 = vst [vmem:[#allocation3 + $0x58] sm:$0xff] %v1711_v42  ;;  %v1712_v47 = vmax.f32 %v1618_v43, 0.0  ;;  %v4965_v48 = vpop.f32.mrb[88].mxu0  ;;  %v1465_v59 = vadd.f32 %v4858_v44, %v6147_v38 }
 0x208   :  { %v4966_v49 = vpop.f32.mrb[89].mxu0  ;;  %v1794_v8 = vld [vmem:[#allocation3 + $0x48] ss:$2 sm:$0xff]  ;;  %v1778_v9 = vld [vmem:[#allocation3 + $0x47] ss:$2 sm:$0xff] }
 0x209   :  { %1745 = vst [vmem:[#allocation3 + $0x60] sm:$0xff] %v1712_v47  ;;  %v4967_v51 = vadd.f32 %v4966_v49, %v4965_v48  ;;  %v4968_v53 = vpop.f32.mrb[90].mxu0  ;;  %5100 = vmatpush3.bf16.msra.mxu1 %v5659_v45 }
 0x20a   :  { %v4859_v52 = vpop.f32.mrb[28].mxu1  ;;  %v4969_v57 = vpop.f32.mrb[91].mxu0  ;;  %5101 = vmatprep.subr.bf16.mxu1 %v5660_v46 }
 0x20b   :  { %v4860_v56 = vpop.f32.mrb[29].mxu1  ;;  %v1623_v60 = vadd.f32 %v4967_v51, %v1462_v50  ;;  %v4970_v62 = vadd.f32 %v4969_v57, %v4968_v53 }
 0x20c   :  { %v4861_v61 = vadd.f32 %v4860_v56, %v4859_v52  ;;  %v4862_v0 = vpop.f32.mrb[30].mxu1 }
 0x20d   :  { %v4863_v1 = vpop.f32.mrb[31].mxu1  ;;  %v1713_v2 = vmax.f32 %v1623_v60, 0.0  ;;  %v1626_v4 = vadd.f32 %v4970_v62, %v1465_v59  ;;  %5102 = vmatpush3.bf16.msra.mxu1 %v5661_v54 }
 0x20e   :  { %v4864_v5 = vadd.f32 %v4863_v1, %v4862_v0  ;;  %5103 = vmatprep.subr.bf16.mxu1 %v5662_v58  ;;  %v1470_v13 = vadd.f32 %v4861_v61, %v6147_v38 }
 0x20f   :  { %1746 = vst [vmem:[#allocation3 + $0x68] sm:$0xff] %v1713_v2  ;;  %v1714_v3 = vmax.f32 %v1626_v4, 0.0  ;;  %v4971_v7 = vpop.f32.mrb[92].mxu0 }
 0x210   :  { %v4972_v10 = vpop.f32.mrb[93].mxu0  ;;  %v1796_v11 = vld [vmem:[#allocation3 + $0x58] ss:$2 sm:$0xff]  ;;  %v1780_v12 = vld [vmem:[#allocation3 + $0x57] ss:$2 sm:$0xff]  ;;  %v1473_v21 = vadd.f32 %v4864_v5, %v6147_v38 }
 0x211   :  { %1747 = vst [vmem:[#allocation3 + $0x70] sm:$0xff] %v1714_v3  ;;  %v4973_v14 = vadd.f32 %v4972_v10, %v4971_v7  ;;  %v4974_v16 = vpop.f32.mrb[94].mxu0  ;;  %v1906_v17 = vpack.c.bf16 %v1796_v11, %v1794_v8  ;;  %v1905_v18 = vpack.c.bf16 %v1780_v12, %v1778_v9  ;;  %5104 = vmatpush3.bf16.msra.mxu1 %v5663_v6 }
 0x212   :  { %v4865_v15 = vpop.f32.mrb[32].mxu1  ;;  %v4975_v20 = vpop.f32.mrb[95].mxu0 }
 0x213   :  { %v4866_v19 = vpop.f32.mrb[33].mxu1  ;;  %v1631_v22 = vadd.f32 %v4973_v14, %v1470_v13  ;;  %v4976_v24 = vadd.f32 %v4975_v20, %v4974_v16  ;;  %2242 = vmatprep.mubr.bf16.mxu1 %v1906_v17 }
 0x214   :  { %v4867_v23 = vadd.f32 %v4866_v19, %v4865_v15  ;;  %v4868_v25 = vpop.f32.mrb[34].mxu1  ;;  %2243 = vmatmul.mubr.bf16.gmra.mrb[72].mxu1 %v1905_v18 }
 0x215   :  { %v4869_v26 = vpop.f32.mrb[35].mxu1  ;;  %v1715_v27 = vmax.f32 %v1631_v22, 0.0  ;;  %v1634_v28 = vadd.f32 %v4976_v24, %v1473_v21 }
 0x216   :  { %v4870_v29 = vadd.f32 %v4869_v26, %v4868_v25  ;;  %v1478_v33 = vadd.f32 %v4867_v23, %v6147_v38 }
 0x217   :  { %1748 = vst [vmem:[#allocation3 + $0x78] sm:$0xff] %v1715_v27  ;;  %v1716_v30 = vmax.f32 %v1634_v28, 0.0  ;;  %v4977_v31 = vpop.f32.mrb[96].mxu0 }
 0x218   :  { %v4978_v32 = vpop.f32.mrb[97].mxu0  ;;  %v1481_v40 = vadd.f32 %v4870_v29, %v6147_v38  ;;  %v1798_v51 = vld [vmem:[#allocation3 + $0x68] ss:$2 sm:$0xff]  ;;  %v1782_v52 = vld [vmem:[#allocation3 + $0x67] ss:$2 sm:$0xff] }
 0x219   :  { %1749 = vst [vmem:[#allocation3 + $0x80] sm:$0xff] %v1716_v30  ;;  %v4979_v34 = vadd.f32 %v4978_v32, %v4977_v31  ;;  %v4980_v36 = vpop.f32.mrb[98].mxu0 }
 0x21a   :  { %v4871_v35 = vpop.f32.mrb[36].mxu1  ;;  %v4981_v39 = vpop.f32.mrb[99].mxu0 }
 0x21b   :  { %v4872_v37 = vpop.f32.mrb[37].mxu1  ;;  %v1639_v41 = vadd.f32 %v4979_v34, %v1478_v33  ;;  %v4982_v43 = vadd.f32 %v4981_v39, %v4980_v36 }
 0x21c   :  { %v4873_v42 = vadd.f32 %v4872_v37, %v4871_v35  ;;  %v4874_v44 = vpop.f32.mrb[38].mxu1 }
 0x21d   :  { %v4875_v45 = vpop.f32.mrb[39].mxu1  ;;  %v1717_v46 = vmax.f32 %v1639_v41, 0.0  ;;  %v1642_v47 = vadd.f32 %v4982_v43, %v1481_v40 }
 0x21e   :  { %v4876_v48 = vadd.f32 %v4875_v45, %v4874_v44  ;;  %v1486_v57 = vadd.f32 %v4873_v42, %v6147_v38 }
 0x21f   :  { %1752 = vst [vmem:[#allocation3 + $0x98] sm:$0xff] %v1717_v46  ;;  %v1718_v49 = vmax.f32 %v1642_v47, 0.0  ;;  %v4983_v50 = vpop.f32.mrb[100].mxu0 }
 0x220   :  { %v4984_v53 = vpop.f32.mrb[101].mxu0  ;;  %v1800_v54 = vld [vmem:[#allocation3 + $0x78] ss:$2 sm:$0xff]  ;;  %v1784_v56 = vld [vmem:[#allocation3 + $0x77] ss:$2 sm:$0xff]  ;;  %v1489_v2 = vadd.f32 %v4876_v48, %v6147_v38 }
 0x221   :  { %1753 = vst [vmem:[#allocation3 + $0xa0] sm:$0xff] %v1718_v49  ;;  %v4985_v58 = vadd.f32 %v4984_v53, %v4983_v50  ;;  %v4986_v60 = vpop.f32.mrb[102].mxu0  ;;  %v1910_v61 = vpack.c.bf16 %v1800_v54, %v1798_v51  ;;  %v1909_v62 = vpack.c.bf16 %v1784_v56, %v1782_v52 }
 0x222   :  { %v4877_v59 = vpop.f32.mrb[40].mxu1  ;;  %v4987_v1 = vpop.f32.mrb[103].mxu0 }
 0x223   :  { %v4878_v0 = vpop.f32.mrb[41].mxu1  ;;  %v1647_v4 = vadd.f32 %v4985_v58, %v1486_v57  ;;  %v4988_v6 = vadd.f32 %v4987_v1, %v4986_v60  ;;  %2250 = vmatprep.mubr.bf16.mxu1 %v1910_v61 }
 0x224   :  { %v4879_v5 = vadd.f32 %v4878_v0, %v4877_v59  ;;  %v4880_v3 = vpop.f32.mrb[42].mxu1  ;;  %2251 = vmatmul.mubr.bf16.gmra.mrb[76].mxu1 %v1909_v62 }
 0x225   :  { %v4881_v7 = vpop.f32.mrb[43].mxu1  ;;  %v1719_v8 = vmax.f32 %v1647_v4, 0.0  ;;  %v1650_v9 = vadd.f32 %v4988_v6, %v1489_v2 }
 0x226   :  { %v4882_v10 = vadd.f32 %v4881_v7, %v4880_v3  ;;  %v1494_v15 = vadd.f32 %v4879_v5, %v6147_v38 }
 0x227   :  { %1754 = vst [vmem:[#allocation3 + $0xa8] sm:$0xff] %v1719_v8  ;;  %v1720_v11 = vmax.f32 %v1650_v9, 0.0  ;;  %v4989_v12 = vpop.f32.mrb[104].mxu0 }
 0x228   :  { %v4990_v13 = vpop.f32.mrb[105].mxu0  ;;  %v1834_v14 = vld [vmem:[#allocation3 + $0x97] ss:$2 sm:$0xff]  ;;  %v1497_v21 = vadd.f32 %v4882_v10, %v6147_v38  ;;  %v1850_v32 = vld [vmem:[#allocation3 + $0x98] ss:$2 sm:$0xff] }
 0x229   :  { %1755 = vst [vmem:[#allocation3 + $0xb0] sm:$0xff] %v1720_v11  ;;  %v4991_v16 = vadd.f32 %v4990_v13, %v4989_v12  ;;  %v4992_v18 = vpop.f32.mrb[106].mxu0  ;;  %2881 = vst [vmem:[#allocation3 + $0x97] sm:$0x1] %v5875_v55 }
 0x22a   :  { %v4883_v17 = vpop.f32.mrb[44].mxu1  ;;  %v4993_v20 = vpop.f32.mrb[107].mxu0 }
 0x22b   :  { %v4884_v19 = vpop.f32.mrb[45].mxu1  ;;  %v1655_v22 = vadd.f32 %v4991_v16, %v1494_v15  ;;  %v4994_v24 = vadd.f32 %v4993_v20, %v4992_v18 }
 0x22c   :  { %v4885_v23 = vadd.f32 %v4884_v19, %v4883_v17  ;;  %v4886_v25 = vpop.f32.mrb[46].mxu1 }
 0x22d   :  { %v4887_v26 = vpop.f32.mrb[47].mxu1  ;;  %v1721_v27 = vmax.f32 %v1655_v22, 0.0  ;;  %v1658_v28 = vadd.f32 %v4994_v24, %v1497_v21 }
 0x22e   :  { %v4888_v29 = vadd.f32 %v4887_v26, %v4886_v25  ;;  %v1502_v36 = vadd.f32 %v4885_v23, %v6147_v38 }
 0x22f   :  { %1756 = vst [vmem:[#allocation3 + $0xb8] sm:$0xff] %v1721_v27  ;;  %v1722_v30 = vmax.f32 %v1658_v28, 0.0  ;;  %v4995_v31 = vpop.f32.mrb[108].mxu0 }
 0x230   :  { %v4996_v33 = vpop.f32.mrb[109].mxu0  ;;  %v1852_v34 = vld [vmem:[#allocation3 + $0xa8] ss:$2 sm:$0xff]  ;;  %v1836_v35 = vld [vmem:[#allocation3 + $0xa7] ss:$2 sm:$0xff]  ;;  %v1505_v45 = vadd.f32 %v4888_v29, %v6147_v38 }
 0x231   :  { %1757 = vst [vmem:[#allocation3 + $0xc0] sm:$0xff] %v1722_v30  ;;  %v4997_v37 = vadd.f32 %v4996_v33, %v4995_v31  ;;  %v4998_v40 = vpop.f32.mrb[110].mxu0  ;;  %v1914_v41 = vpack.c.bf16 %v1852_v34, %v1850_v32  ;;  %v1913_v42 = vpack.c.bf16 %v1836_v35, %v1834_v14 }
 0x232   :  { %v4889_v39 = vpop.f32.mrb[48].mxu1  ;;  %v4999_v44 = vpop.f32.mrb[111].mxu0 }
 0x233   :  { %v4890_v43 = vpop.f32.mrb[49].mxu1  ;;  %v1663_v46 = vadd.f32 %v4997_v37, %v1502_v36  ;;  %v5000_v48 = vadd.f32 %v4999_v44, %v4998_v40  ;;  %2258 = vmatprep.mubr.bf16.mxu1 %v1914_v41 }
 0x234   :  { %v4891_v47 = vadd.f32 %v4890_v43, %v4889_v39  ;;  %v4892_v49 = vpop.f32.mrb[50].mxu1  ;;  %2259 = vmatmul.mubr.bf16.gmra.mrb[80].mxu1 %v1913_v42 }
 0x235   :  { %v4893_v50 = vpop.f32.mrb[51].mxu1  ;;  %v1723_v51 = vmax.f32 %v1663_v46, 0.0  ;;  %v1666_v52 = vadd.f32 %v5000_v48, %v1505_v45 }
 0x236   :  { %v4894_v53 = vadd.f32 %v4893_v50, %v4892_v49  ;;  %v6178_v59 = vld [vmem:[#allocation3 + $0xaa] ss:$2 sm:$0xff]  ;;  %v1510_v60 = vadd.f32 %v4891_v47, %v6147_v38 }
 0x237   :  { %1758 = vst [vmem:[#allocation3 + $0xc8] sm:$0xff] %v1723_v51  ;;  %v1724_v54 = vmax.f32 %v1666_v52, 0.0  ;;  %v5001_v56 = vpop.f32.mrb[112].mxu0 }
 0x238   :  { %v5002_v57 = vpop.f32.mrb[113].mxu0  ;;  %v1854_v58 = vld [vmem:[#allocation3 + $0xb8] ss:$2 sm:$0xff]  ;;  %v1513_v4 = vadd.f32 %v4894_v53, %v6147_v38  ;;  %v1838_v14 = vld [vmem:[#allocation3 + $0xb7] ss:$2 sm:$0xff] }
 0x239   :  { %1759 = vst [vmem:[#allocation3 + $0xd0] sm:$0xff] %v1724_v54  ;;  %v5003_v61 = vadd.f32 %v5002_v57, %v5001_v56  ;;  %v5004_v0 = vpop.f32.mrb[114].mxu0  ;;  %2886 = vst [vmem:[#allocation3 + $0xb8] sm:$0x1] %v5875_v55 }
 0x23a   :  { %v4895_v62 = vpop.f32.mrb[52].mxu1  ;;  %v5005_v2 = vpop.f32.mrb[115].mxu0 }
 0x23b   :  { %v4896_v1 = vpop.f32.mrb[53].mxu1  ;;  %v1671_v5 = vadd.f32 %v5003_v61, %v1510_v60  ;;  %v5006_v3 = vadd.f32 %v5005_v2, %v5004_v0 }
 0x23c   :  { %v4897_v6 = vadd.f32 %v4896_v1, %v4895_v62  ;;  %v4898_v7 = vpop.f32.mrb[54].mxu1 }
 0x23d   :  { %v4899_v8 = vpop.f32.mrb[55].mxu1  ;;  %v1725_v9 = vmax.f32 %v1671_v5, 0.0  ;;  %v1674_v10 = vadd.f32 %v5006_v3, %v1513_v4 }
 0x23e   :  { %v4900_v11 = vadd.f32 %v4899_v8, %v4898_v7  ;;  %v1518_v18 = vadd.f32 %v4897_v6, %v6147_v38 }
 0x23f   :  { %1760 = vst [vmem:[#allocation3 + $0xd8] sm:$0xff] %v1725_v9  ;;  %v1726_v12 = vmax.f32 %v1674_v10, 0.0  ;;  %v5007_v13 = vpop.f32.mrb[116].mxu0 }
 0x240   :  { %v5008_v15 = vpop.f32.mrb[117].mxu0  ;;  %v1856_v16 = vld [vmem:[#allocation3 + $0xc8] ss:$2 sm:$0xff]  ;;  %v1840_v17 = vld [vmem:[#allocation3 + $0xc7] ss:$2 sm:$0xff]  ;;  %v1521_v26 = vadd.f32 %v4900_v11, %v6147_v38 }
 0x241   :  { %1761 = vst [vmem:[#allocation3 + $0xe0] sm:$0xff] %v1726_v12  ;;  %v5009_v19 = vadd.f32 %v5008_v15, %v5007_v13  ;;  %v5010_v21 = vpop.f32.mrb[118].mxu0  ;;  %v1918_v22 = vpack.c.bf16 %v1856_v16, %v1854_v58  ;;  %v1917_v23 = vpack.c.bf16 %v1840_v17, %v1838_v14 }
 0x242   :  { %v4901_v20 = vpop.f32.mrb[56].mxu1  ;;  %v5011_v25 = vpop.f32.mrb[119].mxu0 }
 0x243   :  { %v4902_v24 = vpop.f32.mrb[57].mxu1  ;;  %v1679_v27 = vadd.f32 %v5009_v19, %v1518_v18  ;;  %v5012_v29 = vadd.f32 %v5011_v25, %v5010_v21  ;;  %2266 = vmatprep.mubr.bf16.mxu1 %v1918_v22  ;;  %v1818_v18 = vld [vmem:[#allocation3 + $0xa] ss:$2 sm:$0xff]  ;;  %v1802_v21 = vld [vmem:[#allocation3 + $0x9] ss:$2 sm:$0xff]  ;;  %v5664_v25 = vld [vmem:[#allocation4 + $0x240] sm:$0xff]  }
 0x244   :  { %v4903_v28 = vadd.f32 %v4902_v24, %v4901_v20  ;;  %v4904_v30 = vpop.f32.mrb[58].mxu1  ;;  %2267 = vmatmul.mubr.bf16.gmra.mrb[84].mxu1 %v1917_v23  ;;  %v1900_v19 = vpack.c.bf16 %v6158_v63, %v1818_v18  ;;  %v1824_v20 = vld [vmem:[#allocation3 + $0x3a] ss:$2 sm:$0xff]  ;;  %v1822_v23 = vld [vmem:[#allocation3 + $0x2a] ss:$2 sm:$0xff]  ;;  %5153 = vmatprep.subr.bf16.mxu0 %v5664_v25 }
 0x245   :  { %v4905_v31 = vpop.f32.mrb[59].mxu1  ;;  %v1727_v32 = vmax.f32 %v1679_v27, 0.0  ;;  %v1682_v33 = vadd.f32 %v5012_v29, %v1521_v26  ;;  %v1904_v24 = vpack.c.bf16 %v1824_v20, %v1822_v23  ;;  %v5665_v26 = vld [vmem:[#allocation4 + $0x200] sm:$0xff]   ;;  %v1806_v29 = vld [vmem:[#allocation3 + $0x29] ss:$2 sm:$0xff]  ;;  %v5683_v25 = vld [vmem:[#allocation4 + $0x298] sm:$0xff]  }
 0x246   :  { %v4906_v34 = vadd.f32 %v4905_v31, %v4904_v30  ;;  %v1526_v39 = vadd.f32 %v4903_v28, %v6147_v38  ;;  %v1808_v27 = vld [vmem:[#allocation3 + $0x39] ss:$2 sm:$0xff]  ;;  %v1828_v28 = vld [vmem:[#allocation3 + $0x5a] ss:$2 sm:$0xff]  ;;  %5154 = vmatpush3.bf16.msra.mxu0 %v5665_v26  ;;  %v1826_v31 = vld [vmem:[#allocation3 + $0x4a] ss:$2 sm:$0xff] }
 0x247   :  { %1762 = vst [vmem:[#allocation3 + $0xe8] sm:$0xff] %v1727_v32  ;;  %v1728_v35 = vmax.f32 %v1682_v33, 0.0  ;;  %v5013_v36 = vpop.f32.mrb[120].mxu0  ;;  %v1903_v30 = vpack.c.bf16 %v1808_v27, %v1806_v29  ;;  %v1908_v63 = vpack.c.bf16 %v1828_v28, %v1826_v31  ;;  %v1812_v32 = vld [vmem:[#allocation3 + $0x59] ss:$2 sm:$0xff]  ;;  %v5680_v20 = vld [vmem:[#allocation4 + $0x2d0] sm:$0xff]  }
 0x248   :  { %v5014_v37 = vpop.f32.mrb[121].mxu0  ;;  %v1529_v45 = vadd.f32 %v4906_v34, %v6147_v38  ;;  %v1858_v57 = vld [vmem:[#allocation3 + $0xd8] ss:$2 sm:$0xff]  ;;  %v1842_v58 = vld [vmem:[#allocation3 + $0xd7] ss:$2 sm:$0xff]  ;;  %v5688_v31 = vld [vmem:[#allocation4 + $0x2e8] sm:$0xff]  }
 0x249   :  { %1763 = vst [vmem:[#allocation3 + $0xf0] sm:$0xff] %v1728_v35  ;;  %v5015_v40 = vadd.f32 %v5014_v37, %v5013_v36  ;;  %v5016_v42 = vpop.f32.mrb[122].mxu0  ;;  %v1832_v33 = vld [vmem:[#allocation3 + $0x7a] ss:$2 sm:$0xff]  ;;  %v1810_v34 = vld [vmem:[#allocation3 + $0x49] ss:$2 sm:$0xff] }
 0x24a   :  { %v4907_v41 = vpop.f32.mrb[60].mxu1  ;;  %v5017_v44 = vpop.f32.mrb[123].mxu0  ;;  %v1907_v35 = vpack.c.bf16 %v1812_v32, %v1810_v34  ;;  %v1830_v36 = vld [vmem:[#allocation3 + $0x6a] ss:$2 sm:$0xff]  ;;  %v5684_v26 = vld [vmem:[#allocation4 + $0x2e0] sm:$0xff]  }
 0x24b   :  { %v4908_v43 = vpop.f32.mrb[61].mxu1  ;;  %v1687_v46 = vadd.f32 %v5015_v40, %v1526_v39  ;;  %v5018_v48 = vadd.f32 %v5017_v44, %v5016_v42  ;;  %v1912_v37 = vpack.c.bf16 %v1832_v33, %v1830_v36  ;;  %v5666_v39 = vld [vmem:[#allocation4 + $0x248] sm:$0xff]   ;;  %v5686_v27 = vld [vmem:[#allocation4 + $0x2a0] sm:$0xff]   ;;  %v5685_v28 = vld [vmem:[#allocation4 + $0x270] sm:$0xff]  }
 0x24c   :  { %v4909_v47 = vadd.f32 %v4908_v43, %v4907_v41  ;;  %v4910_v49 = vpop.f32.mrb[62].mxu1  ;;  %v5667_v40 = vld [vmem:[#allocation4 + $0x208] sm:$0xff]   ;;  %v1816_v41 = vld [vmem:[#allocation3 + $0x79] ss:$2 sm:$0xff]  ;;  %5155 = vmatprep.subr.bf16.mxu0 %v5666_v39  ;;  %v5687_v29 = vld [vmem:[#allocation4 + $0x230] sm:$0xff]  }
 0x24d   :  { %v4911_v50 = vpop.f32.mrb[63].mxu1  ;;  %v1729_v51 = vmax.f32 %v1687_v46, 0.0  ;;  %v1690_v52 = vadd.f32 %v5018_v48, %v1529_v45  ;;  %5156 = vmatpush3.bf16.msra.mxu0 %v5667_v40  ;;  %v1814_v42 = vld [vmem:[#allocation3 + $0x69] ss:$2 sm:$0xff]  ;;  %v1882_v44 = vld [vmem:[#allocation3 + $0x9a] ss:$2 sm:$0xff] }
 0x24e   :  { %v4912_v53 = vadd.f32 %v4911_v50, %v4910_v49  ;;  %v1534_v0 = vadd.f32 %v4909_v47, %v6147_v38  ;;  %v1911_v43 = vpack.c.bf16 %v1816_v41, %v1814_v42  ;;  %v1916_v45 = vpack.c.bf16 %v6178_v59, %v1882_v44  ;;  %v1868_v46 = vld [vmem:[#allocation3 + $0xa9] ss:$2 sm:$0xff]  ;;  %v1888_v47 = vld [vmem:[#allocation3 + $0xca] ss:$2 sm:$0xff]  ;;  %v1866_v48 = vld [vmem:[#allocation3 + $0x99] ss:$2 sm:$0xff] }
 0x24f   :  { %1764 = vst [vmem:[#allocation3 + $0xf8] sm:$0xff] %v1729_v51  ;;  %v1730_v54 = vmax.f32 %v1690_v52, 0.0  ;;  %v5019_v56 = vpop.f32.mrb[124].mxu0  ;;  %v1915_v49 = vpack.c.bf16 %v1868_v46, %v1866_v48  ;;  %v1886_v50 = vld [vmem:[#allocation3 + $0xba] ss:$2 sm:$0xff]  ;;  %v5668_v52 = vld [vmem:[#allocation4 + $0x250] sm:$0xff]  }
 0x250   :  { %v5020_v60 = vpop.f32.mrb[125].mxu0  ;;  %v1860_v61 = vld [vmem:[#allocation3 + $0xe8] ss:$2 sm:$0xff]  ;;  %v1844_v62 = vld [vmem:[#allocation3 + $0xe7] ss:$2 sm:$0xff]  ;;  %v1537_v3 = vadd.f32 %v4912_v53, %v6147_v38  ;;  %v1920_v51 = vpack.c.bf16 %v1888_v47, %v1886_v50  ;;  %5157 = vmatprep.subr.bf16.mxu0 %v5668_v52  ;;  %v5694_v42 = vld [vmem:[#allocation4 + $0x2f8] sm:$0xff]  }
 0x251   :  { %1765 = vst [vmem:[#allocation3 + $0x100] sm:$0xff] %v1730_v54  ;;  %v5021_v1 = vadd.f32 %v5020_v60, %v5019_v56  ;;  %v5022_v2 = vpop.f32.mrb[126].mxu0  ;;  %v1922_v4 = vpack.c.bf16 %v1860_v61, %v1858_v57  ;;  %v1921_v5 = vpack.c.bf16 %v1844_v62, %v1842_v58  ;;  %v1804_v38 = vld [vmem:[#allocation3 + $0x19] ss:$2 sm:$0xff]  ;;  %v5669_v53 = vld [vmem:[#allocation4 + $0x210] sm:$0xff]   ;;  %v5689_v32 = vld [vmem:[#allocation4 + $0x2a8] sm:$0xff]  }
 0x252   :  { %v5023_v6 = vpop.f32.mrb[127].mxu0  ;;  %v1899_v22 = vpack.c.bf16 %v1804_v38, %v1802_v21  ;;  %v1872_v54 = vld [vmem:[#allocation3 + $0xc9] ss:$2 sm:$0xff]  ;;  %5158 = vmatpush3.bf16.msra.mxu0 %v5669_v53  ;;  %v1870_v57 = vld [vmem:[#allocation3 + $0xb9] ss:$2 sm:$0xff] }
 0x253   :  { %v1695_v7 = vadd.f32 %v5021_v1, %v1534_v0  ;;  %v5024_v8 = vadd.f32 %v5023_v6, %v5022_v2  ;;  %2274 = vmatprep.mubr.bf16.mxu1 %v1922_v4  ;;  %v1919_v58 = vpack.c.bf16 %v1872_v54, %v1870_v57  ;;  %v1890_v60 = vld [vmem:[#allocation3 + $0xda] ss:$2 sm:$0xff]  ;;  %v1876_v61 = vld [vmem:[#allocation3 + $0xe9] ss:$2 sm:$0xff]  ;;  %v1874_v0 = vld [vmem:[#allocation3 + $0xd9] ss:$2 sm:$0xff] }
 0x254   :  { %2275 = vmatmul.mubr.bf16.gmra.mrb[88].mxu1 %v1921_v5  ;;  %v1923_v1 = vpack.c.bf16 %v1876_v61, %v1874_v0  ;;  %v5670_v5 = vld [vmem:[#allocation4 + $0x258] sm:$0xff]   ;;  %v5679_v38 = vld [vmem:[#allocation4 + $0x228] sm:$0xff]   ;;  %v5692_v40 = vld [vmem:[#allocation4 + $0x2f0] sm:$0xff]  }
 0x255   :  { %v1731_v9 = vmax.f32 %v1695_v7, 0.0  ;;  %v1698_v10 = vadd.f32 %v5024_v8, %v1537_v3  ;;  %v5671_v6 = vld [vmem:[#allocation4 + $0x218] sm:$0xff]   ;;  %5159 = vmatprep.subr.bf16.mxu0 %v5670_v5  ;;  %v5693_v41 = vld [vmem:[#allocation4 + $0x2b0] sm:$0xff]  }
 0x256   :  { %v1892_v56 = vld [vmem:[#allocation3 + $0xea] ss:$2 sm:$0xff]  ;;  %5160 = vmatpush3.bf16.msra.mxu0 %v5671_v6 }
 0x257   :  { %1766 = vst [vmem:[#allocation3 + $0x108] sm:$0xff] %v1731_v9  ;;  %v1732_v11 = vmax.f32 %v1698_v10, 0.0  ;;  %v1924_v59 = vpack.c.bf16 %v1892_v56, %v1890_v60  ;;  %v5672_v9 = vld [vmem:[#allocation4 + $0x260] sm:$0xff]  }
 0x258   :  { %v1862_v12 = vld [vmem:[#allocation3 + $0xf8] ss:$2 sm:$0xff]  ;;  %v1846_v14 = vld [vmem:[#allocation3 + $0xf7] ss:$2 sm:$0xff]  ;;  %5161 = vmatprep.subr.bf16.mxu0 %v5672_v9 }
 0x259   :  { %1767 = vst [vmem:[#allocation3 + $0x110] sm:$0xff] %v1732_v11  ;;  %v1878_v7 = vld [vmem:[#allocation3 + $0xf9] ss:$2 sm:$0xff] }
 0x25a   :  { %v5673_v10 = vld [vmem:[#allocation4 + $0x220] sm:$0xff]  }
 0x25b   :  { %v5674_v11 = vld [vmem:[#allocation4 + $0x2c0] sm:$0xff]   ;;  %5162 = vmatpush3.bf16.msra.mxu0 %v5673_v10 }
 0x25c   :  { %5193 = vmatprep.subr.bf16.mxu1 %v5674_v11 }
 0x25e   :  { %v1894_v2 = vld [vmem:[#allocation3 + $0xfa] ss:$2 sm:$0xff] }
 0x260   :  { %v1864_v13 = vld [vmem:[#allocation3 + $0x108] ss:$2 sm:$0xff]  ;;  %v1848_v15 = vld [vmem:[#allocation3 + $0x107] ss:$2 sm:$0xff] }
 0x261   :  { %v1926_v16 = vpack.c.bf16 %v1864_v13, %v1862_v12  ;;  %v1925_v17 = vpack.c.bf16 %v1848_v15, %v1846_v14  ;;  %v1896_v62 = vld [vmem:[#allocation3 + $0x10a] ss:$2 sm:$0xff]  ;;  %v1880_v3 = vld [vmem:[#allocation3 + $0x109] ss:$2 sm:$0xff]  ;;  %v5675_v12 = vld [vmem:[#allocation4 + $0x280] sm:$0xff]  }
 0x262   :  { %v1928_v4 = vpack.c.bf16 %v1896_v62, %v1894_v2  ;;  %v1927_v8 = vpack.c.bf16 %v1880_v3, %v1878_v7  ;;  %v5676_v13 = vld [vmem:[#allocation4 + $0x2c8] sm:$0xff]  }
 0x263   :  { %2282 = vmatprep.mubr.bf16.mxu1 %v1926_v16  ;;  %v5677_v14 = vld [vmem:[#allocation4 + $0x288] sm:$0xff]  }
 0x264   :  { %2283 = vmatmul.mubr.bf16.gmra.mrb[92].mxu1 %v1925_v17 }
 0x265   :  { %2323 = vmatprep.mubr.bf16.mxu1 %v1900_v19  ;;  %v5678_v19 = vld [vmem:[#allocation4 + $0x268] sm:$0xff]  }
 0x266   :  { %5163 = vmatprep.subr.bf16.mxu0 %v5678_v19  ;;  %v6226_v19 = vld [vmem:[%s6553_s4 + $0x1] ss:$0 sm:$0xff] }
 0x267   :  { %5164 = vmatpush3.bf16.msra.mxu0 %v5679_v38 }
 0x268   :  { %5165 = vmatprep.subr.bf16.mxu0 %v5685_v28 }
 0x26b   :  { %5166 = vmatpush3.bf16.msra.mxu0 %v5687_v29 }
 0x26c   :  { %2324 = vmatmul.mubr.bf16.vlgmr.msra.gmra.mrb[96].mxu1 %v1899_v22  ;;  %v5681_v22 = vld [vmem:[#allocation4 + $0x290] sm:$0xff]  }
 0x26d   :  { %2331 = vmatprep.mubr.bf16.mxu1 %v1904_v24  ;;  %5194 = vmatpush3.bf16.msra.mxu1 %v5675_v12  ;;  %v5682_v24 = vld [vmem:[#allocation4 + $0x2d8] sm:$0xff]  }
 0x26e   :  { %5195 = vmatprep.subr.bf16.mxu1 %v5676_v13 }
 0x271   :  { %5196 = vmatpush3.bf16.msra.mxu1 %v5677_v14 }
 0x272   :  { %5197 = vmatprep.subr.bf16.mxu1 %v5680_v20 }
 0x274   :  { %2332 = vmatmul.mubr.bf16.gmra.mrb[100].mxu1 %v1903_v30 }
 0x275   :  { %2339 = vmatprep.mubr.bf16.mxu1 %v1908_v63  ;;  %5198 = vmatpush3.bf16.msra.mxu1 %v5681_v22 }
 0x276   :  { %5199 = vmatprep.subr.bf16.mxu1 %v5682_v24 }
 0x279   :  { %5200 = vmatpush3.bf16.msra.mxu1 %v5683_v25 }
 0x27a   :  { %5201 = vmatprep.subr.bf16.mxu1 %v5684_v26 }
 0x27c   :  { %2340 = vmatmul.mubr.bf16.gmra.mrb[104].mxu1 %v1907_v35  ;;  %v5690_v35 = vld [vmem:[#allocation4 + $0x278] sm:$0xff]  }
 0x27d   :  { %2347 = vmatprep.mubr.bf16.mxu1 %v1912_v37  ;;  %5202 = vmatpush3.bf16.msra.mxu1 %v5686_v27  ;;  %v5691_v37 = vld [vmem:[#allocation4 + $0x238] sm:$0xff]  }
 0x27e   :  { %5203 = vmatprep.subr.bf16.mxu1 %v5688_v31  ;;  %5167 = vmatprep.subr.bf16.mxu0 %v5690_v35 }
 0x27f   :  { %5168 = vmatpush3.bf16.msra.mxu0 %v5691_v37 }
 0x281   :  { %5204 = vmatpush3.bf16.msra.mxu1 %v5689_v32 }
 0x282   :  { %5205 = vmatprep.subr.bf16.mxu1 %v5692_v40 }
 0x284   :  { %2348 = vmatmul.mubr.bf16.gmra.mrb[108].mxu1 %v1911_v43  ;;  %v5695_v43 = vld [vmem:[#allocation4 + $0x2b8] sm:$0xff]  }
 0x285   :  { %2355 = vmatprep.mubr.bf16.mxu1 %v1916_v45  ;;  %5206 = vmatpush3.bf16.msra.mxu1 %v5693_v41 }
 0x286   :  { %5207 = vmatprep.subr.bf16.mxu1 %v5694_v42 }
 0x289   :  { %5208 = vmatpush3.bf16.msra.mxu1 %v5695_v43 }
 0x28c   :  { %2356 = vmatmul.mubr.bf16.gmra.mrb[112].mxu1 %v1915_v49 }
 0x28d   :  { %2363 = vmatprep.mubr.bf16.mxu1 %v1920_v51 }
 0x294   :  { %2364 = vmatmul.mubr.bf16.gmra.mrb[116].mxu1 %v1919_v58 }
 0x295   :  { %2371 = vmatprep.mubr.bf16.mxu1 %v1924_v59 }
 0x29c   :  { %2372 = vmatmul.mubr.bf16.gmra.mrb[120].mxu1 %v1923_v1 }
 0x29d   :  { %2379 = vmatprep.mubr.bf16.mxu1 %v1928_v4 }
 0x2a4   :  { %2380 = vmatmul.mubr.bf16.gmra.mrb[124].mxu1 %v1927_v8 }
 0x2c7   :  { %v5041_v15 = vpop.f32.mrb[64].mxu1 }
 0x2c8   :  { %v5042_v16 = vpop.f32.mrb[65].mxu1 }
 0x2c9   :  { %v6191_v17 = vadd.f32 %v5042_v16, %v5041_v15  ;;  %v5044_v18 = vpop.f32.mrb[66].mxu1 }
 0x2ca   :  { %v5045_v21 = vpop.f32.mrb[67].mxu1 }
 0x2cb   :  { %v6193_v23 = vadd.f32 %v5045_v21, %v5044_v18  ;;  %v2229_v21 = vadd.f32 %v6191_v17, %v6226_v19 }
 0x2cd   :  { %v2232_v26 = vadd.f32 %v6193_v23, %v6226_v19 }
 0x2d7   :  { %v5047_v30 = vpop.f32.mrb[68].mxu1 }
 0x2d8   :  { %v5048_v63 = vpop.f32.mrb[69].mxu1 }
 0x2d9   :  { %v6195_v33 = vadd.f32 %v5048_v63, %v5047_v30  ;;  %v5050_v34 = vpop.f32.mrb[70].mxu1 }
 0x2da   :  { %v5051_v36 = vpop.f32.mrb[71].mxu1 }
 0x2db   :  { %v6197_v39 = vadd.f32 %v5051_v36, %v5050_v34  ;;  %v2237_v34 = vadd.f32 %v6195_v33, %v6226_v19 }
 0x2dd   :  { %v2240_v37 = vadd.f32 %v6197_v39, %v6226_v19 }
 0x2e7   :  { %v5053_v44 = vpop.f32.mrb[72].mxu1 }
 0x2e8   :  { %v5054_v45 = vpop.f32.mrb[73].mxu1 }
 0x2e9   :  { %v6199_v46 = vadd.f32 %v5054_v45, %v5053_v44  ;;  %v5056_v47 = vpop.f32.mrb[74].mxu1 }
 0x2ea   :  { %v5057_v48 = vpop.f32.mrb[75].mxu1 }
 0x2eb   :  { %v6201_v49 = vadd.f32 %v5057_v48, %v5056_v47  ;;  %v2245_v48 = vadd.f32 %v6199_v46, %v6226_v19 }
 0x2ed   :  { %v2248_v39 = vadd.f32 %v6201_v49, %v6226_v19 }
 0x2f7   :  { %v5059_v50 = vpop.f32.mrb[76].mxu1 }
 0x2f8   :  { %v5060_v51 = vpop.f32.mrb[77].mxu1 }
 0x2f9   :  { %v6203_v52 = vadd.f32 %v5060_v51, %v5059_v50  ;;  %v5062_v53 = vpop.f32.mrb[78].mxu1 }
 0x2fa   :  { %v5063_v54 = vpop.f32.mrb[79].mxu1 }
 0x2fb   :  { %v6205_v56 = vadd.f32 %v5063_v54, %v5062_v53 }
 0x307   :  { %v5065_v57 = vpop.f32.mrb[80].mxu1 }
 0x308   :  { %v5066_v58 = vpop.f32.mrb[81].mxu1 }
 0x309   :  { %v6207_v60 = vadd.f32 %v5066_v58, %v5065_v57  ;;  %v5068_v59 = vpop.f32.mrb[82].mxu1 }
 0x30a   :  { %v5069_v61 = vpop.f32.mrb[83].mxu1 }
 0x30b   :  { %v6209_v62 = vadd.f32 %v5069_v61, %v5068_v59 }
 0x317   :  { %v5071_v0 = vpop.f32.mrb[84].mxu1 }
 0x318   :  { %v5072_v1 = vpop.f32.mrb[85].mxu1 }
 0x319   :  { %v6211_v2 = vadd.f32 %v5072_v1, %v5071_v0  ;;  %v5074_v4 = vpop.f32.mrb[86].mxu1 }
 0x31a   :  { %v5075_v5 = vpop.f32.mrb[87].mxu1 }
 0x31b   :  { %v6213_v6 = vadd.f32 %v5075_v5, %v5074_v4 }
 0x327   :  { %v5077_v3 = vpop.f32.mrb[88].mxu1 }
 0x328   :  { %v5078_v7 = vpop.f32.mrb[89].mxu1 }
 0x329   :  { %v6215_v8 = vadd.f32 %v5078_v7, %v5077_v3  ;;  %v5080_v9 = vpop.f32.mrb[90].mxu1  ;;  %v2253_v3 = vadd.f32 %v6203_v52, %v6226_v19 }
 0x32a   :  { %v5081_v10 = vpop.f32.mrb[91].mxu1 }
 0x32b   :  { %v6217_v11 = vadd.f32 %v5081_v10, %v5080_v9 }
 0x337   :  { %v5083_v12 = vpop.f32.mrb[92].mxu1 }
 0x338   :  { %v5084_v13 = vpop.f32.mrb[93].mxu1 }
 0x339   :  { %v6219_v14 = vadd.f32 %v5084_v13, %v5083_v12  ;;  %v5086_v15 = vpop.f32.mrb[94].mxu1  ;;  %v2256_v13 = vadd.f32 %v6205_v56, %v6226_v19 }
 0x33a   :  { %v5087_v16 = vpop.f32.mrb[95].mxu1 }
 0x33b   :  { %v6221_v18 = vadd.f32 %v5087_v16, %v5086_v15 }
 0x33f   :  { %v5105_v38 = vpop.f32.mrb[96].mxu1 }
 0x340   :  { %v5106_v20 = vpop.f32.mrb[97].mxu1 }
 0x341   :  { %v5107_v22 = vadd.f32 %v5106_v20, %v5105_v38  ;;  %v5108_v24 = vpop.f32.mrb[98].mxu1 }
 0x342   :  { %v5109_v25 = vpop.f32.mrb[99].mxu1 }
 0x343   :  { %v2326_v27 = vadd.f32 %v5107_v22, %v2229_v21  ;;  %v5110_v28 = vadd.f32 %v5109_v25, %v5108_v24 }
 0x345   :  { %v2388_v29 = vmax.f32 %v2326_v27, 0.0  ;;  %v2329_v30 = vadd.f32 %v5110_v28, %v2232_v26 }
 0x347   :  { %2405 = vst [vmem:[#allocation2 + $0x8] sm:$0xff] %v2388_v29  ;;  %v2389_v31 = vmax.f32 %v2329_v30, 0.0  ;;  %v5111_v63 = vpop.f32.mrb[100].mxu1  ;;  %v2261_v29 = vadd.f32 %v6207_v60, %v6226_v19 }
 0x348   :  { %v5112_v32 = vpop.f32.mrb[101].mxu1 }
 0x349   :  { %2406 = vst [vmem:[#allocation2 + $0x10] sm:$0xff] %v2389_v31  ;;  %v5113_v35 = vadd.f32 %v5112_v32, %v5111_v63  ;;  %v5114_v17 = vpop.f32.mrb[102].mxu1  ;;  %v2264_v63 = vadd.f32 %v6209_v62, %v6226_v19 }
 0x34a   :  { %v5115_v36 = vpop.f32.mrb[103].mxu1 }
 0x34b   :  { %v2334_v40 = vadd.f32 %v5113_v35, %v2237_v34  ;;  %v5116_v23 = vadd.f32 %v5115_v36, %v5114_v17 }
 0x34d   :  { %v2390_v41 = vmax.f32 %v2334_v40, 0.0  ;;  %v2337_v42 = vadd.f32 %v5116_v23, %v2240_v37 }
 0x34f   :  { %2407 = vst [vmem:[#allocation2 + $0x18] sm:$0xff] %v2390_v41  ;;  %v2391_v43 = vmax.f32 %v2337_v42, 0.0  ;;  %v5117_v44 = vpop.f32.mrb[104].mxu1 }
 0x350   :  { %v5118_v45 = vpop.f32.mrb[105].mxu1  ;;  %v2424_v47 = vld [vmem:[#allocation2 + $0x7] ss:$2 sm:$0xff]  ;;  %v2428_v0 = vld [vmem:[#allocation2 + $0x8] ss:$2 sm:$0xff] }
 0x351   :  { %2408 = vst [vmem:[#allocation2 + $0x20] sm:$0xff] %v2391_v43  ;;  %v5119_v33 = vadd.f32 %v5118_v45, %v5117_v44  ;;  %v5120_v50 = vpop.f32.mrb[106].mxu1  ;;  %3278 = vst [vmem:[#allocation2 + $0x7] sm:$0x1] %v5875_v55  ;;  %v2432_v26 = vld [vmem:[#allocation2 + $0x9] ss:$2 sm:$0xff]  ;;  %v2269_v45 = vadd.f32 %v6211_v2, %v6226_v19 }
 0x352   :  { %v5121_v51 = vpop.f32.mrb[107].mxu1 }
 0x353   :  { %v2342_v53 = vadd.f32 %v5119_v33, %v2245_v48  ;;  %v5122_v54 = vadd.f32 %v5121_v51, %v5120_v50 }
 0x355   :  { %v2392_v57 = vmax.f32 %v2342_v53, 0.0  ;;  %v2345_v58 = vadd.f32 %v5122_v54, %v2248_v39 }
 0x356   :  { %v2436_v1 = vld [vmem:[#allocation2 + $0xa] ss:$2 sm:$0xff] }
 0x357   :  { %2409 = vst [vmem:[#allocation2 + $0x28] sm:$0xff] %v2392_v57  ;;  %v2393_v59 = vmax.f32 %v2345_v58, 0.0  ;;  %v5123_v61 = vpop.f32.mrb[108].mxu1  ;;  %v2272_v57 = vadd.f32 %v6213_v6, %v6226_v19 }
 0x358   :  { %v5124_v4 = vpop.f32.mrb[109].mxu1  ;;  %v2429_v46 = vld [vmem:[#allocation2 + $0x18] ss:$2 sm:$0xff]  ;;  %v2425_v5 = vld [vmem:[#allocation2 + $0x17] ss:$2 sm:$0xff] }
 0x359   :  { %2410 = vst [vmem:[#allocation2 + $0x30] sm:$0xff] %v2393_v59  ;;  %v5125_v7 = vadd.f32 %v5124_v4, %v5123_v61  ;;  %v5126_v9 = vpop.f32.mrb[110].mxu1  ;;  %v2457_v10 = vpack.c.bf16 %v2429_v46, %v2428_v0  ;;  %v2456_v49 = vpack.c.bf16 %v2425_v5, %v2424_v47  ;;  %3281 = vst [vmem:[#allocation2 + $0x18] sm:$0x1] %v5875_v55  ;;  %v2433_v21 = vld [vmem:[#allocation2 + $0x19] ss:$2 sm:$0xff] }
 0x35a   :  { %v5127_v12 = vpop.f32.mrb[111].mxu1  ;;  %v2458_v28 = vpack.c.bf16 %v2433_v21, %v2432_v26  ;;  %v2277_v5 = vadd.f32 %v6215_v8, %v6226_v19 }
 0x35b   :  { %v2350_v15 = vadd.f32 %v5125_v7, %v2253_v3  ;;  %v5128_v16 = vadd.f32 %v5127_v12, %v5126_v9  ;;  %2769 = vmatprep.mubr.bf16.mxu0 %v2457_v10  ;;  %v2280_v9 = vadd.f32 %v6217_v11, %v6226_v19 }
 0x35c   :  { %2770 = vmatmul.mubr.bf16.vlgmr.msra.gmra.mrb[128].mxu0 %v2456_v49 }
 0x35d   :  { %v2394_v38 = vmax.f32 %v2350_v15, 0.0  ;;  %v2353_v20 = vadd.f32 %v5128_v16, %v2256_v13 }
 0x35e   :  { %v2437_v22 = vld [vmem:[#allocation2 + $0x1a] ss:$2 sm:$0xff] }
 0x35f   :  { %2411 = vst [vmem:[#allocation2 + $0x38] sm:$0xff] %v2394_v38  ;;  %v2395_v52 = vmax.f32 %v2353_v20, 0.0  ;;  %v5129_v24 = vpop.f32.mrb[112].mxu1  ;;  %v2459_v25 = vpack.c.bf16 %v2437_v22, %v2436_v1 }
 0x360   :  { %v5130_v27 = vpop.f32.mrb[113].mxu1  ;;  %v2430_v36 = vld [vmem:[#allocation2 + $0x28] ss:$2 sm:$0xff]  ;;  %v2426_v41 = vld [vmem:[#allocation2 + $0x27] ss:$2 sm:$0xff] }
 0x361   :  { %2412 = vst [vmem:[#allocation2 + $0x40] sm:$0xff] %v2395_v52  ;;  %v5131_v56 = vadd.f32 %v5130_v27, %v5129_v24  ;;  %v5132_v30 = vpop.f32.mrb[114].mxu1  ;;  %2834 = vmatprep.mubr.bf16.mxu1 %v2459_v25  ;;  %v2434_v60 = vld [vmem:[#allocation2 + $0x29] ss:$2 sm:$0xff]  ;;  %v2285_v52 = vadd.f32 %v6219_v14, %v6226_v19 }
 0x362   :  { %v5133_v31 = vpop.f32.mrb[115].mxu1  ;;  %2835 = vmatmul.mubr.bf16.vlgmr.msra.gmra.mrb[128].mxu1 %v2458_v28  ;;  %v2288_v28 = vadd.f32 %v6221_v18, %v6226_v19 }
 0x363   :  { %v2358_v32 = vadd.f32 %v5131_v56, %v2261_v29  ;;  %v5134_v34 = vadd.f32 %v5133_v31, %v5132_v30 }
 0x365   :  { %v2396_v35 = vmax.f32 %v2358_v32, 0.0  ;;  %v2361_v17 = vadd.f32 %v5134_v34, %v2264_v63 }
 0x366   :  { %v2438_v23 = vld [vmem:[#allocation2 + $0x2a] ss:$2 sm:$0xff] }
 0x367   :  { %2415 = vst [vmem:[#allocation2 + $0x118] sm:$0xff] %v2396_v35  ;;  %v2397_v37 = vmax.f32 %v2361_v17, 0.0  ;;  %v5135_v40 = vpop.f32.mrb[116].mxu1 }
 0x368   :  { %v5136_v42 = vpop.f32.mrb[117].mxu1  ;;  %v2431_v43 = vld [vmem:[#allocation2 + $0x38] ss:$2 sm:$0xff]  ;;  %v2427_v50 = vld [vmem:[#allocation2 + $0x37] ss:$2 sm:$0xff] }
 0x369   :  { %v2439_v44 = vld [vmem:[#allocation2 + $0x3a] ss:$2 sm:$0xff]  ;;  %2416 = vst [vmem:[#allocation2 + $0x120] sm:$0xff] %v2397_v37  ;;  %v5137_v47 = vadd.f32 %v5136_v42, %v5135_v40  ;;  %v5138_v62 = vpop.f32.mrb[118].mxu1  ;;  %v2461_v48 = vpack.c.bf16 %v2431_v43, %v2430_v36  ;;  %v2435_v51 = vld [vmem:[#allocation2 + $0x39] ss:$2 sm:$0xff]  ;;  %v2460_v53 = vpack.c.bf16 %v2427_v50, %v2426_v41 }
 0x36a   :  { %v2463_v33 = vpack.c.bf16 %v2439_v44, %v2438_v23  ;;  %v5139_v39 = vpop.f32.mrb[119].mxu1  ;;  %v2462_v54 = vpack.c.bf16 %v2435_v51, %v2434_v60  ;;  %v5700_v50 = vld [vmem:[#allocation4 + $0x348] sm:$0xff]  }
 0x36b   :  { %v2366_v58 = vadd.f32 %v5137_v47, %v2269_v45  ;;  %v5140_v59 = vadd.f32 %v5139_v39, %v5138_v62  ;;  %2777 = vmatprep.mubr.bf16.mxu0 %v2461_v48  ;;  %v5696_v47 = vld [vmem:[#allocation4 + $0x340] sm:$0xff]   ;;  %v5701_v51 = vld [vmem:[#allocation4 + $0x3c8] sm:$0xff]  }
 0x36c   :  { %2842 = vmatprep.mubr.bf16.mxu1 %v2463_v33  ;;  %2778 = vmatmul.mubr.bf16.gmra.mrb[132].mxu0 %v2460_v53  ;;  %v5697_v62 = vld [vmem:[#allocation4 + $0x3c0] sm:$0xff]   ;;  %v5702_v39 = vld [vmem:[#allocation4 + $0x308] sm:$0xff]  }
 0x36d   :  { %2843 = vmatmul.mubr.bf16.gmra.mrb[132].mxu1 %v2462_v54  ;;  %v2398_v2 = vmax.f32 %v2366_v58, 0.0  ;;  %v2369_v61 = vadd.f32 %v5140_v59, %v2272_v57  ;;  %v5698_v48 = vld [vmem:[#allocation4 + $0x300] sm:$0xff]   ;;  %5233 = vmatprep.subr.bf16.mxu0 %v5696_v47  ;;  %v5703_v53 = vld [vmem:[#allocation4 + $0x388] sm:$0xff]   ;;  %v5704_v54 = vld [vmem:[#allocation4 + $0x350] sm:$0xff]  }
 0x36e   :  { %v5699_v33 = vld [vmem:[#allocation4 + $0x380] sm:$0xff]   ;;  %5261 = vmatprep.subr.bf16.mxu1 %v5697_v62  ;;  %5234 = vmatpush3.bf16.msra.mxu0 %v5698_v48  ;;  %v5705_v57 = vld [vmem:[#allocation4 + $0x3d0] sm:$0xff]  }
 0x36f   :  { %2417 = vst [vmem:[#allocation2 + $0x128] sm:$0xff] %v2398_v2  ;;  %v2399_v0 = vmax.f32 %v2369_v61, 0.0  ;;  %v5141_v1 = vpop.f32.mrb[120].mxu1  ;;  %5262 = vmatpush3.bf16.msra.mxu1 %v5699_v33  ;;  %5235 = vmatprep.subr.bf16.mxu0 %v5700_v50  ;;  %v5706_v58 = vld [vmem:[#allocation4 + $0x310] sm:$0xff]   ;;  %v5708_v2 = vld [vmem:[#allocation4 + $0x358] sm:$0xff]  }
 0x370   :  { %v5142_v4 = vpop.f32.mrb[121].mxu1  ;;  %v2440_v46 = vld [vmem:[#allocation2 + $0x117] ss:$2 sm:$0xff]  ;;  %v2444_v38 = vld [vmem:[#allocation2 + $0x118] ss:$2 sm:$0xff]  ;;  %5263 = vmatprep.subr.bf16.mxu1 %v5701_v51 }
 0x371   :  { %2418 = vst [vmem:[#allocation2 + $0x130] sm:$0xff] %v2399_v0  ;;  %v5143_v3 = vadd.f32 %v5142_v4, %v5141_v1  ;;  %v5144_v7 = vpop.f32.mrb[122].mxu1  ;;  %3282 = vst [vmem:[#allocation2 + $0x117] sm:$0x1] %v5875_v55  ;;  %v2448_v35 = vld [vmem:[#allocation2 + $0x119] ss:$2 sm:$0xff] }
 0x372   :  { %v5145_v6 = vpop.f32.mrb[123].mxu1  ;;  %5236 = vmatpush3.bf16.msra.mxu0 %v5702_v39  ;;  %v5707_v59 = vld [vmem:[#allocation4 + $0x390] sm:$0xff]   ;;  %v5709_v61 = vld [vmem:[#allocation4 + $0x3d8] sm:$0xff]   ;;  %v5712_v4 = vld [vmem:[#allocation4 + $0x360] sm:$0xff]  }
 0x373   :  { %v2374_v10 = vadd.f32 %v5143_v3, %v2277_v5  ;;  %v5146_v49 = vadd.f32 %v5145_v6, %v5144_v7  ;;  %5264 = vmatpush3.bf16.msra.mxu1 %v5703_v53  ;;  %5237 = vmatprep.subr.bf16.mxu0 %v5704_v54  ;;  %v5710_v0 = vld [vmem:[#allocation4 + $0x318] sm:$0xff]   ;;  %v5714_v5 = vld [vmem:[#allocation4 + $0x320] sm:$0xff]   ;;  %v5716_v7 = vld [vmem:[#allocation4 + $0x368] sm:$0xff]  }
 0x374   :  { %5265 = vmatprep.subr.bf16.mxu1 %v5705_v57  ;;  %v5711_v1 = vld [vmem:[#allocation4 + $0x398] sm:$0xff]   ;;  %v5715_v3 = vld [vmem:[#allocation4 + $0x3a0] sm:$0xff]   ;;  %v5717_v6 = vld [vmem:[#allocation4 + $0x3e8] sm:$0xff]  }
 0x375   :  { %v2400_v12 = vmax.f32 %v2374_v10, 0.0  ;;  %v2377_v13 = vadd.f32 %v5146_v49, %v2280_v9  ;;  %v5718_v9 = vld [vmem:[#allocation4 + $0x328] sm:$0xff]   ;;  %v5720_v49 = vld [vmem:[#allocation4 + $0x370] sm:$0xff]  }
 0x376   :  { %v2452_v20 = vld [vmem:[#allocation2 + $0x11a] ss:$2 sm:$0xff]  ;;  %5238 = vmatpush3.bf16.msra.mxu0 %v5706_v58 }
 0x377   :  { %2419 = vst [vmem:[#allocation2 + $0x138] sm:$0xff] %v2400_v12  ;;  %v2401_v15 = vmax.f32 %v2377_v13, 0.0  ;;  %v5147_v16 = vpop.f32.mrb[124].mxu1  ;;  %5266 = vmatpush3.bf16.msra.mxu1 %v5707_v59  ;;  %5239 = vmatprep.subr.bf16.mxu0 %v5708_v2  ;;  %v5719_v10 = vld [vmem:[#allocation4 + $0x3a8] sm:$0xff]   ;;  %v5721_v12 = vld [vmem:[#allocation4 + $0x3f0] sm:$0xff]  }
 0x378   :  { %v5148_v21 = vpop.f32.mrb[125].mxu1  ;;  %v2445_v8 = vld [vmem:[#allocation2 + $0x128] ss:$2 sm:$0xff]  ;;  %v2441_v22 = vld [vmem:[#allocation2 + $0x127] ss:$2 sm:$0xff]  ;;  %5267 = vmatprep.subr.bf16.mxu1 %v5709_v61 }
 0x379   :  { %2420 = vst [vmem:[#allocation2 + $0x140] sm:$0xff] %v2401_v15  ;;  %v5149_v24 = vadd.f32 %v5148_v21, %v5147_v16  ;;  %v5150_v25 = vpop.f32.mrb[126].mxu1  ;;  %v2465_v26 = vpack.c.bf16 %v2445_v8, %v2444_v38  ;;  %v2464_v11 = vpack.c.bf16 %v2441_v22, %v2440_v46  ;;  %3285 = vst [vmem:[#allocation2 + $0x128] sm:$0x1] %v5875_v55  ;;  %v2449_v63 = vld [vmem:[#allocation2 + $0x129] ss:$2 sm:$0xff] }
 0x37a   :  { %v5151_v27 = vpop.f32.mrb[127].mxu1  ;;  %v2466_v17 = vpack.c.bf16 %v2449_v63, %v2448_v35  ;;  %5240 = vmatpush3.bf16.msra.mxu0 %v5710_v0  ;;  %v5713_v46 = vld [vmem:[#allocation4 + $0x3e0] sm:$0xff]   ;;  %v5722_v13 = vld [vmem:[#allocation4 + $0x330] sm:$0xff]   ;;  %v5724_v16 = vld [vmem:[#allocation4 + $0x378] sm:$0xff]  }
 0x37b   :  { %v2382_v29 = vadd.f32 %v5149_v24, %v2285_v52  ;;  %v5152_v56 = vadd.f32 %v5151_v27, %v5150_v25  ;;  %2785 = vmatprep.mubr.bf16.mxu0 %v2465_v26  ;;  %5268 = vmatpush3.bf16.msra.mxu1 %v5711_v1  ;;  %v5723_v15 = vld [vmem:[#allocation4 + $0x3b0] sm:$0xff]   ;;  %v5725_v38 = vld [vmem:[#allocation4 + $0x3f8] sm:$0xff]  }
 0x37c   :  { %2786 = vmatmul.mubr.bf16.gmra.mrb[136].mxu0 %v2464_v11  ;;  %5241 = vmatprep.subr.bf16.mxu0 %v5712_v4  ;;  %v5727_v21 = vld [vmem:[#allocation4 + $0x3b8] sm:$0xff]   ;;  %v6267_v11 = vld [vmem:[%s6553_s4 + $0x2] ss:$0 sm:$0xff] }
 0x37d   :  { %v2402_v30 = vmax.f32 %v2382_v29, 0.0  ;;  %v2385_v31 = vadd.f32 %v5152_v56, %v2288_v28  ;;  %5269 = vmatprep.subr.bf16.mxu1 %v5713_v46 }
 0x37e   :  { %v2453_v32 = vld [vmem:[#allocation2 + $0x12a] ss:$2 sm:$0xff]  ;;  %5242 = vmatpush3.bf16.msra.mxu0 %v5714_v5 }
 0x37f   :  { %2421 = vst [vmem:[#allocation2 + $0x148] sm:$0xff] %v2402_v30  ;;  %v2403_v14 = vmax.f32 %v2385_v31, 0.0  ;;  %v2467_v34 = vpack.c.bf16 %v2453_v32, %v2452_v20  ;;  %5270 = vmatpush3.bf16.msra.mxu1 %v5715_v3  ;;  %5243 = vmatprep.subr.bf16.mxu0 %v5716_v7  ;;  %v5726_v20 = vld [vmem:[#allocation4 + $0x338] sm:$0xff]  }
 0x380   :  { %v2446_v36 = vld [vmem:[#allocation2 + $0x138] ss:$2 sm:$0xff]  ;;  %v2442_v40 = vld [vmem:[#allocation2 + $0x137] ss:$2 sm:$0xff]  ;;  %5271 = vmatprep.subr.bf16.mxu1 %v5717_v6 }
 0x381   :  { %2422 = vst [vmem:[#allocation2 + $0x150] sm:$0xff] %v2403_v14  ;;  %2850 = vmatprep.mubr.bf16.mxu1 %v2467_v34  ;;  %v2450_v43 = vld [vmem:[#allocation2 + $0x139] ss:$2 sm:$0xff] }
 0x382   :  { %2851 = vmatmul.mubr.bf16.gmra.mrb[136].mxu1 %v2466_v17  ;;  %5244 = vmatpush3.bf16.msra.mxu0 %v5718_v9 }
 0x383   :  { %5272 = vmatpush3.bf16.msra.mxu1 %v5719_v10  ;;  %5245 = vmatprep.subr.bf16.mxu0 %v5720_v49 }
 0x384   :  { %5273 = vmatprep.subr.bf16.mxu1 %v5721_v12 }
 0x386   :  { %v2454_v37 = vld [vmem:[#allocation2 + $0x13a] ss:$2 sm:$0xff]  ;;  %5246 = vmatpush3.bf16.msra.mxu0 %v5722_v13 }
 0x387   :  { %5274 = vmatpush3.bf16.msra.mxu1 %v5723_v15  ;;  %5247 = vmatprep.subr.bf16.mxu0 %v5724_v16 }
 0x388   :  { %v2447_v18 = vld [vmem:[#allocation2 + $0x148] ss:$2 sm:$0xff]  ;;  %v2443_v23 = vld [vmem:[#allocation2 + $0x147] ss:$2 sm:$0xff]  ;;  %5275 = vmatprep.subr.bf16.mxu1 %v5725_v38 }
 0x389   :  { %v2455_v19 = vld [vmem:[#allocation2 + $0x14a] ss:$2 sm:$0xff]  ;;  %v2469_v41 = vpack.c.bf16 %v2447_v18, %v2446_v36  ;;  %v2468_v42 = vpack.c.bf16 %v2443_v23, %v2442_v40  ;;  %v2451_v44 = vld [vmem:[#allocation2 + $0x149] ss:$2 sm:$0xff] }
 0x38a   :  { %v2471_v60 = vpack.c.bf16 %v2455_v19, %v2454_v37  ;;  %v2470_v45 = vpack.c.bf16 %v2451_v44, %v2450_v43  ;;  %5248 = vmatpush3.bf16.msra.mxu0 %v5726_v20 }
 0x38b   :  { %2793 = vmatprep.mubr.bf16.mxu0 %v2469_v41  ;;  %5276 = vmatpush3.bf16.msra.mxu1 %v5727_v21 }
 0x38c   :  { %2858 = vmatprep.mubr.bf16.mxu1 %v2471_v60  ;;  %2794 = vmatmul.mubr.bf16.gmra.mrb[140].mxu0 %v2468_v42 }
 0x38d   :  { %2859 = vmatmul.mubr.bf16.gmra.mrb[140].mxu1 %v2470_v45 }
 0x42f   :  { %v5169_v8 = vpop.f32.mrb[128].mxu0 }
 0x430   :  { %v5170_v22 = vpop.f32.mrb[129].mxu0 }
 0x431   :  { %v5171_v52 = vadd.f32 %v5170_v22, %v5169_v8  ;;  %v5172_v24 = vpop.f32.mrb[130].mxu0 }
 0x432   :  { %v5173_v25 = vpop.f32.mrb[131].mxu0 }
 0x433   :  { %v5174_v26 = vadd.f32 %v5173_v25, %v5172_v24  ;;  %v2772_v29 = vadd.f32 %v5171_v52, %v6267_v11 }
 0x435   :  { %v5209_v27 = vpop.f32.mrb[128].mxu1  ;;  %v2775_v63 = vadd.f32 %v5174_v26, %v6267_v11 }
 0x436   :  { %v5210_v28 = vpop.f32.mrb[129].mxu1 }
 0x437   :  { %v5211_v56 = vadd.f32 %v5210_v28, %v5209_v27  ;;  %v5212_v30 = vpop.f32.mrb[130].mxu1 }
 0x438   :  { %v5213_v31 = vpop.f32.mrb[131].mxu1 }
 0x439   :  { %v2837_v32 = vadd.f32 %v5211_v56, %v2772_v29  ;;  %v5214_v14 = vadd.f32 %v5213_v31, %v5212_v30 }
 0x43b   :  { %v2867_v34 = vmax.f32 %v2837_v32, 0.0  ;;  %v2840_v35 = vadd.f32 %v5214_v14, %v2775_v63 }
 0x43d   :  { %2876 = vst [vmem:[#allocation3 + $0x8] sm:$0xff] %v2867_v34  ;;  %v2868_v17 = vmax.f32 %v2840_v35, 0.0 }
 0x43f   :  { %2877 = vst [vmem:[#allocation3 + $0x10] sm:$0xff] %v2868_v17  ;;  %v5175_v36 = vpop.f32.mrb[132].mxu0 }
 0x440   :  { %v5215_v37 = vpop.f32.mrb[132].mxu1  ;;  %v5176_v40 = vpop.f32.mrb[133].mxu0 }
 0x441   :  { %v5216_v18 = vpop.f32.mrb[133].mxu1  ;;  %v5177_v19 = vadd.f32 %v5176_v40, %v5175_v36  ;;  %v5178_v41 = vpop.f32.mrb[134].mxu0 }
 0x442   :  { %v5217_v23 = vadd.f32 %v5216_v18, %v5215_v37  ;;  %v5218_v60 = vpop.f32.mrb[134].mxu1  ;;  %v5179_v42 = vpop.f32.mrb[135].mxu0 }
 0x443   :  { %v5219_v43 = vpop.f32.mrb[135].mxu1  ;;  %v2780_v44 = vadd.f32 %v5177_v19, %v6267_v11  ;;  %v5180_v45 = vadd.f32 %v5179_v42, %v5178_v41 }
 0x444   :  { %v5220_v47 = vadd.f32 %v5219_v43, %v5218_v60 }
 0x445   :  { %v2845_v62 = vadd.f32 %v5217_v23, %v2780_v44  ;;  %v2783_v48 = vadd.f32 %v5180_v45, %v6267_v11 }
 0x446   :  { %v2887_v33 = vld [vmem:[#allocation3 + $0x7] ss:$2 sm:$0xff]  ;;  %v2889_v57 = vld [vmem:[#allocation3 + $0x8] ss:$2 sm:$0xff] }
 0x447   :  { %v2869_v50 = vmax.f32 %v2845_v62, 0.0  ;;  %v2848_v51 = vadd.f32 %v5220_v47, %v2783_v48  ;;  %3649 = vst [vmem:[#allocation3 + $0x7] sm:$0x1] %v5875_v55  ;;  %v2891_v7 = vld [vmem:[#allocation3 + $0x9] ss:$2 sm:$0xff] }
 0x449   :  { %2878 = vst [vmem:[#allocation3 + $0x18] sm:$0xff] %v2869_v50  ;;  %v2870_v39 = vmax.f32 %v2848_v51, 0.0  ;;  %v5729_v50 = vld [vmem:[#allocation4 + $0x4c0] sm:$0xff]  }
 0x44a   :  { %v5730_v51 = vld [vmem:[#allocation4 + $0x400] sm:$0xff]   ;;  %5311 = vmatprep.subr.bf16.mxu1 %v5729_v50 }
 0x44b   :  { %2879 = vst [vmem:[#allocation3 + $0x20] sm:$0xff] %v2870_v39  ;;  %v5731_v39 = vld [vmem:[#allocation4 + $0x480] sm:$0xff]  }
 0x44f   :  { %v5181_v53 = vpop.f32.mrb[136].mxu0 }
 0x450   :  { %v5182_v54 = vpop.f32.mrb[137].mxu0  ;;  %v2893_v58 = vld [vmem:[#allocation3 + $0xa] ss:$2 sm:$0xff] }
 0x451   :  { %v5183_v59 = vadd.f32 %v5182_v54, %v5181_v53  ;;  %v5184_v2 = vpop.f32.mrb[138].mxu0  ;;  %3651 = vst [vmem:[#allocation3 + $0x10] sm:$0x1] %v5875_v55  ;;  %v5732_v53 = vld [vmem:[#allocation4 + $0x448] sm:$0xff]  }
 0x452   :  { %v5185_v61 = vpop.f32.mrb[139].mxu0  ;;  %v2890_v0 = vld [vmem:[#allocation3 + $0x18] ss:$2 sm:$0xff]  ;;  %v2888_v3 = vld [vmem:[#allocation3 + $0x17] ss:$2 sm:$0xff]  ;;  %v5733_v54 = vld [vmem:[#allocation4 + $0x4c8] sm:$0xff]  }
 0x453   :  { %v2894_v1 = vld [vmem:[#allocation3 + $0x1a] ss:$2 sm:$0xff]  ;;  %v5186_v4 = vadd.f32 %v5185_v61, %v5184_v2  ;;  %v2904_v46 = vpack.c.bf16 %v2890_v0, %v2889_v57  ;;  %v2892_v6 = vld [vmem:[#allocation3 + $0x19] ss:$2 sm:$0xff]  ;;  %v2903_v9 = vpack.c.bf16 %v2888_v3, %v2887_v33  ;;  %v2788_v13 = vadd.f32 %v5183_v59, %v6267_v11  ;;  %v5736_v59 = vld [vmem:[#allocation4 + $0x450] sm:$0xff]  }
 0x454   :  { %v2906_v5 = vpack.c.bf16 %v2894_v1, %v2893_v58  ;;  %v2905_v10 = vpack.c.bf16 %v2892_v6, %v2891_v7  ;;  %v5728_v33 = vld [vmem:[#allocation4 + $0x440] sm:$0xff]   ;;  %v5734_v57 = vld [vmem:[#allocation4 + $0x408] sm:$0xff]   ;;  %v5737_v2 = vld [vmem:[#allocation4 + $0x4d0] sm:$0xff]  }
 0x455   :  { %v5221_v49 = vpop.f32.mrb[136].mxu1  ;;  %3208 = vmatprep.mubr.bf16.mxu0 %v2904_v46  ;;  %v2791_v20 = vadd.f32 %v5186_v4, %v6267_v11  ;;  %5289 = vmatprep.subr.bf16.mxu0 %v5728_v33  ;;  %v5735_v58 = vld [vmem:[#allocation4 + $0x488] sm:$0xff]   ;;  %v5738_v61 = vld [vmem:[#allocation4 + $0x410] sm:$0xff]   ;;  %v5740_v1 = vld [vmem:[#allocation4 + $0x458] sm:$0xff]  }
 0x456   :  { %3257 = vmatprep.mubr.bf16.mxu1 %v2906_v5  ;;  %v5222_v12 = vpop.f32.mrb[137].mxu1  ;;  %3209 = vmatmul.mubr.bf16.vlgmr.msra.gmra.mrb[144].mxu0 %v2903_v9  ;;  %v5739_v0 = vld [vmem:[#allocation4 + $0x490] sm:$0xff]   ;;  %v5741_v4 = vld [vmem:[#allocation4 + $0x4d8] sm:$0xff]   ;;  %v5744_v3 = vld [vmem:[#allocation4 + $0x460] sm:$0xff]  }
 0x457   :  { %3258 = vmatmul.mubr.bf16.vlgmr.msra.gmra.mrb[144].mxu1 %v2905_v10  ;;  %v5223_v15 = vadd.f32 %v5222_v12, %v5221_v49  ;;  %v5224_v16 = vpop.f32.mrb[138].mxu1  ;;  %5290 = vmatpush3.bf16.msra.mxu0 %v5730_v51  ;;  %v5742_v46 = vld [vmem:[#allocation4 + $0x418] sm:$0xff]   ;;  %v5745_v7 = vld [vmem:[#allocation4 + $0x4e0] sm:$0xff]   ;;  %v5748_v10 = vld [vmem:[#allocation4 + $0x468] sm:$0xff]  }
 0x458   :  { %v5225_v38 = vpop.f32.mrb[139].mxu1  ;;  %5312 = vmatpush3.bf16.msra.mxu1 %v5731_v39  ;;  %5291 = vmatprep.subr.bf16.mxu0 %v5732_v53  ;;  %v5743_v5 = vld [vmem:[#allocation4 + $0x498] sm:$0xff]   ;;  %v5746_v6 = vld [vmem:[#allocation4 + $0x420] sm:$0xff]   ;;  %v5749_v49 = vld [vmem:[#allocation4 + $0x4e8] sm:$0xff]  }
 0x459   :  { %v2853_v21 = vadd.f32 %v5223_v15, %v2788_v13  ;;  %v5226_v8 = vadd.f32 %v5225_v38, %v5224_v16  ;;  %5313 = vmatprep.subr.bf16.mxu1 %v5733_v54  ;;  %v5747_v9 = vld [vmem:[#allocation4 + $0x4a0] sm:$0xff]   ;;  %v5750_v12 = vld [vmem:[#allocation4 + $0x428] sm:$0xff]   ;;  %v5752_v15 = vld [vmem:[#allocation4 + $0x470] sm:$0xff]  }
 0x45a   :  { %v5751_v13 = vld [vmem:[#allocation4 + $0x4a8] sm:$0xff]   ;;  %v5753_v16 = vld [vmem:[#allocation4 + $0x4f0] sm:$0xff]  }
 0x45b   :  { %v2871_v22 = vmax.f32 %v2853_v21, 0.0  ;;  %v2856_v52 = vadd.f32 %v5226_v8, %v2791_v20  ;;  %5292 = vmatpush3.bf16.msra.mxu0 %v5734_v57  ;;  %v5754_v38 = vld [vmem:[#allocation4 + $0x430] sm:$0xff]   ;;  %v5756_v21 = vld [vmem:[#allocation4 + $0x478] sm:$0xff]  }
 0x45c   :  { %5314 = vmatpush3.bf16.msra.mxu1 %v5735_v58  ;;  %5293 = vmatprep.subr.bf16.mxu0 %v5736_v59  ;;  %v5755_v20 = vld [vmem:[#allocation4 + $0x4b0] sm:$0xff]   ;;  %v5757_v8 = vld [vmem:[#allocation4 + $0x4f8] sm:$0xff]  }
 0x45d   :  { %2882 = vst [vmem:[#allocation3 + $0x98] sm:$0xff] %v2871_v22  ;;  %v2872_v24 = vmax.f32 %v2856_v52, 0.0  ;;  %5315 = vmatprep.subr.bf16.mxu1 %v5737_v2  ;;  %v5758_v22 = vld [vmem:[#allocation4 + $0x438] sm:$0xff]  }
 0x45e   :  { %v5759_v52 = vld [vmem:[#allocation4 + $0x4b8] sm:$0xff]  }
 0x45f   :  { %2883 = vst [vmem:[#allocation3 + $0xa0] sm:$0xff] %v2872_v24  ;;  %v5187_v25 = vpop.f32.mrb[140].mxu0  ;;  %5294 = vmatpush3.bf16.msra.mxu0 %v5738_v61  ;;  %v5760_v24 = vld [vmem:[%s6554_s5 + $0x40] sm:$0xff]  }
 0x460   :  { %v5227_v26 = vpop.f32.mrb[140].mxu1  ;;  %v5188_v27 = vpop.f32.mrb[141].mxu0  ;;  %5316 = vmatpush3.bf16.msra.mxu1 %v5739_v0  ;;  %5295 = vmatprep.subr.bf16.mxu0 %v5740_v1  ;;  %v5761_v61 = vld [vmem:[%s6554_s5 + $0x80] sm:$0xff]  }
 0x461   :  { %v5228_v28 = vpop.f32.mrb[141].mxu1  ;;  %v5189_v29 = vadd.f32 %v5188_v27, %v5187_v25  ;;  %v5190_v30 = vpop.f32.mrb[142].mxu0  ;;  %5317 = vmatprep.subr.bf16.mxu1 %v5741_v4  ;;  %v4637_v27 = vld [vmem:[%s6553_s4 + $0x3] ss:$0 sm:$0xff] }
 0x462   :  { %v5229_v56 = vadd.f32 %v5228_v28, %v5227_v26  ;;  %v5230_v31 = vpop.f32.mrb[142].mxu1  ;;  %v5191_v63 = vpop.f32.mrb[143].mxu0 }
 0x463   :  { %v5231_v32 = vpop.f32.mrb[143].mxu1  ;;  %v2796_v14 = vadd.f32 %v5189_v29, %v6267_v11  ;;  %v5192_v34 = vadd.f32 %v5191_v63, %v5190_v30  ;;  %5296 = vmatpush3.bf16.msra.mxu0 %v5742_v46 }
 0x464   :  { %v5232_v35 = vadd.f32 %v5231_v32, %v5230_v31  ;;  %5318 = vmatpush3.bf16.msra.mxu1 %v5743_v5  ;;  %5297 = vmatprep.subr.bf16.mxu0 %v5744_v3 }
 0x465   :  { %v2861_v17 = vadd.f32 %v5229_v56, %v2796_v14  ;;  %v2799_v36 = vadd.f32 %v5192_v34, %v6267_v11  ;;  %5319 = vmatprep.subr.bf16.mxu1 %v5745_v7 }
 0x466   :  { %v2895_v37 = vld [vmem:[#allocation3 + $0x97] ss:$2 sm:$0xff]  ;;  %v2897_v23 = vld [vmem:[#allocation3 + $0x98] ss:$2 sm:$0xff] }
 0x467   :  { %v2873_v40 = vmax.f32 %v2861_v17, 0.0  ;;  %v2864_v18 = vadd.f32 %v5232_v35, %v2799_v36  ;;  %3655 = vst [vmem:[#allocation3 + $0x97] sm:$0x1] %v5875_v55  ;;  %v2899_v62 = vld [vmem:[#allocation3 + $0x99] ss:$2 sm:$0xff]  ;;  %5298 = vmatpush3.bf16.msra.mxu0 %v5746_v6 }
 0x468   :  { %5320 = vmatpush3.bf16.msra.mxu1 %v5747_v9  ;;  %5299 = vmatprep.subr.bf16.mxu0 %v5748_v10  ;;  %v5762_v9 = vld [vmem:[%s6554_s5] sm:$0xff]  }
 0x469   :  { %2884 = vst [vmem:[#allocation3 + $0xa8] sm:$0xff] %v2873_v40  ;;  %v2874_v19 = vmax.f32 %v2864_v18, 0.0  ;;  %5321 = vmatprep.subr.bf16.mxu1 %v5749_v49  ;;  %v5763_v49 = vld [vmem:[%s6554_s5 + $0x48] sm:$0xff]  }
 0x46b   :  { %2885 = vst [vmem:[#allocation3 + $0xb0] sm:$0xff] %v2874_v19  ;;  %5300 = vmatpush3.bf16.msra.mxu0 %v5750_v12  ;;  %v5764_v12 = vld [vmem:[%s6554_s5 + $0x88] sm:$0xff]  }
 0x46c   :  { %5322 = vmatpush3.bf16.msra.mxu1 %v5751_v13  ;;  %5301 = vmatprep.subr.bf16.mxu0 %v5752_v15  ;;  %v5765_v13 = vld [vmem:[%s6554_s5 + $0x8] sm:$0xff]   ;;  %v5766_v15 = vld [vmem:[%s6554_s5 + $0x50] sm:$0xff]  }
 0x46d   :  { %5323 = vmatprep.subr.bf16.mxu1 %v5753_v16  ;;  %v5767_v16 = vld [vmem:[%s6554_s5 + $0x90] sm:$0xff]  }
 0x46f   :  { %5302 = vmatpush3.bf16.msra.mxu0 %v5754_v38  ;;  %v5768_v38 = vld [vmem:[%s6554_s5 + $0x10] sm:$0xff]  }
 0x470   :  { %v2901_v41 = vld [vmem:[#allocation3 + $0x9a] ss:$2 sm:$0xff]  ;;  %5324 = vmatpush3.bf16.msra.mxu1 %v5755_v20  ;;  %5303 = vmatprep.subr.bf16.mxu0 %v5756_v21 }
 0x471   :  { %3657 = vst [vmem:[#allocation3 + $0xa0] sm:$0x1] %v5875_v55  ;;  %5325 = vmatprep.subr.bf16.mxu1 %v5757_v8  ;;  %v5769_v20 = vld [vmem:[%s6554_s5 + $0x58] sm:$0xff]  }
 0x472   :  { %v2898_v60 = vld [vmem:[#allocation3 + $0xa8] ss:$2 sm:$0xff]  ;;  %v2896_v43 = vld [vmem:[#allocation3 + $0xa7] ss:$2 sm:$0xff]  ;;  %v5770_v21 = vld [vmem:[%s6554_s5 + $0x98] sm:$0xff]  }
 0x473   :  { %v2902_v42 = vld [vmem:[#allocation3 + $0xaa] ss:$2 sm:$0xff]  ;;  %v2908_v44 = vpack.c.bf16 %v2898_v60, %v2897_v23  ;;  %v2907_v47 = vpack.c.bf16 %v2896_v43, %v2895_v37  ;;  %v2900_v11 = vld [vmem:[#allocation3 + $0xa9] ss:$2 sm:$0xff]  ;;  %5304 = vmatpush3.bf16.msra.mxu0 %v5758_v22  ;;  %v5772_v22 = vld [vmem:[%s6554_s5 + $0x60] sm:$0xff]  }
 0x474   :  { %v2910_v45 = vpack.c.bf16 %v2902_v42, %v2901_v41  ;;  %v2909_v48 = vpack.c.bf16 %v2900_v11, %v2899_v62  ;;  %5326 = vmatpush3.bf16.msra.mxu1 %v5759_v52  ;;  %5333 = vmatprep.subr.bf16.mxu0 %v5760_v24  ;;  %v5771_v8 = vld [vmem:[%s6554_s5 + $0x18] sm:$0xff]   ;;  %v5773_v52 = vld [vmem:[%s6554_s5 + $0xa0] sm:$0xff]  }
 0x475   :  { %3216 = vmatprep.mubr.bf16.mxu0 %v2908_v44  ;;  %5479 = vmatprep.subr.bf16.mxu1 %v5875_v55  ;;  %v5774_v24 = vld [vmem:[%s6554_s5 + $0x20] sm:$0xff]  }
 0x476   :  { %3265 = vmatprep.mubr.bf16.mxu1 %v2910_v45  ;;  %3217 = vmatmul.mubr.bf16.gmra.mrb[148].mxu0 %v2907_v47 }
 0x477   :  { %3266 = vmatmul.mubr.bf16.gmra.mrb[148].mxu1 %v2909_v48 }
 0x529   :  { %v5249_v25 = vpop.f32.mrb[144].mxu0 }
 0x52a   :  { %v5277_v26 = vpop.f32.mrb[144].mxu1  ;;  %v5250_v28 = vpop.f32.mrb[145].mxu0 }
 0x52b   :  { %v5278_v29 = vpop.f32.mrb[145].mxu1  ;;  %v5251_v56 = vadd.f32 %v5250_v28, %v5249_v25  ;;  %v5252_v31 = vpop.f32.mrb[146].mxu0  ;;  %v5775_v25 = vld [vmem:[%s6554_s5 + $0x68] sm:$0xff]   ;;  %v5778_v28 = vld [vmem:[%s6554_s5 + $0x70] sm:$0xff]  }
 0x52c   :  { %v5279_v30 = vadd.f32 %v5278_v29, %v5277_v26  ;;  %v5280_v63 = vpop.f32.mrb[146].mxu1  ;;  %v5253_v32 = vpop.f32.mrb[147].mxu0  ;;  %v5776_v26 = vld [vmem:[%s6554_s5 + $0xa8] sm:$0xff]   ;;  %v5779_v29 = vld [vmem:[%s6554_s5 + $0xb0] sm:$0xff]  }
 0x52d   :  { %v5281_v14 = vpop.f32.mrb[147].mxu1  ;;  %v3211_v34 = vadd.f32 %v5251_v56, %v4637_v27  ;;  %v5254_v35 = vadd.f32 %v5253_v32, %v5252_v31  ;;  %v5780_v56 = vld [vmem:[%s6554_s5 + $0x30] sm:$0xff]   ;;  %v5782_v31 = vld [vmem:[%s6554_s5 + $0xb8] sm:$0xff]  }
 0x52e   :  { %v5282_v17 = vadd.f32 %v5281_v14, %v5280_v63  ;;  %v5783_v63 = vld [vmem:[%s6554_s5 + $0x38] sm:$0xff]  }
 0x52f   :  { %v3260_v36 = vadd.f32 %v5279_v30, %v3211_v34  ;;  %v3214_v37 = vadd.f32 %v5254_v35, %v4637_v27  ;;  %v5781_v30 = vld [vmem:[%s6554_s5 + $0x78] sm:$0xff]   ;;  %v4671_v34 = vld [vmem:[%s6553_s4 + $0x4] ss:$0 sm:$0xff] }
 0x531   :  { %v3274_v40 = vmax.f32 %v3260_v36, 0.0  ;;  %v3263_v18 = vadd.f32 %v5282_v17, %v3214_v37 }
 0x533   :  { %3279 = vst [vmem:[#allocation2 + $0x8] sm:$0xff] %v3274_v40  ;;  %v3275_v19 = vmax.f32 %v3263_v18, 0.0 }
 0x535   :  { %3280 = vst [vmem:[#allocation2 + $0x10] sm:$0xff] %v3275_v19 }
 0x53c   :  { %v3287_v58 = vld [vmem:[#allocation2 + $0x8] ss:$2 sm:$0xff]  ;;  %v3286_v2 = vld [vmem:[#allocation2 + $0x7] ss:$2 sm:$0xff] }
 0x53d   :  { %v3289_v59 = vld [vmem:[#allocation2 + $0xa] ss:$2 sm:$0xff]  ;;  %v3288_v7 = vld [vmem:[#allocation2 + $0x9] ss:$2 sm:$0xff] }
 0x549   :  { %v5255_v23 = vpop.f32.mrb[148].mxu0 }
 0x54a   :  { %v5283_v41 = vpop.f32.mrb[148].mxu1  ;;  %v5256_v60 = vpop.f32.mrb[149].mxu0 }
 0x54b   :  { %v5284_v42 = vpop.f32.mrb[149].mxu1  ;;  %v5257_v43 = vadd.f32 %v5256_v60, %v5255_v23  ;;  %v5258_v45 = vpop.f32.mrb[150].mxu0 }
 0x54c   :  { %v5285_v44 = vadd.f32 %v5284_v42, %v5283_v41  ;;  %v5286_v47 = vpop.f32.mrb[150].mxu1  ;;  %v5259_v62 = vpop.f32.mrb[151].mxu0 }
 0x54d   :  { %v5287_v11 = vpop.f32.mrb[151].mxu1  ;;  %v3219_v48 = vadd.f32 %v5257_v43, %v4637_v27  ;;  %v5260_v33 = vadd.f32 %v5259_v62, %v5258_v45 }
 0x54e   :  { %v5288_v50 = vadd.f32 %v5287_v11, %v5286_v47 }
 0x54f   :  { %v3268_v51 = vadd.f32 %v5285_v44, %v3219_v48  ;;  %v3222_v39 = vadd.f32 %v5260_v33, %v4637_v27  ;;  %v5777_v27 = vld [vmem:[%s6554_s5 + $0x28] sm:$0xff]  }
 0x551   :  { %v3276_v53 = vmax.f32 %v3268_v51, 0.0  ;;  %v3271_v54 = vadd.f32 %v5288_v50, %v3222_v39 }
 0x553   :  { %3283 = vst [vmem:[#allocation2 + $0x118] sm:$0xff] %v3276_v53  ;;  %v3277_v57 = vmax.f32 %v3271_v54, 0.0  ;;  %v5784_v54 = vld [vmem:[%s6555_s6] sm:$0xff]  }
 0x555   :  { %3284 = vst [vmem:[#allocation2 + $0x120] sm:$0xff] %v3277_v57 }
 0x55c   :  { %v3291_v0 = vld [vmem:[#allocation2 + $0x118] ss:$2 sm:$0xff]  ;;  %v3290_v4 = vld [vmem:[#allocation2 + $0x117] ss:$2 sm:$0xff] }
 0x55d   :  { %v3293_v1 = vld [vmem:[#allocation2 + $0x11a] ss:$2 sm:$0xff]  ;;  %v3295_v46 = vpack.c.bf16 %v3291_v0, %v3287_v58  ;;  %v3294_v3 = vpack.c.bf16 %v3290_v4, %v3286_v2  ;;  %v3292_v6 = vld [vmem:[#allocation2 + $0x119] ss:$2 sm:$0xff]  ;;  %v5786_v2 = vld [vmem:[%s6555_s6 + $0x10] sm:$0xff]  }
 0x55e   :  { %v3297_v5 = vpack.c.bf16 %v3293_v1, %v3289_v59  ;;  %v3296_v10 = vpack.c.bf16 %v3292_v6, %v3288_v7  ;;  %v5785_v59 = vld [vmem:[%s6555_s6 + $0x8] sm:$0xff]   ;;  %v5788_v0 = vld [vmem:[%s6555_s6 + $0x20] sm:$0xff]   ;;  %v5790_v4 = vld [vmem:[%s6555_s6 + $0x30] sm:$0xff]  }
 0x55f   :  { %3595 = vmatprep.mubr.bf16.mxu0 %v3295_v46  ;;  %v5789_v1 = vld [vmem:[%s6555_s6 + $0x28] sm:$0xff]   ;;  %v5791_v46 = vld [vmem:[%s6555_s6 + $0x38] sm:$0xff]  }
 0x560   :  { %3636 = vmatprep.mubr.bf16.mxu1 %v3297_v5  ;;  %3596 = vmatmul.mubr.bf16.vlgmr.msra.gmra.mrb[152].mxu0 %v3294_v3  ;;  %v5792_v5 = vld [vmem:[%s6554_s5 + $0x40] sm:$0xff]   ;;  %v5795_v7 = vld [vmem:[%s6554_s5 + $0x48] sm:$0xff]  }
 0x561   :  { %3637 = vmatmul.mubr.bf16.vlgmr.msra.gmra.mrb[152].mxu1 %v3296_v10  ;;  %5334 = vmatpush3.bf16.msra.mxu0 %v5762_v9  ;;  %v5794_v3 = vld [vmem:[%s6554_s5] sm:$0xff]   ;;  %v5797_v6 = vld [vmem:[%s6554_s5 + $0x8] sm:$0xff]   ;;  %v5798_v9 = vld [vmem:[%s6554_s5 + $0x50] sm:$0xff]  }
 0x562   :  { %5480 = vmatpush3.bf16.msra.mxu1 %v5761_v61  ;;  %5335 = vmatprep.subr.bf16.mxu0 %v5763_v49  ;;  %v5787_v61 = vld [vmem:[%s6555_s6 + $0x18] sm:$0xff]   ;;  %v5800_v10 = vld [vmem:[%s6554_s5 + $0x10] sm:$0xff]  }
 0x563   :  { %5481 = vmatprep.subr.bf16.mxu1 %v5875_v55  ;;  %5495 = vmatprep.mubr.msk.bf16.mxu1 %vm5876_vm2, %v5875_v55  ;;  %v5801_v49 = vld [vmem:[%s6554_s5 + $0x58] sm:$0xff]  }
 0x565   :  { %5336 = vmatpush3.bf16.msra.mxu0 %v5765_v13 }
 0x566   :  { %5482 = vmatpush3.bf16.msra.mxu1 %v5764_v12  ;;  %5337 = vmatprep.subr.bf16.mxu0 %v5766_v15  ;;  %v5803_v12 = vld [vmem:[%s6554_s5 + $0x18] sm:$0xff]  }
 0x567   :  { %5483 = vmatprep.subr.bf16.mxu1 %v5875_v55 }
 0x569   :  { %5338 = vmatpush3.bf16.msra.mxu0 %v5768_v38 }
 0x56a   :  { %5484 = vmatpush3.bf16.msra.mxu1 %v5767_v16  ;;  %5339 = vmatprep.subr.bf16.mxu0 %v5769_v20 }
 0x56b   :  { %5485 = vmatprep.subr.bf16.mxu1 %v5875_v55 }
 0x56d   :  { %5340 = vmatpush3.bf16.msra.mxu0 %v5771_v8 }
 0x56e   :  { %5486 = vmatpush3.bf16.msra.mxu1 %v5770_v21  ;;  %5341 = vmatprep.subr.bf16.mxu0 %v5772_v22 }
 0x56f   :  { %5487 = vmatprep.subr.bf16.mxu1 %v5875_v55 }
 0x571   :  { %5342 = vmatpush3.bf16.msra.mxu0 %v5774_v24 }
 0x572   :  { %5488 = vmatpush3.bf16.msra.mxu1 %v5773_v52  ;;  %5343 = vmatprep.subr.bf16.mxu0 %v5775_v25 }
 0x573   :  { %5489 = vmatprep.subr.bf16.mxu1 %v5875_v55 }
 0x575   :  { %5344 = vmatpush3.bf16.msra.mxu0 %v5777_v27 }
 0x576   :  { %5490 = vmatpush3.bf16.msra.mxu1 %v5776_v26  ;;  %5345 = vmatprep.subr.bf16.mxu0 %v5778_v28 }
 0x577   :  { %5491 = vmatprep.subr.bf16.mxu1 %v5875_v55 }
 0x579   :  { %5346 = vmatpush3.bf16.msra.mxu0 %v5780_v56 }
 0x57a   :  { %5492 = vmatpush3.bf16.msra.mxu1 %v5779_v29  ;;  %5347 = vmatprep.subr.bf16.mxu0 %v5781_v30  ;;  %v5793_v29 = vld [vmem:[%s6554_s5 + $0x80] sm:$0xff]   ;;  %v5796_v30 = vld [vmem:[%s6554_s5 + $0x88] sm:$0xff]  }
 0x57b   :  { %5493 = vmatprep.subr.bf16.mxu1 %v5875_v55 }
 0x57d   :  { %5348 = vmatpush3.bf16.msra.mxu0 %v5783_v63  ;;  %v5802_v63 = vld [vmem:[%s6554_s5 + $0x98] sm:$0xff]  }
 0x57e   :  { %5494 = vmatpush3.bf16.msra.mxu1 %v5782_v31  ;;  %5499 = vmatprep.subr.bf16.mxu0 %v5875_v55  ;;  %v5799_v31 = vld [vmem:[%s6554_s5 + $0x90] sm:$0xff]  }
 0x57f   :  { %5373 = vmatprep.subr.bf16.mxu1 %v5792_v5 }
 0x633   :  { %v5305_v32 = vpop.f32.mrb[152].mxu0 }
 0x634   :  { %v5327_v14 = vpop.f32.mrb[152].mxu1  ;;  %v5306_v35 = vpop.f32.mrb[153].mxu0 }
 0x635   :  { %v5328_v17 = vpop.f32.mrb[153].mxu1  ;;  %v5307_v36 = vadd.f32 %v5306_v35, %v5305_v32  ;;  %v5308_v40 = vpop.f32.mrb[154].mxu0  ;;  %v5804_v32 = vld [vmem:[%s6554_s5 + $0x60] sm:$0xff]   ;;  %v5807_v35 = vld [vmem:[%s6554_s5 + $0x68] sm:$0xff]  }
 0x636   :  { %v5329_v37 = vadd.f32 %v5328_v17, %v5327_v14  ;;  %v5330_v18 = vpop.f32.mrb[154].mxu1  ;;  %v5309_v19 = vpop.f32.mrb[155].mxu0  ;;  %v5805_v14 = vld [vmem:[%s6554_s5 + $0xa0] sm:$0xff]   ;;  %v5808_v17 = vld [vmem:[%s6554_s5 + $0xa8] sm:$0xff]  }
 0x637   :  { %v5331_v23 = vpop.f32.mrb[155].mxu1  ;;  %v3598_v41 = vadd.f32 %v5307_v36, %v4671_v34  ;;  %v5310_v60 = vadd.f32 %v5309_v19, %v5308_v40  ;;  %v5809_v36 = vld [vmem:[%s6554_s5 + $0x28] sm:$0xff]   ;;  %v5811_v40 = vld [vmem:[%s6554_s5 + $0xb0] sm:$0xff]   ;;  %v5813_v19 = vld [vmem:[%s6554_s5 + $0x78] sm:$0xff]  }
 0x638   :  { %v5332_v42 = vadd.f32 %v5331_v23, %v5330_v18  ;;  %v5812_v18 = vld [vmem:[%s6554_s5 + $0x30] sm:$0xff]   ;;  %v5814_v23 = vld [vmem:[%s6554_s5 + $0xb8] sm:$0xff]  }
 0x639   :  { %v6370_v43 = vadd.f32 %v5329_v37, %v3598_v41  ;;  %v3601_v44 = vadd.f32 %v5310_v60, %v4671_v34  ;;  %v5806_v34 = vld [vmem:[%s6554_s5 + $0x20] sm:$0xff]   ;;  %v5810_v37 = vld [vmem:[%s6554_s5 + $0x70] sm:$0xff]   ;;  %v5815_v41 = vld [vmem:[%s6554_s5 + $0x38] sm:$0xff]  }
 0x63b   :  { %v3645_v45 = vmax.f32 %v6370_v43, 0.0  ;;  %v6373_v47 = vadd.f32 %v5332_v42, %v3601_v44 }
 0x63d   :  { %v3647_v62 = vmax.f32 %v3645_v45, 0.0  ;;  %v3646_v11 = vmax.f32 %v6373_v47, 0.0  ;;  %v5817_v47 = vld [vmem:[%s6555_s6 + $0x8] sm:$0xff]  }
 0x63f   :  { %3650 = vst [vmem:[#allocation3 + $0x8] sm:$0xff] %v3647_v62  ;;  %v3648_v48 = vmax.f32 %v3646_v11, 0.0 }
 0x641   :  { %3656 = vst [vmem:[#allocation3 + $0x98] sm:$0xff] %v3648_v48  ;;  %v3662_v33 = vpack.c.bf16 %v3648_v48, %v3647_v62 }
 0x643   :  { %3888 = vmatprep.mubr.bf16.mxu0 %v3662_v33 }
 0x646   :  { %v3654_v50 = vld [vmem:[#allocation3 + $0x9] sm:$0xff] }
 0x647   :  { %v3652_v51 = vld [vmem:[#allocation3 + $0x7] sm:$0xff]  ;;  %4052 = vst [vmem:[#allocation3 + $0x10] sm:$0x1] %v5875_v55 }
 0x648   :  { %4050 = vst [vmem:[#allocation3 + $0x7] sm:$0x1] %v5875_v55  ;;  %v3660_v39 = vld [vmem:[#allocation3 + $0x99] sm:$0xff] }
 0x649   :  { %v3658_v53 = vld [vmem:[#allocation3 + $0x97] sm:$0xff]  ;;  %v3663_v57 = vpack.c.bf16 %v3660_v39, %v3654_v50  ;;  %4058 = vst [vmem:[#allocation3 + $0xa0] sm:$0x1] %v5875_v55 }
 0x64a   :  { %v3661_v58 = vpack.c.bf16 %v3658_v53, %v3652_v51  ;;  %4056 = vst [vmem:[#allocation3 + $0x97] sm:$0x1] %v5875_v55 }
 0x64b   :  { %5496 = vmatmul.mubr.bf16.vlgmr.msra.gmra.mrb[156].mxu1 %v3663_v57 }
 0x64c   :  { %3889 = vmatmul.mubr.bf16.vlgmr.msra.gmra.mrb[156].mxu0 %v3661_v58  ;;  %5374 = vmatpush3.bf16.msra.mxu1 %v5794_v3 }
 0x64d   :  { %5500 = vmatpush3.bf16.msra.mxu0 %v5784_v54  ;;  %5515 = vmatprep.mubr.msk.bf16.mxu0 %vm5876_vm2, %v5875_v55  ;;  %v5816_v54 = vld [vmem:[%s6555_s6] sm:$0xff]  }
 0x64e   :  { %5501 = vmatprep.subr.bf16.mxu0 %v5875_v55  ;;  %5375 = vmatprep.subr.bf16.mxu1 %v5795_v7 }
 0x650   :  { %5376 = vmatpush3.bf16.msra.mxu1 %v5797_v6 }
 0x651   :  { %5502 = vmatpush3.bf16.msra.mxu0 %v5785_v59  ;;  %5377 = vmatprep.subr.bf16.mxu1 %v5798_v9 }
 0x652   :  { %5503 = vmatprep.subr.bf16.mxu0 %v5875_v55 }
 0x654   :  { %5378 = vmatpush3.bf16.msra.mxu1 %v5800_v10 }
 0x655   :  { %5504 = vmatpush3.bf16.msra.mxu0 %v5786_v2  ;;  %5379 = vmatprep.subr.bf16.mxu1 %v5801_v49  ;;  %v5819_v2 = vld [vmem:[%s6555_s6 + $0x18] sm:$0xff]  }
 0x656   :  { %5505 = vmatprep.subr.bf16.mxu0 %v5875_v55 }
 0x658   :  { %5380 = vmatpush3.bf16.msra.mxu1 %v5803_v12 }
 0x659   :  { %5506 = vmatpush3.bf16.msra.mxu0 %v5787_v61  ;;  %5381 = vmatprep.subr.bf16.mxu1 %v5804_v32  ;;  %v5820_v61 = vld [vmem:[%s6555_s6 + $0x20] sm:$0xff]  }
 0x65a   :  { %5507 = vmatprep.subr.bf16.mxu0 %v5875_v55 }
 0x65c   :  { %5382 = vmatpush3.bf16.msra.mxu1 %v5806_v34 }
 0x65d   :  { %5508 = vmatpush3.bf16.msra.mxu0 %v5788_v0  ;;  %5383 = vmatprep.subr.bf16.mxu1 %v5807_v35  ;;  %v5821_v0 = vld [vmem:[%s6555_s6 + $0x28] sm:$0xff]  }
 0x65e   :  { %5509 = vmatprep.subr.bf16.mxu0 %v5875_v55 }
 0x660   :  { %5384 = vmatpush3.bf16.msra.mxu1 %v5809_v36 }
 0x661   :  { %5510 = vmatpush3.bf16.msra.mxu0 %v5789_v1  ;;  %5385 = vmatprep.subr.bf16.mxu1 %v5810_v37  ;;  %v5822_v1 = vld [vmem:[%s6555_s6 + $0x30] sm:$0xff]  }
 0x662   :  { %5511 = vmatprep.subr.bf16.mxu0 %v5875_v55 }
 0x664   :  { %5386 = vmatpush3.bf16.msra.mxu1 %v5812_v18 }
 0x665   :  { %5512 = vmatpush3.bf16.msra.mxu0 %v5790_v4  ;;  %5387 = vmatprep.subr.bf16.mxu1 %v5813_v19  ;;  %v5823_v4 = vld [vmem:[%s6555_s6 + $0x38] sm:$0xff]  }
 0x666   :  { %5513 = vmatprep.subr.bf16.mxu0 %v5875_v55 }
 0x668   :  { %5388 = vmatpush3.bf16.msra.mxu1 %v5815_v41 }
 0x669   :  { %5514 = vmatpush3.bf16.msra.mxu0 %v5791_v46  ;;  %5539 = vmatprep.subr.bf16.mxu1 %v5875_v55 }
 0x66a   :  { %5519 = vmatprep.subr.bf16.mxu0 %v5875_v55 }
 0x71e   :  { %v3931_v13 = vpop.f32.mrb[156].mxu1 }
 0x71f   :  { %v5349_v15 = vpop.f32.mrb[156].mxu0  ;;  %v5497_v16 = vpop.f32.mrb[157].mxu1 }
 0x720   :  { %v5350_v38 = vpop.f32.mrb[157].mxu0  ;;  %v3934_v21 = vpop.f32.mrb[158].mxu1 }
 0x721   :  { %v5351_v20 = vadd.f32 %v5350_v38, %v5349_v15  ;;  %v5352_v8 = vpop.f32.mrb[158].mxu0  ;;  %v5498_v22 = vpop.f32.mrb[159].mxu1 }
 0x722   :  { %v5353_v52 = vpop.f32.mrb[159].mxu0 }
 0x723   :  { %v3932_v24 = vadd.f32 %v5351_v20, %v3931_v13  ;;  %v5354_v25 = vadd.f32 %v5353_v52, %v5352_v8 }
 0x725   :  { %v3935_v26 = vadd.f32 %v5354_v25, %v3934_v21  ;;  %v3938_v27 = vmax.f32 %v3932_v24, 0.0 }
 0x727   :  { %v3939_v28 = vmax.f32 %v3935_v26, 0.0 }
 0x729   :  { %v3940_v56 = vpack.c.bf16 %v3939_v28, %v3938_v27 }
 0x72b   :  { %5516 = vmatmul.mubr.bf16.vlgmr.msra.gmra.mrb[160].mxu0 %v3940_v56 }
 0x72c   :  { %5520 = vmatpush3.bf16.msra.mxu0 %v5793_v29  ;;  %5535 = vmatprep.mubr.msk.bf16.mxu0 %vm5876_vm2, %v5875_v55 }
 0x72d   :  { %5521 = vmatprep.subr.bf16.mxu0 %v5875_v55 }
 0x730   :  { %5522 = vmatpush3.bf16.msra.mxu0 %v5796_v30 }
 0x731   :  { %5523 = vmatprep.subr.bf16.mxu0 %v5875_v55 }
 0x734   :  { %5524 = vmatpush3.bf16.msra.mxu0 %v5799_v31 }
 0x735   :  { %5525 = vmatprep.subr.bf16.mxu0 %v5875_v55 }
 0x738   :  { %5526 = vmatpush3.bf16.msra.mxu0 %v5802_v63 }
 0x739   :  { %5527 = vmatprep.subr.bf16.mxu0 %v5875_v55 }
 0x73c   :  { %5528 = vmatpush3.bf16.msra.mxu0 %v5805_v14 }
 0x73d   :  { %5529 = vmatprep.subr.bf16.mxu0 %v5875_v55 }
 0x740   :  { %5530 = vmatpush3.bf16.msra.mxu0 %v5808_v17 }
 0x741   :  { %5531 = vmatprep.subr.bf16.mxu0 %v5875_v55 }
 0x744   :  { %5532 = vmatpush3.bf16.msra.mxu0 %v5811_v40 }
 0x745   :  { %5533 = vmatprep.subr.bf16.mxu0 %v5875_v55 }
 0x748   :  { %5534 = vmatpush3.bf16.msra.mxu0 %v5814_v23 }
 0x7fe   :  { %v4039_v60 = vpop.f32.mrb[160].mxu0 }
 0x7ff   :  { %v4046_v42 = vadd.f32 %v4039_v60, %v3645_v45  ;;  %v5517_v44 = vpop.f32.mrb[161].mxu0 }
 0x800   :  { %v4042_v62 = vpop.f32.mrb[162].mxu0 }
 0x801   :  { %v4048_v48 = vmax.f32 %v4046_v42, 0.0  ;;  %v4047_v33 = vadd.f32 %v4042_v62, %v3646_v11  ;;  %v5518_v50 = vpop.f32.mrb[163].mxu0  ;;  %v5818_v11 = vld [vmem:[%s6555_s6 + $0x10] sm:$0xff]   ;;  %s5877_s6 = smov [#allocation7]  }
 0x802   :  { %s4458_s30 = sshll.u32 %s5877_s6, 4  ;;  %s4459_s30 = int_to_ptr.vmem [resolvable:$true] %s4458_s30 }
 0x803   :  { %4051 = vst [vmem:[#allocation3 + $0x8] sm:$0xff] %v4048_v48  ;;  %v4049_v51 = vmax.f32 %v4047_v33, 0.0  ;;  %s5846_s0 = scalar_lea.vmem %s4459_s30, 256  ;;  %p5851_p9 = scmp.lt.s32.totalorder %s4459_s30, %s4459_s30 }
 0x804   :  { %p5847_p8 = scmp.ne.s32.totalorder %s4459_s30, %s5846_s0  ;;  %p5852_p10 = scmp.lt.s32.totalorder %s5846_s0, %s5846_s0 }
 0x805   :  { %4057 = vst [vmem:[#allocation3 + $0x98] sm:$0xff] %v4049_v51  ;;  %v4063_v39 = vpack.c.bf16 %v4049_v51, %v4048_v48 }
 0x806   :  { %p5853_p11 = por %p5852_p10, %p5851_p9 }
 0x807   :  { %4289 = vmatprep.mubr.bf16.mxu1 %v4063_v39 }
 0x808   :  { %p5854_p12 = pnand %p5853_p11, %p5847_p8 }
 0x80a   :  { %v4055_v53 = vld [vmem:[#allocation3 + $0x9] sm:$0xff] }
 0x80b   :  { %v4053_v43 = vld [vmem:[#allocation3 + $0x7] sm:$0xff] }
 0x80c   :  { %v4061_v57 = vld [vmem:[#allocation3 + $0x99] sm:$0xff] }
 0x80d   :  { %v4059_v45 = vld [vmem:[#allocation3 + $0x97] sm:$0xff]  ;;  %v4064_v58 = vpack.c.bf16 %v4061_v57, %v4055_v53 }
 0x80e   :  { %v4062_v59 = vpack.c.bf16 %v4059_v45, %v4053_v43 }
 0x80f   :  { %5536 = vmatmul.mubr.bf16.vlgmr.msra.gmra.mrb[164].mxu0 %v4064_v58 }
 0x810   :  { %4290 = vmatmul.mubr.bf16.vlgmr.msra.gmra.mrb[160].mxu1 %v4062_v59 }
 0x811   :  { %5540 = vmatpush3.bf16.msra.mxu1 %v5816_v54  ;;  %5555 = vmatprep.mubr.msk.bf16.mxu1 %vm5876_vm2, %v5875_v55 }
 0x812   :  { %5541 = vmatprep.subr.bf16.mxu1 %v5875_v55 }
 0x815   :  { %5542 = vmatpush3.bf16.msra.mxu1 %v5817_v47 }
 0x816   :  { %5543 = vmatprep.subr.bf16.mxu1 %v5875_v55 }
 0x819   :  { %5544 = vmatpush3.bf16.msra.mxu1 %v5818_v11 }
 0x81a   :  { %5545 = vmatprep.subr.bf16.mxu1 %v5875_v55 }
 0x81d   :  { %5546 = vmatpush3.bf16.msra.mxu1 %v5819_v2 }
 0x81e   :  { %5547 = vmatprep.subr.bf16.mxu1 %v5875_v55 }
 0x821   :  { %5548 = vmatpush3.bf16.msra.mxu1 %v5820_v61 }
 0x822   :  { %5549 = vmatprep.subr.bf16.mxu1 %v5875_v55 }
 0x825   :  { %5550 = vmatpush3.bf16.msra.mxu1 %v5821_v0 }
 0x826   :  { %5551 = vmatprep.subr.bf16.mxu1 %v5875_v55 }
 0x829   :  { %5552 = vmatpush3.bf16.msra.mxu1 %v5822_v1 }
 0x82a   :  { %5553 = vmatprep.subr.bf16.mxu1 %v5875_v55 }
 0x82d   :  { %5554 = vmatpush3.bf16.msra.mxu1 %v5823_v4 }
 0x8e2   :  { %v4332_v46 = vpop.f32.mrb[164].mxu0 }
 0x8e3   :  { %v5389_v5 = vpop.f32.mrb[160].mxu1  ;;  %v5537_v3 = vpop.f32.mrb[165].mxu0 }
 0x8e4   :  { %v5390_v7 = vpop.f32.mrb[161].mxu1  ;;  %v4335_v9 = vpop.f32.mrb[166].mxu0 }
 0x8e5   :  { %v5391_v6 = vadd.f32 %v5390_v7, %v5389_v5  ;;  %v5392_v10 = vpop.f32.mrb[162].mxu1  ;;  %v5538_v49 = vpop.f32.mrb[167].mxu0 }
 0x8e6   :  { %v5393_v12 = vpop.f32.mrb[163].mxu1 }
 0x8e7   :  { %v4333_v13 = vadd.f32 %v5391_v6, %v4332_v46  ;;  %v5394_v15 = vadd.f32 %v5393_v12, %v5392_v10 }
 0x8e9   :  { %v4336_v16 = vadd.f32 %v5394_v15, %v4335_v9  ;;  %v4339_v38 = vmax.f32 %v4333_v13, 0.0 }
 0x8eb   :  { %v4340_v20 = vmax.f32 %v4336_v16, 0.0 }
 0x8ed   :  { %v4341_v55 = vpack.c.bf16 %v4340_v20, %v4339_v38 }
 0x8ef   :  { %5556 = vmatmul.mubr.bf16.vlgmr.msra.gmra.mrb[164].mxu1 %v4341_v55 }
 0x9c2   :  { %v4440_v21 = vpop.f32.mrb[164].mxu1 }
 0x9c3   :  { %v4447_v8 = vadd.f32 %v4440_v21, %v4046_v42  ;;  %v5557_v22 = vpop.f32.mrb[165].mxu1 }
 0x9c4   :  { %v4443_v52 = vpop.f32.mrb[166].mxu1 }
 0x9c5   :  { %v4449_v24 = vmax.f32 %v4447_v8, 0.0  ;;  %v4448_v25 = vadd.f32 %v4443_v52, %v4047_v33  ;;  %v5558_v26 = vpop.f32.mrb[167].mxu1 }
 0x9c7   :  { %4451 = vst [vmem:[#allocation7] sm:$0xff] %v4449_v24  ;;  %v4450_v27 = vmax.f32 %v4448_v25, 0.0 }
 0x9c9   :  { %4452 = vst [vmem:[#allocation7 + $0x8] sm:$0xff] %v4450_v27 }
 0x9ca   :  { %5857 = shalt.err (!%p5854_p12)
}
 0x9cb   :  { %s5858_s9 = scalar_lea.hbm %s6556_s7, 256 }
 0x9cc   :  { %p5859_p13 = scmp.ne.s32.totalorder %s6556_s7, %s5858_s9  ;;  %p5862_p0 = scmp.lt.u32.totalorder %s5858_s9, %s6556_s7 }
 0x9ce   :  { %p5864_p1 = pnand %p5862_p0, %p5859_p13 }
 0x9d0   :  { %5867 = shalt.err (!%p5864_p1)
}
 0x9d1   :  { %s5878_s13 = smov 128   ;;  %s5879_s14 = smov 8  }
 0x9d2   :  { %4464 = dma.vmem_to_hbm [thread:$0]  %s4459_s30, 256, %s6556_s7, [#allocation6], %s5878_s13, %s5878_s13, %s5879_s14  }
 0x9d3   :  { %5870 = dma.done.wait [#allocation6], 256  }
 0x9d4   :  { %5871 = vsyncadd [#allocation6], 4294967040 }
 0x9d5   :  { %4468 = vsyncpa [#allocation5], 1 }
 0x9d6   :  { %4469 = vsyncpa [#allocation6], 1 }

</bundles_post_ra>
